<compile_context>
chip_gen: v6e
topology: v6e:2x2x1
jax: 0.10.0
libtpu: 0.0.40
codegen_flags: <defaults>
</compile_context>

<pallas_src>
import jax
import jax.numpy as jnp
from jax import lax
from jax.experimental import pallas as pl
from jax.experimental.pallas import tpu as pltpu


# ----------------------------------------------------------------------------
# Fused forward kernel (no grid: one invocation does the whole forward pass).
# ----------------------------------------------------------------------------
def _make_birnn_kernel(*, num_layers, T, B, BP, H):
    H3, H4, H8 = 3 * H, 4 * H, 8 * H

    def kernel(*refs):
        tok_ref, emb_ref = refs[0], refs[1]
        lstm_refs = refs[2:2 + 3 * num_layers]
        dec_w_ref = refs[2 + 3 * num_layers]
        dec_b_ref = refs[3 + 3 * num_layers]
        out_ref = refs[4 + 3 * num_layers]

        V = emb_ref.shape[0]
        TBP = T * BP

        # ---------------- embedding (bf16 one-hot matmul on the MXU) ----------------
        # TODO(synk): for a realistic vocab size keep the table in HBM
        # (memory_space=pl.ANY) and do a scalar-prefetch + DMA row gather instead.
        tok = tok_ref[...]                                              # (T*BP, 1) int32
        onehot = (tok == lax.broadcasted_iota(jnp.int32, (TBP, V), 1)
                  ).astype(jnp.bfloat16)                                # (T*BP, V)
        x = jnp.dot(onehot, emb_ref[...],
                    preferred_element_type=jnp.float32)                 # (T*BP, E) f32

        hs_f = [None] * T   # per-time forward hidden states (register-resident)
        hs_b = [None] * T   # per-time backward hidden states

        # ---------------- bidirectional LSTM stack ----------------
        for l in range(num_layers):
            wih_ref, whh_ref, b_ref = lstm_refs[3 * l:3 * l + 3]

            # Hoisted input projection for BOTH directions in one wide matmul,
            # bias folded in: (T*BP, F_in) @ (F_in, 8H) -> (T*BP, 8H)
            gx = jnp.dot(x.astype(jnp.bfloat16), wih_ref[...],
                         preferred_element_type=jnp.float32) + b_ref[...]

            whh = whh_ref[...]                                          # (2H, 8H) bf16

            c_f = jnp.zeros((BP, H), jnp.float32)
            c_b = jnp.zeros((BP, H), jnp.float32)
            h_cat = jnp.zeros((BP, 2 * H), jnp.float32)                 # [h_f | h_b]

            def _update(gd, c):
                # gd: (BP, 4H) pre-activation gates, order [i, f, o, g]
                sg = jax.nn.sigmoid(gd[:, 0:H3])                        # i, f, o
                gg = jnp.tanh(gd[:, H3:H4])                             # g
                c_new = sg[:, H:2 * H] * c + sg[:, 0:H] * gg
                h_new = sg[:, 2 * H:H3] * jnp.tanh(c_new)
                return h_new, c_new

            # Fused fwd/bwd recurrence; T is small and static -> fully unrolled,
            # every slice offset is static and tile-aligned.
            # TODO(synk): for T >~ 16-32 switch to lax.fori_loop carrying h/c with
            # pl.ds(pl.multiple_of(s*BP, 8), BP) slices to bound live ranges.
            for s in range(T):
                rf = s * BP                 # forward processes time step s
                rb = (T - 1 - s) * BP       # backward processes time step T-1-s

                rec = jnp.dot(h_cat.astype(jnp.bfloat16), whh,
                              preferred_element_type=jnp.float32)       # (BP, 8H)
                gx_step = jnp.concatenate(
                    [gx[rf:rf + BP, 0:H4], gx[rb:rb + BP, H4:H8]], axis=-1)
                g = rec + gx_step                                       # (BP, 8H)

                h_f, c_f = _update(g[:, 0:H4], c_f)
                h_b, c_b = _update(g[:, H4:H8], c_b)

                hs_f[s] = h_f
                hs_b[T - 1 - s] = h_b
                h_cat = jnp.concatenate([h_f, h_b], axis=-1)

            if l + 1 < num_layers:
                # next layer input: [fwd || bwd] per time step, built once per layer
                x = jnp.concatenate(
                    [jnp.concatenate([hs_f[t], hs_b[t]], axis=-1) for t in range(T)],
                    axis=0)                                             # (T*BP, 2H)

        # ---------- encoding = cat(outputs[0], outputs[-1], -1); decoder ----------
        enc = jnp.concatenate(
            [hs_f[0], hs_b[0], hs_f[T - 1], hs_b[T - 1]], axis=-1)      # (BP, 4H)
        logits = jnp.dot(enc, dec_w_ref[...],
                         preferred_element_type=jnp.float32) + dec_b_ref[...]
        out_ref[...] = logits[0:B, :]                                   # drop batch padding

    return kernel


# ----------------------------------------------------------------------------
# Wrapper: weight packing (direction fusion, gate reorder, block-diag W_hh,
# bf16 pre-cast) + token layout prep + one pallas_call.
# ----------------------------------------------------------------------------
def _permute_gates(w, H):
    # PyTorch gate order [i, f, g, o] -> kernel order [i, f, o, g] (last axis)
    return jnp.concatenate(
        [w[..., 0:H], w[..., H:2 * H], w[..., 3 * H:4 * H], w[..., 2 * H:3 * H]],
        axis=-1)


def _prep_layer(layer, H):
    fwd, bwd = layer[0], layer[1]
    wih = jnp.concatenate(
        [_permute_gates(fwd["w_ih"], H), _permute_gates(bwd["w_ih"], H)],
        axis=1).astype(jnp.bfloat16)                                    # (F_in, 8H)
    bias = jnp.concatenate(
        [_permute_gates(fwd["bias"], H), _permute_gates(bwd["bias"], H)],
        axis=1)                                                         # (1, 8H) f32
    whh = jnp.zeros((2 * H, 8 * H), jnp.float32)
    whh = whh.at[0:H, 0:4 * H].set(_permute_gates(fwd["w_hh"], H))
    whh = whh.at[H:2 * H, 4 * H:8 * H].set(_permute_gates(bwd["w_hh"], H))
    return wih, whh.astype(jnp.bfloat16), bias


def birnn_forward(params, tokens):
    B, T = tokens.shape
    H = params["lstm"][0][0]["w_hh"].shape[0]
    num_layers = len(params["lstm"])
    n_out = params["dec_w"].shape[1]
    BP = max(8, ((B + 7) // 8) * 8)   # pad batch to a full sublane tile

    # (B, T) -> time-major, batch-padded, flattened (row r = t*BP + b); padded rows use token 0
    tok_p = jnp.zeros((BP, T), jnp.int32).at[:B, :].set(tokens.astype(jnp.int32))
    tok_tb = tok_p.T.reshape(T * BP, 1)

    args = [tok_tb, params["embedding"].astype(jnp.bfloat16)]
    for layer in params["lstm"]:
        args += list(_prep_layer(layer, H))
    args += [params["dec_w"], params["dec_b"].reshape(1, n_out)]

    kernel = _make_birnn_kernel(num_layers=num_layers, T=T, B=B, BP=BP, H=H)

    # TODO(synk): on v7x with large H, split fwd/bwd directions across the two
    # TensorCores (pl.core_map over pltpu.create_tensorcore_mesh); at these toy
    # sizes a single fused call wins.  Total resident footprint here is <1 MiB,
    # so no vmem_limit_bytes override is needed on any generation.
    return pl.pallas_call(
        kernel,
        out_shape=jax.ShapeDtypeStruct((B, n_out), jnp.float32),
    )(*args)


# ----------------------------------------------------------------------------
# Parameters (PyTorch conventions: gate order [i, f, g, o]; weights stored
# pre-transposed as (F_in, 4H) / (H, 4H); bias = b_ih + b_hh combined)
# ----------------------------------------------------------------------------
def init_params(key, vocab_size, embed_size, num_hiddens, num_layers):
    scale = 0.1
    k_emb, k_dw, k_db, k_lstm = jax.random.split(key, 4)
    params = {
        "embedding": scale * jax.random.normal(
            k_emb, (vocab_size, embed_size), jnp.float32),
        "dec_w": scale * jax.random.normal(
            k_dw, (4 * num_hiddens, 5), jnp.float32),
        "dec_b": scale * jax.random.normal(k_db, (5,), jnp.float32),
        "lstm": [],
    }
    H = num_hiddens
    for l in range(num_layers):
        d_in = embed_size if l == 0 else 2 * H
        layer = []
        for _d in range(2):  # forward, backward directions
            k_lstm, k1, k2, k3 = jax.random.split(k_lstm, 4)
            layer.append({
                "w_ih": scale * jax.random.normal(k1, (d_in, 4 * H), jnp.float32),
                "w_hh": scale * jax.random.normal(k2, (H, 4 * H), jnp.float32),
                "bias": scale * jax.random.normal(k3, (1, 4 * H), jnp.float32),
            })
        params["lstm"].append(layer)
    return params


if __name__ == "__main__":
    vocab_size = 53      # len(vocab) + 1 analogue
    embed_size = 32
    num_hiddens = 32
    num_layers = 2
    B, T = 2, 8

    key = jax.random.PRNGKey(0)
    k_tok, k_param = jax.random.split(key)
    tokens = jax.random.randint(k_tok, (B, T), 0, vocab_size, dtype=jnp.int32)
    params = init_params(k_param, vocab_size, embed_size, num_hiddens, num_layers)

    fwd = jax.jit(birnn_forward)
    out = fwd(params, tokens)
    out = jax.block_until_ready(out)
    assert out.shape == (B, 5) and out.dtype == jnp.float32
    print("KERNEL_OK")
</pallas_src>

<mosaic_0001>
module attributes {stable_mosaic.version = 11 : i64} {
  func.func @kernel(%arg0: memref<64x1xi32, #tpu.memory_space<vmem>>, %arg1: memref<53x32xbf16, #tpu.memory_space<vmem>>, %arg2: memref<32x256xbf16, #tpu.memory_space<vmem>>, %arg3: memref<64x256xbf16, #tpu.memory_space<vmem>>, %arg4: memref<1x256xf32, #tpu.memory_space<vmem>>, %arg5: memref<64x256xbf16, #tpu.memory_space<vmem>>, %arg6: memref<64x256xbf16, #tpu.memory_space<vmem>>, %arg7: memref<1x256xf32, #tpu.memory_space<vmem>>, %arg8: memref<128x5xf32, #tpu.memory_space<vmem>>, %arg9: memref<1x5xf32, #tpu.memory_space<vmem>>, %arg10: memref<2x5xf32, #tpu.memory_space<vmem>>) attributes {dimension_semantics = [], scalar_prefetch = 0 : i64, scratch_operands = 0 : i64, tpu.core_type = #tpu.core_type<tc>} {
    %c0 = arith.constant 0 : index
    %c0_0 = arith.constant 0 : index
    %0 = vector.load %arg0[%c0, %c0_0] : memref<64x1xi32, #tpu.memory_space<vmem>>, vector<64x1xi32>
    %1 = tpu.iota {dimensions = array<i32: 1>} : vector<64x53xi32>
    %2 = vector.broadcast %0 : vector<64x1xi32> to vector<64x53xi32>
    %3 = arith.cmpi eq, %2, %1 : vector<64x53xi32>
    %4 = arith.extui %3 : vector<64x53xi1> to vector<64x53xi32>
    %5 = arith.sitofp %4 : vector<64x53xi32> to vector<64x53xf32>
    %6 = arith.truncf %5 : vector<64x53xf32> to vector<64x53xbf16>
    %c0_1 = arith.constant 0 : index
    %c0_2 = arith.constant 0 : index
    %7 = vector.load %arg1[%c0_1, %c0_2] : memref<53x32xbf16, #tpu.memory_space<vmem>>, vector<53x32xbf16>
    %cst = arith.constant dense<0.000000e+00> : vector<64x32xf32>
    %8 = tpu.matmul %6, %7, %cst {dimension_numbers = #tpu.dot_dimension_numbers<[1], [0], [0], [1], [0, 0, 1, 1], [], []>} : vector<64x53xbf16>, vector<53x32xbf16>, vector<64x32xf32> -> vector<64x32xf32>
    %9 = arith.truncf %8 : vector<64x32xf32> to vector<64x32xbf16>
    %c0_3 = arith.constant 0 : index
    %c0_4 = arith.constant 0 : index
    %10 = vector.load %arg2[%c0_3, %c0_4] : memref<32x256xbf16, #tpu.memory_space<vmem>>, vector<32x256xbf16>
    %cst_5 = arith.constant dense<0.000000e+00> : vector<64x256xf32>
    %11 = tpu.matmul %9, %10, %cst_5 {dimension_numbers = #tpu.dot_dimension_numbers<[1], [0], [0], [1], [0, 0, 1, 1], [], []>} : vector<64x32xbf16>, vector<32x256xbf16>, vector<64x256xf32> -> vector<64x256xf32>
    %c0_6 = arith.constant 0 : index
    %c0_7 = arith.constant 0 : index
    %12 = vector.load %arg4[%c0_6, %c0_7] : memref<1x256xf32, #tpu.memory_space<vmem>>, vector<1x256xf32>
    %13 = vector.broadcast %12 : vector<1x256xf32> to vector<64x256xf32>
    %14 = arith.addf %11, %13 : vector<64x256xf32>
    %c0_8 = arith.constant 0 : index
    %c0_9 = arith.constant 0 : index
    %15 = vector.load %arg3[%c0_8, %c0_9] : memref<64x256xbf16, #tpu.memory_space<vmem>>, vector<64x256xbf16>
    %cst_10 = arith.constant 0.000000e+00 : f32
    %16 = vector.broadcast %cst_10 : f32 to vector<8x32xf32>
    %cst_11 = arith.constant 0.000000e+00 : f32
    %17 = vector.broadcast %cst_11 : f32 to vector<8x32xf32>
    %cst_12 = arith.constant 0.000000e+00 : f32
    %18 = vector.broadcast %cst_12 : f32 to vector<8x64xf32>
    %19 = arith.truncf %18 : vector<8x64xf32> to vector<8x64xbf16>
    %cst_13 = arith.constant dense<0.000000e+00> : vector<8x256xf32>
    %20 = tpu.matmul %19, %15, %cst_13 {dimension_numbers = #tpu.dot_dimension_numbers<[1], [0], [0], [1], [0, 0, 1, 1], [], []>} : vector<8x64xbf16>, vector<64x256xbf16>, vector<8x256xf32> -> vector<8x256xf32>
    %21 = vector.extract_strided_slice %14 {offsets = [0, 0], sizes = [8, 128], strides = [1, 1]} : vector<64x256xf32> to vector<8x128xf32>
    %22 = vector.extract_strided_slice %14 {offsets = [56, 128], sizes = [8, 128], strides = [1, 1]} : vector<64x256xf32> to vector<8x128xf32>
    %23 = tpu.concatenate %21, %22 in 1 : vector<8x128xf32>, vector<8x128xf32> -> vector<8x256xf32>
    %24 = arith.addf %20, %23 : vector<8x256xf32>
    %25 = vector.extract_strided_slice %24 {offsets = [0, 0], sizes = [8, 128], strides = [1, 1]} : vector<8x256xf32> to vector<8x128xf32>
    %26 = vector.extract_strided_slice %25 {offsets = [0, 0], sizes = [8, 96], strides = [1, 1]} : vector<8x128xf32> to vector<8x96xf32>
    %27 = arith.negf %26 : vector<8x96xf32>
    %28 = math.exp %27 : vector<8x96xf32>
    %cst_14 = arith.constant 1.000000e+00 : f32
    %29 = vector.broadcast %cst_14 : f32 to vector<8x96xf32>
    %30 = arith.addf %29, %28 : vector<8x96xf32>
    %31 = arith.divf %29, %30 : vector<8x96xf32>
    %32 = vector.extract_strided_slice %25 {offsets = [0, 96], sizes = [8, 32], strides = [1, 1]} : vector<8x128xf32> to vector<8x32xf32>
    %33 = math.tanh %32 : vector<8x32xf32>
    %34 = vector.extract_strided_slice %31 {offsets = [0, 32], sizes = [8, 32], strides = [1, 1]} : vector<8x96xf32> to vector<8x32xf32>
    %35 = arith.mulf %34, %16 : vector<8x32xf32>
    %36 = vector.extract_strided_slice %31 {offsets = [0, 0], sizes = [8, 32], strides = [1, 1]} : vector<8x96xf32> to vector<8x32xf32>
    %37 = arith.mulf %36, %33 : vector<8x32xf32>
    %38 = arith.addf %35, %37 : vector<8x32xf32>
    %39 = vector.extract_strided_slice %31 {offsets = [0, 64], sizes = [8, 32], strides = [1, 1]} : vector<8x96xf32> to vector<8x32xf32>
    %40 = math.tanh %38 : vector<8x32xf32>
    %41 = arith.mulf %39, %40 : vector<8x32xf32>
    %42 = vector.extract_strided_slice %24 {offsets = [0, 128], sizes = [8, 128], strides = [1, 1]} : vector<8x256xf32> to vector<8x128xf32>
    %43 = vector.extract_strided_slice %42 {offsets = [0, 0], sizes = [8, 96], strides = [1, 1]} : vector<8x128xf32> to vector<8x96xf32>
    %44 = arith.negf %43 : vector<8x96xf32>
    %45 = math.exp %44 : vector<8x96xf32>
    %cst_15 = arith.constant 1.000000e+00 : f32
    %46 = vector.broadcast %cst_15 : f32 to vector<8x96xf32>
    %47 = arith.addf %46, %45 : vector<8x96xf32>
    %48 = arith.divf %46, %47 : vector<8x96xf32>
    %49 = vector.extract_strided_slice %42 {offsets = [0, 96], sizes = [8, 32], strides = [1, 1]} : vector<8x128xf32> to vector<8x32xf32>
    %50 = math.tanh %49 : vector<8x32xf32>
    %51 = vector.extract_strided_slice %48 {offsets = [0, 32], sizes = [8, 32], strides = [1, 1]} : vector<8x96xf32> to vector<8x32xf32>
    %52 = arith.mulf %51, %17 : vector<8x32xf32>
    %53 = vector.extract_strided_slice %48 {offsets = [0, 0], sizes = [8, 32], strides = [1, 1]} : vector<8x96xf32> to vector<8x32xf32>
    %54 = arith.mulf %53, %50 : vector<8x32xf32>
    %55 = arith.addf %52, %54 : vector<8x32xf32>
    %56 = vector.extract_strided_slice %48 {offsets = [0, 64], sizes = [8, 32], strides = [1, 1]} : vector<8x96xf32> to vector<8x32xf32>
    %57 = math.tanh %55 : vector<8x32xf32>
    %58 = arith.mulf %56, %57 : vector<8x32xf32>
    %59 = tpu.concatenate %41, %58 in 1 : vector<8x32xf32>, vector<8x32xf32> -> vector<8x64xf32>
    %60 = arith.truncf %59 : vector<8x64xf32> to vector<8x64xbf16>
    %cst_16 = arith.constant dense<0.000000e+00> : vector<8x256xf32>
    %61 = tpu.matmul %60, %15, %cst_16 {dimension_numbers = #tpu.dot_dimension_numbers<[1], [0], [0], [1], [0, 0, 1, 1], [], []>} : vector<8x64xbf16>, vector<64x256xbf16>, vector<8x256xf32> -> vector<8x256xf32>
    %62 = vector.extract_strided_slice %14 {offsets = [8, 0], sizes = [8, 128], strides = [1, 1]} : vector<64x256xf32> to vector<8x128xf32>
    %63 = vector.extract_strided_slice %14 {offsets = [48, 128], sizes = [8, 128], strides = [1, 1]} : vector<64x256xf32> to vector<8x128xf32>
    %64 = tpu.concatenate %62, %63 in 1 : vector<8x128xf32>, vector<8x128xf32> -> vector<8x256xf32>
    %65 = arith.addf %61, %64 : vector<8x256xf32>
    %66 = vector.extract_strided_slice %65 {offsets = [0, 0], sizes = [8, 128], strides = [1, 1]} : vector<8x256xf32> to vector<8x128xf32>
    %67 = vector.extract_strided_slice %66 {offsets = [0, 0], sizes = [8, 96], strides = [1, 1]} : vector<8x128xf32> to vector<8x96xf32>
    %68 = arith.negf %67 : vector<8x96xf32>
    %69 = math.exp %68 : vector<8x96xf32>
    %cst_17 = arith.constant 1.000000e+00 : f32
    %70 = vector.broadcast %cst_17 : f32 to vector<8x96xf32>
    %71 = arith.addf %70, %69 : vector<8x96xf32>
    %72 = arith.divf %70, %71 : vector<8x96xf32>
    %73 = vector.extract_strided_slice %66 {offsets = [0, 96], sizes = [8, 32], strides = [1, 1]} : vector<8x128xf32> to vector<8x32xf32>
    %74 = math.tanh %73 : vector<8x32xf32>
    %75 = vector.extract_strided_slice %72 {offsets = [0, 32], sizes = [8, 32], strides = [1, 1]} : vector<8x96xf32> to vector<8x32xf32>
    %76 = arith.mulf %75, %38 : vector<8x32xf32>
    %77 = vector.extract_strided_slice %72 {offsets = [0, 0], sizes = [8, 32], strides = [1, 1]} : vector<8x96xf32> to vector<8x32xf32>
    %78 = arith.mulf %77, %74 : vector<8x32xf32>
    %79 = arith.addf %76, %78 : vector<8x32xf32>
    %80 = vector.extract_strided_slice %72 {offsets = [0, 64], sizes = [8, 32], strides = [1, 1]} : vector<8x96xf32> to vector<8x32xf32>
    %81 = math.tanh %79 : vector<8x32xf32>
    %82 = arith.mulf %80, %81 : vector<8x32xf32>
    %83 = vector.extract_strided_slice %65 {offsets = [0, 128], sizes = [8, 128], strides = [1, 1]} : vector<8x256xf32> to vector<8x128xf32>
    %84 = vector.extract_strided_slice %83 {offsets = [0, 0], sizes = [8, 96], strides = [1, 1]} : vector<8x128xf32> to vector<8x96xf32>
    %85 = arith.negf %84 : vector<8x96xf32>
    %86 = math.exp %85 : vector<8x96xf32>
    %cst_18 = arith.constant 1.000000e+00 : f32
    %87 = vector.broadcast %cst_18 : f32 to vector<8x96xf32>
    %88 = arith.addf %87, %86 : vector<8x96xf32>
    %89 = arith.divf %87, %88 : vector<8x96xf32>
    %90 = vector.extract_strided_slice %83 {offsets = [0, 96], sizes = [8, 32], strides = [1, 1]} : vector<8x128xf32> to vector<8x32xf32>
    %91 = math.tanh %90 : vector<8x32xf32>
    %92 = vector.extract_strided_slice %89 {offsets = [0, 32], sizes = [8, 32], strides = [1, 1]} : vector<8x96xf32> to vector<8x32xf32>
    %93 = arith.mulf %92, %55 : vector<8x32xf32>
    %94 = vector.extract_strided_slice %89 {offsets = [0, 0], sizes = [8, 32], strides = [1, 1]} : vector<8x96xf32> to vector<8x32xf32>
    %95 = arith.mulf %94, %91 : vector<8x32xf32>
    %96 = arith.addf %93, %95 : vector<8x32xf32>
    %97 = vector.extract_strided_slice %89 {offsets = [0, 64], sizes = [8, 32], strides = [1, 1]} : vector<8x96xf32> to vector<8x32xf32>
    %98 = math.tanh %96 : vector<8x32xf32>
    %99 = arith.mulf %97, %98 : vector<8x32xf32>
    %100 = tpu.concatenate %82, %99 in 1 : vector<8x32xf32>, vector<8x32xf32> -> vector<8x64xf32>
    %101 = arith.truncf %100 : vector<8x64xf32> to vector<8x64xbf16>
    %cst_19 = arith.constant dense<0.000000e+00> : vector<8x256xf32>
    %102 = tpu.matmul %101, %15, %cst_19 {dimension_numbers = #tpu.dot_dimension_numbers<[1], [0], [0], [1], [0, 0, 1, 1], [], []>} : vector<8x64xbf16>, vector<64x256xbf16>, vector<8x256xf32> -> vector<8x256xf32>
    %103 = vector.extract_strided_slice %14 {offsets = [16, 0], sizes = [8, 128], strides = [1, 1]} : vector<64x256xf32> to vector<8x128xf32>
    %104 = vector.extract_strided_slice %14 {offsets = [40, 128], sizes = [8, 128], strides = [1, 1]} : vector<64x256xf32> to vector<8x128xf32>
    %105 = tpu.concatenate %103, %104 in 1 : vector<8x128xf32>, vector<8x128xf32> -> vector<8x256xf32>
    %106 = arith.addf %102, %105 : vector<8x256xf32>
    %107 = vector.extract_strided_slice %106 {offsets = [0, 0], sizes = [8, 128], strides = [1, 1]} : vector<8x256xf32> to vector<8x128xf32>
    %108 = vector.extract_strided_slice %107 {offsets = [0, 0], sizes = [8, 96], strides = [1, 1]} : vector<8x128xf32> to vector<8x96xf32>
    %109 = arith.negf %108 : vector<8x96xf32>
    %110 = math.exp %109 : vector<8x96xf32>
    %cst_20 = arith.constant 1.000000e+00 : f32
    %111 = vector.broadcast %cst_20 : f32 to vector<8x96xf32>
    %112 = arith.addf %111, %110 : vector<8x96xf32>
    %113 = arith.divf %111, %112 : vector<8x96xf32>
    %114 = vector.extract_strided_slice %107 {offsets = [0, 96], sizes = [8, 32], strides = [1, 1]} : vector<8x128xf32> to vector<8x32xf32>
    %115 = math.tanh %114 : vector<8x32xf32>
    %116 = vector.extract_strided_slice %113 {offsets = [0, 32], sizes = [8, 32], strides = [1, 1]} : vector<8x96xf32> to vector<8x32xf32>
    %117 = arith.mulf %116, %79 : vector<8x32xf32>
    %118 = vector.extract_strided_slice %113 {offsets = [0, 0], sizes = [8, 32], strides = [1, 1]} : vector<8x96xf32> to vector<8x32xf32>
    %119 = arith.mulf %118, %115 : vector<8x32xf32>
    %120 = arith.addf %117, %119 : vector<8x32xf32>
    %121 = vector.extract_strided_slice %113 {offsets = [0, 64], sizes = [8, 32], strides = [1, 1]} : vector<8x96xf32> to vector<8x32xf32>
    %122 = math.tanh %120 : vector<8x32xf32>
    %123 = arith.mulf %121, %122 : vector<8x32xf32>
    %124 = vector.extract_strided_slice %106 {offsets = [0, 128], sizes = [8, 128], strides = [1, 1]} : vector<8x256xf32> to vector<8x128xf32>
    %125 = vector.extract_strided_slice %124 {offsets = [0, 0], sizes = [8, 96], strides = [1, 1]} : vector<8x128xf32> to vector<8x96xf32>
    %126 = arith.negf %125 : vector<8x96xf32>
    %127 = math.exp %126 : vector<8x96xf32>
    %cst_21 = arith.constant 1.000000e+00 : f32
    %128 = vector.broadcast %cst_21 : f32 to vector<8x96xf32>
    %129 = arith.addf %128, %127 : vector<8x96xf32>
    %130 = arith.divf %128, %129 : vector<8x96xf32>
    %131 = vector.extract_strided_slice %124 {offsets = [0, 96], sizes = [8, 32], strides = [1, 1]} : vector<8x128xf32> to vector<8x32xf32>
    %132 = math.tanh %131 : vector<8x32xf32>
    %133 = vector.extract_strided_slice %130 {offsets = [0, 32], sizes = [8, 32], strides = [1, 1]} : vector<8x96xf32> to vector<8x32xf32>
    %134 = arith.mulf %133, %96 : vector<8x32xf32>
    %135 = vector.extract_strided_slice %130 {offsets = [0, 0], sizes = [8, 32], strides = [1, 1]} : vector<8x96xf32> to vector<8x32xf32>
    %136 = arith.mulf %135, %132 : vector<8x32xf32>
    %137 = arith.addf %134, %136 : vector<8x32xf32>
    %138 = vector.extract_strided_slice %130 {offsets = [0, 64], sizes = [8, 32], strides = [1, 1]} : vector<8x96xf32> to vector<8x32xf32>
    %139 = math.tanh %137 : vector<8x32xf32>
    %140 = arith.mulf %138, %139 : vector<8x32xf32>
    %141 = tpu.concatenate %123, %140 in 1 : vector<8x32xf32>, vector<8x32xf32> -> vector<8x64xf32>
    %142 = arith.truncf %141 : vector<8x64xf32> to vector<8x64xbf16>
    %cst_22 = arith.constant dense<0.000000e+00> : vector<8x256xf32>
    %143 = tpu.matmul %142, %15, %cst_22 {dimension_numbers = #tpu.dot_dimension_numbers<[1], [0], [0], [1], [0, 0, 1, 1], [], []>} : vector<8x64xbf16>, vector<64x256xbf16>, vector<8x256xf32> -> vector<8x256xf32>
    %144 = vector.extract_strided_slice %14 {offsets = [24, 0], sizes = [8, 128], strides = [1, 1]} : vector<64x256xf32> to vector<8x128xf32>
    %145 = vector.extract_strided_slice %14 {offsets = [32, 128], sizes = [8, 128], strides = [1, 1]} : vector<64x256xf32> to vector<8x128xf32>
    %146 = tpu.concatenate %144, %145 in 1 : vector<8x128xf32>, vector<8x128xf32> -> vector<8x256xf32>
    %147 = arith.addf %143, %146 : vector<8x256xf32>
    %148 = vector.extract_strided_slice %147 {offsets = [0, 0], sizes = [8, 128], strides = [1, 1]} : vector<8x256xf32> to vector<8x128xf32>
    %149 = vector.extract_strided_slice %148 {offsets = [0, 0], sizes = [8, 96], strides = [1, 1]} : vector<8x128xf32> to vector<8x96xf32>
    %150 = arith.negf %149 : vector<8x96xf32>
    %151 = math.exp %150 : vector<8x96xf32>
    %cst_23 = arith.constant 1.000000e+00 : f32
    %152 = vector.broadcast %cst_23 : f32 to vector<8x96xf32>
    %153 = arith.addf %152, %151 : vector<8x96xf32>
    %154 = arith.divf %152, %153 : vector<8x96xf32>
    %155 = vector.extract_strided_slice %148 {offsets = [0, 96], sizes = [8, 32], strides = [1, 1]} : vector<8x128xf32> to vector<8x32xf32>
    %156 = math.tanh %155 : vector<8x32xf32>
    %157 = vector.extract_strided_slice %154 {offsets = [0, 32], sizes = [8, 32], strides = [1, 1]} : vector<8x96xf32> to vector<8x32xf32>
    %158 = arith.mulf %157, %120 : vector<8x32xf32>
    %159 = vector.extract_strided_slice %154 {offsets = [0, 0], sizes = [8, 32], strides = [1, 1]} : vector<8x96xf32> to vector<8x32xf32>
    %160 = arith.mulf %159, %156 : vector<8x32xf32>
    %161 = arith.addf %158, %160 : vector<8x32xf32>
    %162 = vector.extract_strided_slice %154 {offsets = [0, 64], sizes = [8, 32], strides = [1, 1]} : vector<8x96xf32> to vector<8x32xf32>
    %163 = math.tanh %161 : vector<8x32xf32>
    %164 = arith.mulf %162, %163 : vector<8x32xf32>
    %165 = vector.extract_strided_slice %147 {offsets = [0, 128], sizes = [8, 128], strides = [1, 1]} : vector<8x256xf32> to vector<8x128xf32>
    %166 = vector.extract_strided_slice %165 {offsets = [0, 0], sizes = [8, 96], strides = [1, 1]} : vector<8x128xf32> to vector<8x96xf32>
    %167 = arith.negf %166 : vector<8x96xf32>
    %168 = math.exp %167 : vector<8x96xf32>
    %cst_24 = arith.constant 1.000000e+00 : f32
    %169 = vector.broadcast %cst_24 : f32 to vector<8x96xf32>
    %170 = arith.addf %169, %168 : vector<8x96xf32>
    %171 = arith.divf %169, %170 : vector<8x96xf32>
    %172 = vector.extract_strided_slice %165 {offsets = [0, 96], sizes = [8, 32], strides = [1, 1]} : vector<8x128xf32> to vector<8x32xf32>
    %173 = math.tanh %172 : vector<8x32xf32>
    %174 = vector.extract_strided_slice %171 {offsets = [0, 32], sizes = [8, 32], strides = [1, 1]} : vector<8x96xf32> to vector<8x32xf32>
    %175 = arith.mulf %174, %137 : vector<8x32xf32>
    %176 = vector.extract_strided_slice %171 {offsets = [0, 0], sizes = [8, 32], strides = [1, 1]} : vector<8x96xf32> to vector<8x32xf32>
    %177 = arith.mulf %176, %173 : vector<8x32xf32>
    %178 = arith.addf %175, %177 : vector<8x32xf32>
    %179 = vector.extract_strided_slice %171 {offsets = [0, 64], sizes = [8, 32], strides = [1, 1]} : vector<8x96xf32> to vector<8x32xf32>
    %180 = math.tanh %178 : vector<8x32xf32>
    %181 = arith.mulf %179, %180 : vector<8x32xf32>
    %182 = tpu.concatenate %164, %181 in 1 : vector<8x32xf32>, vector<8x32xf32> -> vector<8x64xf32>
    %183 = arith.truncf %182 : vector<8x64xf32> to vector<8x64xbf16>
    %cst_25 = arith.constant dense<0.000000e+00> : vector<8x256xf32>
    %184 = tpu.matmul %183, %15, %cst_25 {dimension_numbers = #tpu.dot_dimension_numbers<[1], [0], [0], [1], [0, 0, 1, 1], [], []>} : vector<8x64xbf16>, vector<64x256xbf16>, vector<8x256xf32> -> vector<8x256xf32>
    %185 = vector.extract_strided_slice %14 {offsets = [32, 0], sizes = [8, 128], strides = [1, 1]} : vector<64x256xf32> to vector<8x128xf32>
    %186 = vector.extract_strided_slice %14 {offsets = [24, 128], sizes = [8, 128], strides = [1, 1]} : vector<64x256xf32> to vector<8x128xf32>
    %187 = tpu.concatenate %185, %186 in 1 : vector<8x128xf32>, vector<8x128xf32> -> vector<8x256xf32>
    %188 = arith.addf %184, %187 : vector<8x256xf32>
    %189 = vector.extract_strided_slice %188 {offsets = [0, 0], sizes = [8, 128], strides = [1, 1]} : vector<8x256xf32> to vector<8x128xf32>
    %190 = vector.extract_strided_slice %189 {offsets = [0, 0], sizes = [8, 96], strides = [1, 1]} : vector<8x128xf32> to vector<8x96xf32>
    %191 = arith.negf %190 : vector<8x96xf32>
    %192 = math.exp %191 : vector<8x96xf32>
    %cst_26 = arith.constant 1.000000e+00 : f32
    %193 = vector.broadcast %cst_26 : f32 to vector<8x96xf32>
    %194 = arith.addf %193, %192 : vector<8x96xf32>
    %195 = arith.divf %193, %194 : vector<8x96xf32>
    %196 = vector.extract_strided_slice %189 {offsets = [0, 96], sizes = [8, 32], strides = [1, 1]} : vector<8x128xf32> to vector<8x32xf32>
    %197 = math.tanh %196 : vector<8x32xf32>
    %198 = vector.extract_strided_slice %195 {offsets = [0, 32], sizes = [8, 32], strides = [1, 1]} : vector<8x96xf32> to vector<8x32xf32>
    %199 = arith.mulf %198, %161 : vector<8x32xf32>
    %200 = vector.extract_strided_slice %195 {offsets = [0, 0], sizes = [8, 32], strides = [1, 1]} : vector<8x96xf32> to vector<8x32xf32>
    %201 = arith.mulf %200, %197 : vector<8x32xf32>
    %202 = arith.addf %199, %201 : vector<8x32xf32>
    %203 = vector.extract_strided_slice %195 {offsets = [0, 64], sizes = [8, 32], strides = [1, 1]} : vector<8x96xf32> to vector<8x32xf32>
    %204 = math.tanh %202 : vector<8x32xf32>
    %205 = arith.mulf %203, %204 : vector<8x32xf32>
    %206 = vector.extract_strided_slice %188 {offsets = [0, 128], sizes = [8, 128], strides = [1, 1]} : vector<8x256xf32> to vector<8x128xf32>
    %207 = vector.extract_strided_slice %206 {offsets = [0, 0], sizes = [8, 96], strides = [1, 1]} : vector<8x128xf32> to vector<8x96xf32>
    %208 = arith.negf %207 : vector<8x96xf32>
    %209 = math.exp %208 : vector<8x96xf32>
    %cst_27 = arith.constant 1.000000e+00 : f32
    %210 = vector.broadcast %cst_27 : f32 to vector<8x96xf32>
    %211 = arith.addf %210, %209 : vector<8x96xf32>
    %212 = arith.divf %210, %211 : vector<8x96xf32>
    %213 = vector.extract_strided_slice %206 {offsets = [0, 96], sizes = [8, 32], strides = [1, 1]} : vector<8x128xf32> to vector<8x32xf32>
    %214 = math.tanh %213 : vector<8x32xf32>
    %215 = vector.extract_strided_slice %212 {offsets = [0, 32], sizes = [8, 32], strides = [1, 1]} : vector<8x96xf32> to vector<8x32xf32>
    %216 = arith.mulf %215, %178 : vector<8x32xf32>
    %217 = vector.extract_strided_slice %212 {offsets = [0, 0], sizes = [8, 32], strides = [1, 1]} : vector<8x96xf32> to vector<8x32xf32>
    %218 = arith.mulf %217, %214 : vector<8x32xf32>
    %219 = arith.addf %216, %218 : vector<8x32xf32>
    %220 = vector.extract_strided_slice %212 {offsets = [0, 64], sizes = [8, 32], strides = [1, 1]} : vector<8x96xf32> to vector<8x32xf32>
    %221 = math.tanh %219 : vector<8x32xf32>
    %222 = arith.mulf %220, %221 : vector<8x32xf32>
    %223 = tpu.concatenate %205, %222 in 1 : vector<8x32xf32>, vector<8x32xf32> -> vector<8x64xf32>
    %224 = arith.truncf %223 : vector<8x64xf32> to vector<8x64xbf16>
    %cst_28 = arith.constant dense<0.000000e+00> : vector<8x256xf32>
    %225 = tpu.matmul %224, %15, %cst_28 {dimension_numbers = #tpu.dot_dimension_numbers<[1], [0], [0], [1], [0, 0, 1, 1], [], []>} : vector<8x64xbf16>, vector<64x256xbf16>, vector<8x256xf32> -> vector<8x256xf32>
    %226 = vector.extract_strided_slice %14 {offsets = [40, 0], sizes = [8, 128], strides = [1, 1]} : vector<64x256xf32> to vector<8x128xf32>
    %227 = vector.extract_strided_slice %14 {offsets = [16, 128], sizes = [8, 128], strides = [1, 1]} : vector<64x256xf32> to vector<8x128xf32>
    %228 = tpu.concatenate %226, %227 in 1 : vector<8x128xf32>, vector<8x128xf32> -> vector<8x256xf32>
    %229 = arith.addf %225, %228 : vector<8x256xf32>
    %230 = vector.extract_strided_slice %229 {offsets = [0, 0], sizes = [8, 128], strides = [1, 1]} : vector<8x256xf32> to vector<8x128xf32>
    %231 = vector.extract_strided_slice %230 {offsets = [0, 0], sizes = [8, 96], strides = [1, 1]} : vector<8x128xf32> to vector<8x96xf32>
    %232 = arith.negf %231 : vector<8x96xf32>
    %233 = math.exp %232 : vector<8x96xf32>
    %cst_29 = arith.constant 1.000000e+00 : f32
    %234 = vector.broadcast %cst_29 : f32 to vector<8x96xf32>
    %235 = arith.addf %234, %233 : vector<8x96xf32>
    %236 = arith.divf %234, %235 : vector<8x96xf32>
    %237 = vector.extract_strided_slice %230 {offsets = [0, 96], sizes = [8, 32], strides = [1, 1]} : vector<8x128xf32> to vector<8x32xf32>
    %238 = math.tanh %237 : vector<8x32xf32>
    %239 = vector.extract_strided_slice %236 {offsets = [0, 32], sizes = [8, 32], strides = [1, 1]} : vector<8x96xf32> to vector<8x32xf32>
    %240 = arith.mulf %239, %202 : vector<8x32xf32>
    %241 = vector.extract_strided_slice %236 {offsets = [0, 0], sizes = [8, 32], strides = [1, 1]} : vector<8x96xf32> to vector<8x32xf32>
    %242 = arith.mulf %241, %238 : vector<8x32xf32>
    %243 = arith.addf %240, %242 : vector<8x32xf32>
    %244 = vector.extract_strided_slice %236 {offsets = [0, 64], sizes = [8, 32], strides = [1, 1]} : vector<8x96xf32> to vector<8x32xf32>
    %245 = math.tanh %243 : vector<8x32xf32>
    %246 = arith.mulf %244, %245 : vector<8x32xf32>
    %247 = vector.extract_strided_slice %229 {offsets = [0, 128], sizes = [8, 128], strides = [1, 1]} : vector<8x256xf32> to vector<8x128xf32>
    %248 = vector.extract_strided_slice %247 {offsets = [0, 0], sizes = [8, 96], strides = [1, 1]} : vector<8x128xf32> to vector<8x96xf32>
    %249 = arith.negf %248 : vector<8x96xf32>
    %250 = math.exp %249 : vector<8x96xf32>
    %cst_30 = arith.constant 1.000000e+00 : f32
    %251 = vector.broadcast %cst_30 : f32 to vector<8x96xf32>
    %252 = arith.addf %251, %250 : vector<8x96xf32>
    %253 = arith.divf %251, %252 : vector<8x96xf32>
    %254 = vector.extract_strided_slice %247 {offsets = [0, 96], sizes = [8, 32], strides = [1, 1]} : vector<8x128xf32> to vector<8x32xf32>
    %255 = math.tanh %254 : vector<8x32xf32>
    %256 = vector.extract_strided_slice %253 {offsets = [0, 32], sizes = [8, 32], strides = [1, 1]} : vector<8x96xf32> to vector<8x32xf32>
    %257 = arith.mulf %256, %219 : vector<8x32xf32>
    %258 = vector.extract_strided_slice %253 {offsets = [0, 0], sizes = [8, 32], strides = [1, 1]} : vector<8x96xf32> to vector<8x32xf32>
    %259 = arith.mulf %258, %255 : vector<8x32xf32>
    %260 = arith.addf %257, %259 : vector<8x32xf32>
    %261 = vector.extract_strided_slice %253 {offsets = [0, 64], sizes = [8, 32], strides = [1, 1]} : vector<8x96xf32> to vector<8x32xf32>
    %262 = math.tanh %260 : vector<8x32xf32>
    %263 = arith.mulf %261, %262 : vector<8x32xf32>
    %264 = tpu.concatenate %246, %263 in 1 : vector<8x32xf32>, vector<8x32xf32> -> vector<8x64xf32>
    %265 = arith.truncf %264 : vector<8x64xf32> to vector<8x64xbf16>
    %cst_31 = arith.constant dense<0.000000e+00> : vector<8x256xf32>
    %266 = tpu.matmul %265, %15, %cst_31 {dimension_numbers = #tpu.dot_dimension_numbers<[1], [0], [0], [1], [0, 0, 1, 1], [], []>} : vector<8x64xbf16>, vector<64x256xbf16>, vector<8x256xf32> -> vector<8x256xf32>
    %267 = vector.extract_strided_slice %14 {offsets = [48, 0], sizes = [8, 128], strides = [1, 1]} : vector<64x256xf32> to vector<8x128xf32>
    %268 = vector.extract_strided_slice %14 {offsets = [8, 128], sizes = [8, 128], strides = [1, 1]} : vector<64x256xf32> to vector<8x128xf32>
    %269 = tpu.concatenate %267, %268 in 1 : vector<8x128xf32>, vector<8x128xf32> -> vector<8x256xf32>
    %270 = arith.addf %266, %269 : vector<8x256xf32>
    %271 = vector.extract_strided_slice %270 {offsets = [0, 0], sizes = [8, 128], strides = [1, 1]} : vector<8x256xf32> to vector<8x128xf32>
    %272 = vector.extract_strided_slice %271 {offsets = [0, 0], sizes = [8, 96], strides = [1, 1]} : vector<8x128xf32> to vector<8x96xf32>
    %273 = arith.negf %272 : vector<8x96xf32>
    %274 = math.exp %273 : vector<8x96xf32>
    %cst_32 = arith.constant 1.000000e+00 : f32
    %275 = vector.broadcast %cst_32 : f32 to vector<8x96xf32>
    %276 = arith.addf %275, %274 : vector<8x96xf32>
    %277 = arith.divf %275, %276 : vector<8x96xf32>
    %278 = vector.extract_strided_slice %271 {offsets = [0, 96], sizes = [8, 32], strides = [1, 1]} : vector<8x128xf32> to vector<8x32xf32>
    %279 = math.tanh %278 : vector<8x32xf32>
    %280 = vector.extract_strided_slice %277 {offsets = [0, 32], sizes = [8, 32], strides = [1, 1]} : vector<8x96xf32> to vector<8x32xf32>
    %281 = arith.mulf %280, %243 : vector<8x32xf32>
    %282 = vector.extract_strided_slice %277 {offsets = [0, 0], sizes = [8, 32], strides = [1, 1]} : vector<8x96xf32> to vector<8x32xf32>
    %283 = arith.mulf %282, %279 : vector<8x32xf32>
    %284 = arith.addf %281, %283 : vector<8x32xf32>
    %285 = vector.extract_strided_slice %277 {offsets = [0, 64], sizes = [8, 32], strides = [1, 1]} : vector<8x96xf32> to vector<8x32xf32>
    %286 = math.tanh %284 : vector<8x32xf32>
    %287 = arith.mulf %285, %286 : vector<8x32xf32>
    %288 = vector.extract_strided_slice %270 {offsets = [0, 128], sizes = [8, 128], strides = [1, 1]} : vector<8x256xf32> to vector<8x128xf32>
    %289 = vector.extract_strided_slice %288 {offsets = [0, 0], sizes = [8, 96], strides = [1, 1]} : vector<8x128xf32> to vector<8x96xf32>
    %290 = arith.negf %289 : vector<8x96xf32>
    %291 = math.exp %290 : vector<8x96xf32>
    %cst_33 = arith.constant 1.000000e+00 : f32
    %292 = vector.broadcast %cst_33 : f32 to vector<8x96xf32>
    %293 = arith.addf %292, %291 : vector<8x96xf32>
    %294 = arith.divf %292, %293 : vector<8x96xf32>
    %295 = vector.extract_strided_slice %288 {offsets = [0, 96], sizes = [8, 32], strides = [1, 1]} : vector<8x128xf32> to vector<8x32xf32>
    %296 = math.tanh %295 : vector<8x32xf32>
    %297 = vector.extract_strided_slice %294 {offsets = [0, 32], sizes = [8, 32], strides = [1, 1]} : vector<8x96xf32> to vector<8x32xf32>
    %298 = arith.mulf %297, %260 : vector<8x32xf32>
    %299 = vector.extract_strided_slice %294 {offsets = [0, 0], sizes = [8, 32], strides = [1, 1]} : vector<8x96xf32> to vector<8x32xf32>
    %300 = arith.mulf %299, %296 : vector<8x32xf32>
    %301 = arith.addf %298, %300 : vector<8x32xf32>
    %302 = vector.extract_strided_slice %294 {offsets = [0, 64], sizes = [8, 32], strides = [1, 1]} : vector<8x96xf32> to vector<8x32xf32>
    %303 = math.tanh %301 : vector<8x32xf32>
    %304 = arith.mulf %302, %303 : vector<8x32xf32>
    %305 = tpu.concatenate %287, %304 in 1 : vector<8x32xf32>, vector<8x32xf32> -> vector<8x64xf32>
    %306 = arith.truncf %305 : vector<8x64xf32> to vector<8x64xbf16>
    %cst_34 = arith.constant dense<0.000000e+00> : vector<8x256xf32>
    %307 = tpu.matmul %306, %15, %cst_34 {dimension_numbers = #tpu.dot_dimension_numbers<[1], [0], [0], [1], [0, 0, 1, 1], [], []>} : vector<8x64xbf16>, vector<64x256xbf16>, vector<8x256xf32> -> vector<8x256xf32>
    %308 = vector.extract_strided_slice %14 {offsets = [56, 0], sizes = [8, 128], strides = [1, 1]} : vector<64x256xf32> to vector<8x128xf32>
    %309 = vector.extract_strided_slice %14 {offsets = [0, 128], sizes = [8, 128], strides = [1, 1]} : vector<64x256xf32> to vector<8x128xf32>
    %310 = tpu.concatenate %308, %309 in 1 : vector<8x128xf32>, vector<8x128xf32> -> vector<8x256xf32>
    %311 = arith.addf %307, %310 : vector<8x256xf32>
    %312 = vector.extract_strided_slice %311 {offsets = [0, 0], sizes = [8, 128], strides = [1, 1]} : vector<8x256xf32> to vector<8x128xf32>
    %313 = vector.extract_strided_slice %312 {offsets = [0, 0], sizes = [8, 96], strides = [1, 1]} : vector<8x128xf32> to vector<8x96xf32>
    %314 = arith.negf %313 : vector<8x96xf32>
    %315 = math.exp %314 : vector<8x96xf32>
    %cst_35 = arith.constant 1.000000e+00 : f32
    %316 = vector.broadcast %cst_35 : f32 to vector<8x96xf32>
    %317 = arith.addf %316, %315 : vector<8x96xf32>
    %318 = arith.divf %316, %317 : vector<8x96xf32>
    %319 = vector.extract_strided_slice %312 {offsets = [0, 96], sizes = [8, 32], strides = [1, 1]} : vector<8x128xf32> to vector<8x32xf32>
    %320 = math.tanh %319 : vector<8x32xf32>
    %321 = vector.extract_strided_slice %318 {offsets = [0, 32], sizes = [8, 32], strides = [1, 1]} : vector<8x96xf32> to vector<8x32xf32>
    %322 = arith.mulf %321, %284 : vector<8x32xf32>
    %323 = vector.extract_strided_slice %318 {offsets = [0, 0], sizes = [8, 32], strides = [1, 1]} : vector<8x96xf32> to vector<8x32xf32>
    %324 = arith.mulf %323, %320 : vector<8x32xf32>
    %325 = arith.addf %322, %324 : vector<8x32xf32>
    %326 = vector.extract_strided_slice %318 {offsets = [0, 64], sizes = [8, 32], strides = [1, 1]} : vector<8x96xf32> to vector<8x32xf32>
    %327 = math.tanh %325 : vector<8x32xf32>
    %328 = arith.mulf %326, %327 : vector<8x32xf32>
    %329 = vector.extract_strided_slice %311 {offsets = [0, 128], sizes = [8, 128], strides = [1, 1]} : vector<8x256xf32> to vector<8x128xf32>
    %330 = vector.extract_strided_slice %329 {offsets = [0, 0], sizes = [8, 96], strides = [1, 1]} : vector<8x128xf32> to vector<8x96xf32>
    %331 = arith.negf %330 : vector<8x96xf32>
    %332 = math.exp %331 : vector<8x96xf32>
    %cst_36 = arith.constant 1.000000e+00 : f32
    %333 = vector.broadcast %cst_36 : f32 to vector<8x96xf32>
    %334 = arith.addf %333, %332 : vector<8x96xf32>
    %335 = arith.divf %333, %334 : vector<8x96xf32>
    %336 = vector.extract_strided_slice %329 {offsets = [0, 96], sizes = [8, 32], strides = [1, 1]} : vector<8x128xf32> to vector<8x32xf32>
    %337 = math.tanh %336 : vector<8x32xf32>
    %338 = vector.extract_strided_slice %335 {offsets = [0, 32], sizes = [8, 32], strides = [1, 1]} : vector<8x96xf32> to vector<8x32xf32>
    %339 = arith.mulf %338, %301 : vector<8x32xf32>
    %340 = vector.extract_strided_slice %335 {offsets = [0, 0], sizes = [8, 32], strides = [1, 1]} : vector<8x96xf32> to vector<8x32xf32>
    %341 = arith.mulf %340, %337 : vector<8x32xf32>
    %342 = arith.addf %339, %341 : vector<8x32xf32>
    %343 = vector.extract_strided_slice %335 {offsets = [0, 64], sizes = [8, 32], strides = [1, 1]} : vector<8x96xf32> to vector<8x32xf32>
    %344 = math.tanh %342 : vector<8x32xf32>
    %345 = arith.mulf %343, %344 : vector<8x32xf32>
    %346 = tpu.concatenate %41, %345 in 1 : vector<8x32xf32>, vector<8x32xf32> -> vector<8x64xf32>
    %347 = tpu.concatenate %82, %304 in 1 : vector<8x32xf32>, vector<8x32xf32> -> vector<8x64xf32>
    %348 = tpu.concatenate %123, %263 in 1 : vector<8x32xf32>, vector<8x32xf32> -> vector<8x64xf32>
    %349 = tpu.concatenate %164, %222 in 1 : vector<8x32xf32>, vector<8x32xf32> -> vector<8x64xf32>
    %350 = tpu.concatenate %205, %181 in 1 : vector<8x32xf32>, vector<8x32xf32> -> vector<8x64xf32>
    %351 = tpu.concatenate %246, %140 in 1 : vector<8x32xf32>, vector<8x32xf32> -> vector<8x64xf32>
    %352 = tpu.concatenate %287, %99 in 1 : vector<8x32xf32>, vector<8x32xf32> -> vector<8x64xf32>
    %353 = tpu.concatenate %328, %58 in 1 : vector<8x32xf32>, vector<8x32xf32> -> vector<8x64xf32>
    %354 = tpu.concatenate %346, %347, %348, %349, %350, %351, %352, %353 in 0 : vector<8x64xf32>, vector<8x64xf32>, vector<8x64xf32>, vector<8x64xf32>, vector<8x64xf32>, vector<8x64xf32>, vector<8x64xf32>, vector<8x64xf32> -> vector<64x64xf32>
    %355 = arith.truncf %354 : vector<64x64xf32> to vector<64x64xbf16>
    %c0_37 = arith.constant 0 : index
    %c0_38 = arith.constant 0 : index
    %356 = vector.load %arg5[%c0_37, %c0_38] : memref<64x256xbf16, #tpu.memory_space<vmem>>, vector<64x256xbf16>
    %cst_39 = arith.constant dense<0.000000e+00> : vector<64x256xf32>
    %357 = tpu.matmul %355, %356, %cst_39 {dimension_numbers = #tpu.dot_dimension_numbers<[1], [0], [0], [1], [0, 0, 1, 1], [], []>} : vector<64x64xbf16>, vector<64x256xbf16>, vector<64x256xf32> -> vector<64x256xf32>
    %c0_40 = arith.constant 0 : index
    %c0_41 = arith.constant 0 : index
    %358 = vector.load %arg7[%c0_40, %c0_41] : memref<1x256xf32, #tpu.memory_space<vmem>>, vector<1x256xf32>
    %359 = vector.broadcast %358 : vector<1x256xf32> to vector<64x256xf32>
    %360 = arith.addf %357, %359 : vector<64x256xf32>
    %c0_42 = arith.constant 0 : index
    %c0_43 = arith.constant 0 : index
    %361 = vector.load %arg6[%c0_42, %c0_43] : memref<64x256xbf16, #tpu.memory_space<vmem>>, vector<64x256xbf16>
    %cst_44 = arith.constant 0.000000e+00 : f32
    %362 = vector.broadcast %cst_44 : f32 to vector<8x32xf32>
    %cst_45 = arith.constant 0.000000e+00 : f32
    %363 = vector.broadcast %cst_45 : f32 to vector<8x32xf32>
    %cst_46 = arith.constant 0.000000e+00 : f32
    %364 = vector.broadcast %cst_46 : f32 to vector<8x64xf32>
    %365 = arith.truncf %364 : vector<8x64xf32> to vector<8x64xbf16>
    %cst_47 = arith.constant dense<0.000000e+00> : vector<8x256xf32>
    %366 = tpu.matmul %365, %361, %cst_47 {dimension_numbers = #tpu.dot_dimension_numbers<[1], [0], [0], [1], [0, 0, 1, 1], [], []>} : vector<8x64xbf16>, vector<64x256xbf16>, vector<8x256xf32> -> vector<8x256xf32>
    %367 = vector.extract_strided_slice %360 {offsets = [0, 0], sizes = [8, 128], strides = [1, 1]} : vector<64x256xf32> to vector<8x128xf32>
    %368 = vector.extract_strided_slice %360 {offsets = [56, 128], sizes = [8, 128], strides = [1, 1]} : vector<64x256xf32> to vector<8x128xf32>
    %369 = tpu.concatenate %367, %368 in 1 : vector<8x128xf32>, vector<8x128xf32> -> vector<8x256xf32>
    %370 = arith.addf %366, %369 : vector<8x256xf32>
    %371 = vector.extract_strided_slice %370 {offsets = [0, 0], sizes = [8, 128], strides = [1, 1]} : vector<8x256xf32> to vector<8x128xf32>
    %372 = vector.extract_strided_slice %371 {offsets = [0, 0], sizes = [8, 96], strides = [1, 1]} : vector<8x128xf32> to vector<8x96xf32>
    %373 = arith.negf %372 : vector<8x96xf32>
    %374 = math.exp %373 : vector<8x96xf32>
    %cst_48 = arith.constant 1.000000e+00 : f32
    %375 = vector.broadcast %cst_48 : f32 to vector<8x96xf32>
    %376 = arith.addf %375, %374 : vector<8x96xf32>
    %377 = arith.divf %375, %376 : vector<8x96xf32>
    %378 = vector.extract_strided_slice %371 {offsets = [0, 96], sizes = [8, 32], strides = [1, 1]} : vector<8x128xf32> to vector<8x32xf32>
    %379 = math.tanh %378 : vector<8x32xf32>
    %380 = vector.extract_strided_slice %377 {offsets = [0, 32], sizes = [8, 32], strides = [1, 1]} : vector<8x96xf32> to vector<8x32xf32>
    %381 = arith.mulf %380, %362 : vector<8x32xf32>
    %382 = vector.extract_strided_slice %377 {offsets = [0, 0], sizes = [8, 32], strides = [1, 1]} : vector<8x96xf32> to vector<8x32xf32>
    %383 = arith.mulf %382, %379 : vector<8x32xf32>
    %384 = arith.addf %381, %383 : vector<8x32xf32>
    %385 = vector.extract_strided_slice %377 {offsets = [0, 64], sizes = [8, 32], strides = [1, 1]} : vector<8x96xf32> to vector<8x32xf32>
    %386 = math.tanh %384 : vector<8x32xf32>
    %387 = arith.mulf %385, %386 : vector<8x32xf32>
    %388 = vector.extract_strided_slice %370 {offsets = [0, 128], sizes = [8, 128], strides = [1, 1]} : vector<8x256xf32> to vector<8x128xf32>
    %389 = vector.extract_strided_slice %388 {offsets = [0, 0], sizes = [8, 96], strides = [1, 1]} : vector<8x128xf32> to vector<8x96xf32>
    %390 = arith.negf %389 : vector<8x96xf32>
    %391 = math.exp %390 : vector<8x96xf32>
    %cst_49 = arith.constant 1.000000e+00 : f32
    %392 = vector.broadcast %cst_49 : f32 to vector<8x96xf32>
    %393 = arith.addf %392, %391 : vector<8x96xf32>
    %394 = arith.divf %392, %393 : vector<8x96xf32>
    %395 = vector.extract_strided_slice %388 {offsets = [0, 96], sizes = [8, 32], strides = [1, 1]} : vector<8x128xf32> to vector<8x32xf32>
    %396 = math.tanh %395 : vector<8x32xf32>
    %397 = vector.extract_strided_slice %394 {offsets = [0, 32], sizes = [8, 32], strides = [1, 1]} : vector<8x96xf32> to vector<8x32xf32>
    %398 = arith.mulf %397, %363 : vector<8x32xf32>
    %399 = vector.extract_strided_slice %394 {offsets = [0, 0], sizes = [8, 32], strides = [1, 1]} : vector<8x96xf32> to vector<8x32xf32>
    %400 = arith.mulf %399, %396 : vector<8x32xf32>
    %401 = arith.addf %398, %400 : vector<8x32xf32>
    %402 = vector.extract_strided_slice %394 {offsets = [0, 64], sizes = [8, 32], strides = [1, 1]} : vector<8x96xf32> to vector<8x32xf32>
    %403 = math.tanh %401 : vector<8x32xf32>
    %404 = arith.mulf %402, %403 : vector<8x32xf32>
    %405 = tpu.concatenate %387, %404 in 1 : vector<8x32xf32>, vector<8x32xf32> -> vector<8x64xf32>
    %406 = arith.truncf %405 : vector<8x64xf32> to vector<8x64xbf16>
    %cst_50 = arith.constant dense<0.000000e+00> : vector<8x256xf32>
    %407 = tpu.matmul %406, %361, %cst_50 {dimension_numbers = #tpu.dot_dimension_numbers<[1], [0], [0], [1], [0, 0, 1, 1], [], []>} : vector<8x64xbf16>, vector<64x256xbf16>, vector<8x256xf32> -> vector<8x256xf32>
    %408 = vector.extract_strided_slice %360 {offsets = [8, 0], sizes = [8, 128], strides = [1, 1]} : vector<64x256xf32> to vector<8x128xf32>
    %409 = vector.extract_strided_slice %360 {offsets = [48, 128], sizes = [8, 128], strides = [1, 1]} : vector<64x256xf32> to vector<8x128xf32>
    %410 = tpu.concatenate %408, %409 in 1 : vector<8x128xf32>, vector<8x128xf32> -> vector<8x256xf32>
    %411 = arith.addf %407, %410 : vector<8x256xf32>
    %412 = vector.extract_strided_slice %411 {offsets = [0, 0], sizes = [8, 128], strides = [1, 1]} : vector<8x256xf32> to vector<8x128xf32>
    %413 = vector.extract_strided_slice %412 {offsets = [0, 0], sizes = [8, 96], strides = [1, 1]} : vector<8x128xf32> to vector<8x96xf32>
    %414 = arith.negf %413 : vector<8x96xf32>
    %415 = math.exp %414 : vector<8x96xf32>
    %cst_51 = arith.constant 1.000000e+00 : f32
    %416 = vector.broadcast %cst_51 : f32 to vector<8x96xf32>
    %417 = arith.addf %416, %415 : vector<8x96xf32>
    %418 = arith.divf %416, %417 : vector<8x96xf32>
    %419 = vector.extract_strided_slice %412 {offsets = [0, 96], sizes = [8, 32], strides = [1, 1]} : vector<8x128xf32> to vector<8x32xf32>
    %420 = math.tanh %419 : vector<8x32xf32>
    %421 = vector.extract_strided_slice %418 {offsets = [0, 32], sizes = [8, 32], strides = [1, 1]} : vector<8x96xf32> to vector<8x32xf32>
    %422 = arith.mulf %421, %384 : vector<8x32xf32>
    %423 = vector.extract_strided_slice %418 {offsets = [0, 0], sizes = [8, 32], strides = [1, 1]} : vector<8x96xf32> to vector<8x32xf32>
    %424 = arith.mulf %423, %420 : vector<8x32xf32>
    %425 = arith.addf %422, %424 : vector<8x32xf32>
    %426 = vector.extract_strided_slice %418 {offsets = [0, 64], sizes = [8, 32], strides = [1, 1]} : vector<8x96xf32> to vector<8x32xf32>
    %427 = math.tanh %425 : vector<8x32xf32>
    %428 = arith.mulf %426, %427 : vector<8x32xf32>
    %429 = vector.extract_strided_slice %411 {offsets = [0, 128], sizes = [8, 128], strides = [1, 1]} : vector<8x256xf32> to vector<8x128xf32>
    %430 = vector.extract_strided_slice %429 {offsets = [0, 0], sizes = [8, 96], strides = [1, 1]} : vector<8x128xf32> to vector<8x96xf32>
    %431 = arith.negf %430 : vector<8x96xf32>
    %432 = math.exp %431 : vector<8x96xf32>
    %cst_52 = arith.constant 1.000000e+00 : f32
    %433 = vector.broadcast %cst_52 : f32 to vector<8x96xf32>
    %434 = arith.addf %433, %432 : vector<8x96xf32>
    %435 = arith.divf %433, %434 : vector<8x96xf32>
    %436 = vector.extract_strided_slice %429 {offsets = [0, 96], sizes = [8, 32], strides = [1, 1]} : vector<8x128xf32> to vector<8x32xf32>
    %437 = math.tanh %436 : vector<8x32xf32>
    %438 = vector.extract_strided_slice %435 {offsets = [0, 32], sizes = [8, 32], strides = [1, 1]} : vector<8x96xf32> to vector<8x32xf32>
    %439 = arith.mulf %438, %401 : vector<8x32xf32>
    %440 = vector.extract_strided_slice %435 {offsets = [0, 0], sizes = [8, 32], strides = [1, 1]} : vector<8x96xf32> to vector<8x32xf32>
    %441 = arith.mulf %440, %437 : vector<8x32xf32>
    %442 = arith.addf %439, %441 : vector<8x32xf32>
    %443 = vector.extract_strided_slice %435 {offsets = [0, 64], sizes = [8, 32], strides = [1, 1]} : vector<8x96xf32> to vector<8x32xf32>
    %444 = math.tanh %442 : vector<8x32xf32>
    %445 = arith.mulf %443, %444 : vector<8x32xf32>
    %446 = tpu.concatenate %428, %445 in 1 : vector<8x32xf32>, vector<8x32xf32> -> vector<8x64xf32>
    %447 = arith.truncf %446 : vector<8x64xf32> to vector<8x64xbf16>
    %cst_53 = arith.constant dense<0.000000e+00> : vector<8x256xf32>
    %448 = tpu.matmul %447, %361, %cst_53 {dimension_numbers = #tpu.dot_dimension_numbers<[1], [0], [0], [1], [0, 0, 1, 1], [], []>} : vector<8x64xbf16>, vector<64x256xbf16>, vector<8x256xf32> -> vector<8x256xf32>
    %449 = vector.extract_strided_slice %360 {offsets = [16, 0], sizes = [8, 128], strides = [1, 1]} : vector<64x256xf32> to vector<8x128xf32>
    %450 = vector.extract_strided_slice %360 {offsets = [40, 128], sizes = [8, 128], strides = [1, 1]} : vector<64x256xf32> to vector<8x128xf32>
    %451 = tpu.concatenate %449, %450 in 1 : vector<8x128xf32>, vector<8x128xf32> -> vector<8x256xf32>
    %452 = arith.addf %448, %451 : vector<8x256xf32>
    %453 = vector.extract_strided_slice %452 {offsets = [0, 0], sizes = [8, 128], strides = [1, 1]} : vector<8x256xf32> to vector<8x128xf32>
    %454 = vector.extract_strided_slice %453 {offsets = [0, 0], sizes = [8, 96], strides = [1, 1]} : vector<8x128xf32> to vector<8x96xf32>
    %455 = arith.negf %454 : vector<8x96xf32>
    %456 = math.exp %455 : vector<8x96xf32>
    %cst_54 = arith.constant 1.000000e+00 : f32
    %457 = vector.broadcast %cst_54 : f32 to vector<8x96xf32>
    %458 = arith.addf %457, %456 : vector<8x96xf32>
    %459 = arith.divf %457, %458 : vector<8x96xf32>
    %460 = vector.extract_strided_slice %453 {offsets = [0, 96], sizes = [8, 32], strides = [1, 1]} : vector<8x128xf32> to vector<8x32xf32>
    %461 = math.tanh %460 : vector<8x32xf32>
    %462 = vector.extract_strided_slice %459 {offsets = [0, 32], sizes = [8, 32], strides = [1, 1]} : vector<8x96xf32> to vector<8x32xf32>
    %463 = arith.mulf %462, %425 : vector<8x32xf32>
    %464 = vector.extract_strided_slice %459 {offsets = [0, 0], sizes = [8, 32], strides = [1, 1]} : vector<8x96xf32> to vector<8x32xf32>
    %465 = arith.mulf %464, %461 : vector<8x32xf32>
    %466 = arith.addf %463, %465 : vector<8x32xf32>
    %467 = vector.extract_strided_slice %459 {offsets = [0, 64], sizes = [8, 32], strides = [1, 1]} : vector<8x96xf32> to vector<8x32xf32>
    %468 = math.tanh %466 : vector<8x32xf32>
    %469 = arith.mulf %467, %468 : vector<8x32xf32>
    %470 = vector.extract_strided_slice %452 {offsets = [0, 128], sizes = [8, 128], strides = [1, 1]} : vector<8x256xf32> to vector<8x128xf32>
    %471 = vector.extract_strided_slice %470 {offsets = [0, 0], sizes = [8, 96], strides = [1, 1]} : vector<8x128xf32> to vector<8x96xf32>
    %472 = arith.negf %471 : vector<8x96xf32>
    %473 = math.exp %472 : vector<8x96xf32>
    %cst_55 = arith.constant 1.000000e+00 : f32
    %474 = vector.broadcast %cst_55 : f32 to vector<8x96xf32>
    %475 = arith.addf %474, %473 : vector<8x96xf32>
    %476 = arith.divf %474, %475 : vector<8x96xf32>
    %477 = vector.extract_strided_slice %470 {offsets = [0, 96], sizes = [8, 32], strides = [1, 1]} : vector<8x128xf32> to vector<8x32xf32>
    %478 = math.tanh %477 : vector<8x32xf32>
    %479 = vector.extract_strided_slice %476 {offsets = [0, 32], sizes = [8, 32], strides = [1, 1]} : vector<8x96xf32> to vector<8x32xf32>
    %480 = arith.mulf %479, %442 : vector<8x32xf32>
    %481 = vector.extract_strided_slice %476 {offsets = [0, 0], sizes = [8, 32], strides = [1, 1]} : vector<8x96xf32> to vector<8x32xf32>
    %482 = arith.mulf %481, %478 : vector<8x32xf32>
    %483 = arith.addf %480, %482 : vector<8x32xf32>
    %484 = vector.extract_strided_slice %476 {offsets = [0, 64], sizes = [8, 32], strides = [1, 1]} : vector<8x96xf32> to vector<8x32xf32>
    %485 = math.tanh %483 : vector<8x32xf32>
    %486 = arith.mulf %484, %485 : vector<8x32xf32>
    %487 = tpu.concatenate %469, %486 in 1 : vector<8x32xf32>, vector<8x32xf32> -> vector<8x64xf32>
    %488 = arith.truncf %487 : vector<8x64xf32> to vector<8x64xbf16>
    %cst_56 = arith.constant dense<0.000000e+00> : vector<8x256xf32>
    %489 = tpu.matmul %488, %361, %cst_56 {dimension_numbers = #tpu.dot_dimension_numbers<[1], [0], [0], [1], [0, 0, 1, 1], [], []>} : vector<8x64xbf16>, vector<64x256xbf16>, vector<8x256xf32> -> vector<8x256xf32>
    %490 = vector.extract_strided_slice %360 {offsets = [24, 0], sizes = [8, 128], strides = [1, 1]} : vector<64x256xf32> to vector<8x128xf32>
    %491 = vector.extract_strided_slice %360 {offsets = [32, 128], sizes = [8, 128], strides = [1, 1]} : vector<64x256xf32> to vector<8x128xf32>
    %492 = tpu.concatenate %490, %491 in 1 : vector<8x128xf32>, vector<8x128xf32> -> vector<8x256xf32>
    %493 = arith.addf %489, %492 : vector<8x256xf32>
    %494 = vector.extract_strided_slice %493 {offsets = [0, 0], sizes = [8, 128], strides = [1, 1]} : vector<8x256xf32> to vector<8x128xf32>
    %495 = vector.extract_strided_slice %494 {offsets = [0, 0], sizes = [8, 96], strides = [1, 1]} : vector<8x128xf32> to vector<8x96xf32>
    %496 = arith.negf %495 : vector<8x96xf32>
    %497 = math.exp %496 : vector<8x96xf32>
    %cst_57 = arith.constant 1.000000e+00 : f32
    %498 = vector.broadcast %cst_57 : f32 to vector<8x96xf32>
    %499 = arith.addf %498, %497 : vector<8x96xf32>
    %500 = arith.divf %498, %499 : vector<8x96xf32>
    %501 = vector.extract_strided_slice %494 {offsets = [0, 96], sizes = [8, 32], strides = [1, 1]} : vector<8x128xf32> to vector<8x32xf32>
    %502 = math.tanh %501 : vector<8x32xf32>
    %503 = vector.extract_strided_slice %500 {offsets = [0, 32], sizes = [8, 32], strides = [1, 1]} : vector<8x96xf32> to vector<8x32xf32>
    %504 = arith.mulf %503, %466 : vector<8x32xf32>
    %505 = vector.extract_strided_slice %500 {offsets = [0, 0], sizes = [8, 32], strides = [1, 1]} : vector<8x96xf32> to vector<8x32xf32>
    %506 = arith.mulf %505, %502 : vector<8x32xf32>
    %507 = arith.addf %504, %506 : vector<8x32xf32>
    %508 = vector.extract_strided_slice %500 {offsets = [0, 64], sizes = [8, 32], strides = [1, 1]} : vector<8x96xf32> to vector<8x32xf32>
    %509 = math.tanh %507 : vector<8x32xf32>
    %510 = arith.mulf %508, %509 : vector<8x32xf32>
    %511 = vector.extract_strided_slice %493 {offsets = [0, 128], sizes = [8, 128], strides = [1, 1]} : vector<8x256xf32> to vector<8x128xf32>
    %512 = vector.extract_strided_slice %511 {offsets = [0, 0], sizes = [8, 96], strides = [1, 1]} : vector<8x128xf32> to vector<8x96xf32>
    %513 = arith.negf %512 : vector<8x96xf32>
    %514 = math.exp %513 : vector<8x96xf32>
    %cst_58 = arith.constant 1.000000e+00 : f32
    %515 = vector.broadcast %cst_58 : f32 to vector<8x96xf32>
    %516 = arith.addf %515, %514 : vector<8x96xf32>
    %517 = arith.divf %515, %516 : vector<8x96xf32>
    %518 = vector.extract_strided_slice %511 {offsets = [0, 96], sizes = [8, 32], strides = [1, 1]} : vector<8x128xf32> to vector<8x32xf32>
    %519 = math.tanh %518 : vector<8x32xf32>
    %520 = vector.extract_strided_slice %517 {offsets = [0, 32], sizes = [8, 32], strides = [1, 1]} : vector<8x96xf32> to vector<8x32xf32>
    %521 = arith.mulf %520, %483 : vector<8x32xf32>
    %522 = vector.extract_strided_slice %517 {offsets = [0, 0], sizes = [8, 32], strides = [1, 1]} : vector<8x96xf32> to vector<8x32xf32>
    %523 = arith.mulf %522, %519 : vector<8x32xf32>
    %524 = arith.addf %521, %523 : vector<8x32xf32>
    %525 = vector.extract_strided_slice %517 {offsets = [0, 64], sizes = [8, 32], strides = [1, 1]} : vector<8x96xf32> to vector<8x32xf32>
    %526 = math.tanh %524 : vector<8x32xf32>
    %527 = arith.mulf %525, %526 : vector<8x32xf32>
    %528 = tpu.concatenate %510, %527 in 1 : vector<8x32xf32>, vector<8x32xf32> -> vector<8x64xf32>
    %529 = arith.truncf %528 : vector<8x64xf32> to vector<8x64xbf16>
    %cst_59 = arith.constant dense<0.000000e+00> : vector<8x256xf32>
    %530 = tpu.matmul %529, %361, %cst_59 {dimension_numbers = #tpu.dot_dimension_numbers<[1], [0], [0], [1], [0, 0, 1, 1], [], []>} : vector<8x64xbf16>, vector<64x256xbf16>, vector<8x256xf32> -> vector<8x256xf32>
    %531 = vector.extract_strided_slice %360 {offsets = [32, 0], sizes = [8, 128], strides = [1, 1]} : vector<64x256xf32> to vector<8x128xf32>
    %532 = vector.extract_strided_slice %360 {offsets = [24, 128], sizes = [8, 128], strides = [1, 1]} : vector<64x256xf32> to vector<8x128xf32>
    %533 = tpu.concatenate %531, %532 in 1 : vector<8x128xf32>, vector<8x128xf32> -> vector<8x256xf32>
    %534 = arith.addf %530, %533 : vector<8x256xf32>
    %535 = vector.extract_strided_slice %534 {offsets = [0, 0], sizes = [8, 128], strides = [1, 1]} : vector<8x256xf32> to vector<8x128xf32>
    %536 = vector.extract_strided_slice %535 {offsets = [0, 0], sizes = [8, 96], strides = [1, 1]} : vector<8x128xf32> to vector<8x96xf32>
    %537 = arith.negf %536 : vector<8x96xf32>
    %538 = math.exp %537 : vector<8x96xf32>
    %cst_60 = arith.constant 1.000000e+00 : f32
    %539 = vector.broadcast %cst_60 : f32 to vector<8x96xf32>
    %540 = arith.addf %539, %538 : vector<8x96xf32>
    %541 = arith.divf %539, %540 : vector<8x96xf32>
    %542 = vector.extract_strided_slice %535 {offsets = [0, 96], sizes = [8, 32], strides = [1, 1]} : vector<8x128xf32> to vector<8x32xf32>
    %543 = math.tanh %542 : vector<8x32xf32>
    %544 = vector.extract_strided_slice %541 {offsets = [0, 32], sizes = [8, 32], strides = [1, 1]} : vector<8x96xf32> to vector<8x32xf32>
    %545 = arith.mulf %544, %507 : vector<8x32xf32>
    %546 = vector.extract_strided_slice %541 {offsets = [0, 0], sizes = [8, 32], strides = [1, 1]} : vector<8x96xf32> to vector<8x32xf32>
    %547 = arith.mulf %546, %543 : vector<8x32xf32>
    %548 = arith.addf %545, %547 : vector<8x32xf32>
    %549 = vector.extract_strided_slice %541 {offsets = [0, 64], sizes = [8, 32], strides = [1, 1]} : vector<8x96xf32> to vector<8x32xf32>
    %550 = math.tanh %548 : vector<8x32xf32>
    %551 = arith.mulf %549, %550 : vector<8x32xf32>
    %552 = vector.extract_strided_slice %534 {offsets = [0, 128], sizes = [8, 128], strides = [1, 1]} : vector<8x256xf32> to vector<8x128xf32>
    %553 = vector.extract_strided_slice %552 {offsets = [0, 0], sizes = [8, 96], strides = [1, 1]} : vector<8x128xf32> to vector<8x96xf32>
    %554 = arith.negf %553 : vector<8x96xf32>
    %555 = math.exp %554 : vector<8x96xf32>
    %cst_61 = arith.constant 1.000000e+00 : f32
    %556 = vector.broadcast %cst_61 : f32 to vector<8x96xf32>
    %557 = arith.addf %556, %555 : vector<8x96xf32>
    %558 = arith.divf %556, %557 : vector<8x96xf32>
    %559 = vector.extract_strided_slice %552 {offsets = [0, 96], sizes = [8, 32], strides = [1, 1]} : vector<8x128xf32> to vector<8x32xf32>
    %560 = math.tanh %559 : vector<8x32xf32>
    %561 = vector.extract_strided_slice %558 {offsets = [0, 32], sizes = [8, 32], strides = [1, 1]} : vector<8x96xf32> to vector<8x32xf32>
    %562 = arith.mulf %561, %524 : vector<8x32xf32>
    %563 = vector.extract_strided_slice %558 {offsets = [0, 0], sizes = [8, 32], strides = [1, 1]} : vector<8x96xf32> to vector<8x32xf32>
    %564 = arith.mulf %563, %560 : vector<8x32xf32>
    %565 = arith.addf %562, %564 : vector<8x32xf32>
    %566 = vector.extract_strided_slice %558 {offsets = [0, 64], sizes = [8, 32], strides = [1, 1]} : vector<8x96xf32> to vector<8x32xf32>
    %567 = math.tanh %565 : vector<8x32xf32>
    %568 = arith.mulf %566, %567 : vector<8x32xf32>
    %569 = tpu.concatenate %551, %568 in 1 : vector<8x32xf32>, vector<8x32xf32> -> vector<8x64xf32>
    %570 = arith.truncf %569 : vector<8x64xf32> to vector<8x64xbf16>
    %cst_62 = arith.constant dense<0.000000e+00> : vector<8x256xf32>
    %571 = tpu.matmul %570, %361, %cst_62 {dimension_numbers = #tpu.dot_dimension_numbers<[1], [0], [0], [1], [0, 0, 1, 1], [], []>} : vector<8x64xbf16>, vector<64x256xbf16>, vector<8x256xf32> -> vector<8x256xf32>
    %572 = vector.extract_strided_slice %360 {offsets = [40, 0], sizes = [8, 128], strides = [1, 1]} : vector<64x256xf32> to vector<8x128xf32>
    %573 = vector.extract_strided_slice %360 {offsets = [16, 128], sizes = [8, 128], strides = [1, 1]} : vector<64x256xf32> to vector<8x128xf32>
    %574 = tpu.concatenate %572, %573 in 1 : vector<8x128xf32>, vector<8x128xf32> -> vector<8x256xf32>
    %575 = arith.addf %571, %574 : vector<8x256xf32>
    %576 = vector.extract_strided_slice %575 {offsets = [0, 0], sizes = [8, 128], strides = [1, 1]} : vector<8x256xf32> to vector<8x128xf32>
    %577 = vector.extract_strided_slice %576 {offsets = [0, 0], sizes = [8, 96], strides = [1, 1]} : vector<8x128xf32> to vector<8x96xf32>
    %578 = arith.negf %577 : vector<8x96xf32>
    %579 = math.exp %578 : vector<8x96xf32>
    %cst_63 = arith.constant 1.000000e+00 : f32
    %580 = vector.broadcast %cst_63 : f32 to vector<8x96xf32>
    %581 = arith.addf %580, %579 : vector<8x96xf32>
    %582 = arith.divf %580, %581 : vector<8x96xf32>
    %583 = vector.extract_strided_slice %576 {offsets = [0, 96], sizes = [8, 32], strides = [1, 1]} : vector<8x128xf32> to vector<8x32xf32>
    %584 = math.tanh %583 : vector<8x32xf32>
    %585 = vector.extract_strided_slice %582 {offsets = [0, 32], sizes = [8, 32], strides = [1, 1]} : vector<8x96xf32> to vector<8x32xf32>
    %586 = arith.mulf %585, %548 : vector<8x32xf32>
    %587 = vector.extract_strided_slice %582 {offsets = [0, 0], sizes = [8, 32], strides = [1, 1]} : vector<8x96xf32> to vector<8x32xf32>
    %588 = arith.mulf %587, %584 : vector<8x32xf32>
    %589 = arith.addf %586, %588 : vector<8x32xf32>
    %590 = vector.extract_strided_slice %582 {offsets = [0, 64], sizes = [8, 32], strides = [1, 1]} : vector<8x96xf32> to vector<8x32xf32>
    %591 = math.tanh %589 : vector<8x32xf32>
    %592 = arith.mulf %590, %591 : vector<8x32xf32>
    %593 = vector.extract_strided_slice %575 {offsets = [0, 128], sizes = [8, 128], strides = [1, 1]} : vector<8x256xf32> to vector<8x128xf32>
    %594 = vector.extract_strided_slice %593 {offsets = [0, 0], sizes = [8, 96], strides = [1, 1]} : vector<8x128xf32> to vector<8x96xf32>
    %595 = arith.negf %594 : vector<8x96xf32>
    %596 = math.exp %595 : vector<8x96xf32>
    %cst_64 = arith.constant 1.000000e+00 : f32
    %597 = vector.broadcast %cst_64 : f32 to vector<8x96xf32>
    %598 = arith.addf %597, %596 : vector<8x96xf32>
    %599 = arith.divf %597, %598 : vector<8x96xf32>
    %600 = vector.extract_strided_slice %593 {offsets = [0, 96], sizes = [8, 32], strides = [1, 1]} : vector<8x128xf32> to vector<8x32xf32>
    %601 = math.tanh %600 : vector<8x32xf32>
    %602 = vector.extract_strided_slice %599 {offsets = [0, 32], sizes = [8, 32], strides = [1, 1]} : vector<8x96xf32> to vector<8x32xf32>
    %603 = arith.mulf %602, %565 : vector<8x32xf32>
    %604 = vector.extract_strided_slice %599 {offsets = [0, 0], sizes = [8, 32], strides = [1, 1]} : vector<8x96xf32> to vector<8x32xf32>
    %605 = arith.mulf %604, %601 : vector<8x32xf32>
    %606 = arith.addf %603, %605 : vector<8x32xf32>
    %607 = vector.extract_strided_slice %599 {offsets = [0, 64], sizes = [8, 32], strides = [1, 1]} : vector<8x96xf32> to vector<8x32xf32>
    %608 = math.tanh %606 : vector<8x32xf32>
    %609 = arith.mulf %607, %608 : vector<8x32xf32>
    %610 = tpu.concatenate %592, %609 in 1 : vector<8x32xf32>, vector<8x32xf32> -> vector<8x64xf32>
    %611 = arith.truncf %610 : vector<8x64xf32> to vector<8x64xbf16>
    %cst_65 = arith.constant dense<0.000000e+00> : vector<8x256xf32>
    %612 = tpu.matmul %611, %361, %cst_65 {dimension_numbers = #tpu.dot_dimension_numbers<[1], [0], [0], [1], [0, 0, 1, 1], [], []>} : vector<8x64xbf16>, vector<64x256xbf16>, vector<8x256xf32> -> vector<8x256xf32>
    %613 = vector.extract_strided_slice %360 {offsets = [48, 0], sizes = [8, 128], strides = [1, 1]} : vector<64x256xf32> to vector<8x128xf32>
    %614 = vector.extract_strided_slice %360 {offsets = [8, 128], sizes = [8, 128], strides = [1, 1]} : vector<64x256xf32> to vector<8x128xf32>
    %615 = tpu.concatenate %613, %614 in 1 : vector<8x128xf32>, vector<8x128xf32> -> vector<8x256xf32>
    %616 = arith.addf %612, %615 : vector<8x256xf32>
    %617 = vector.extract_strided_slice %616 {offsets = [0, 0], sizes = [8, 128], strides = [1, 1]} : vector<8x256xf32> to vector<8x128xf32>
    %618 = vector.extract_strided_slice %617 {offsets = [0, 0], sizes = [8, 96], strides = [1, 1]} : vector<8x128xf32> to vector<8x96xf32>
    %619 = arith.negf %618 : vector<8x96xf32>
    %620 = math.exp %619 : vector<8x96xf32>
    %cst_66 = arith.constant 1.000000e+00 : f32
    %621 = vector.broadcast %cst_66 : f32 to vector<8x96xf32>
    %622 = arith.addf %621, %620 : vector<8x96xf32>
    %623 = arith.divf %621, %622 : vector<8x96xf32>
    %624 = vector.extract_strided_slice %617 {offsets = [0, 96], sizes = [8, 32], strides = [1, 1]} : vector<8x128xf32> to vector<8x32xf32>
    %625 = math.tanh %624 : vector<8x32xf32>
    %626 = vector.extract_strided_slice %623 {offsets = [0, 32], sizes = [8, 32], strides = [1, 1]} : vector<8x96xf32> to vector<8x32xf32>
    %627 = arith.mulf %626, %589 : vector<8x32xf32>
    %628 = vector.extract_strided_slice %623 {offsets = [0, 0], sizes = [8, 32], strides = [1, 1]} : vector<8x96xf32> to vector<8x32xf32>
    %629 = arith.mulf %628, %625 : vector<8x32xf32>
    %630 = arith.addf %627, %629 : vector<8x32xf32>
    %631 = vector.extract_strided_slice %623 {offsets = [0, 64], sizes = [8, 32], strides = [1, 1]} : vector<8x96xf32> to vector<8x32xf32>
    %632 = math.tanh %630 : vector<8x32xf32>
    %633 = arith.mulf %631, %632 : vector<8x32xf32>
    %634 = vector.extract_strided_slice %616 {offsets = [0, 128], sizes = [8, 128], strides = [1, 1]} : vector<8x256xf32> to vector<8x128xf32>
    %635 = vector.extract_strided_slice %634 {offsets = [0, 0], sizes = [8, 96], strides = [1, 1]} : vector<8x128xf32> to vector<8x96xf32>
    %636 = arith.negf %635 : vector<8x96xf32>
    %637 = math.exp %636 : vector<8x96xf32>
    %cst_67 = arith.constant 1.000000e+00 : f32
    %638 = vector.broadcast %cst_67 : f32 to vector<8x96xf32>
    %639 = arith.addf %638, %637 : vector<8x96xf32>
    %640 = arith.divf %638, %639 : vector<8x96xf32>
    %641 = vector.extract_strided_slice %634 {offsets = [0, 96], sizes = [8, 32], strides = [1, 1]} : vector<8x128xf32> to vector<8x32xf32>
    %642 = math.tanh %641 : vector<8x32xf32>
    %643 = vector.extract_strided_slice %640 {offsets = [0, 32], sizes = [8, 32], strides = [1, 1]} : vector<8x96xf32> to vector<8x32xf32>
    %644 = arith.mulf %643, %606 : vector<8x32xf32>
    %645 = vector.extract_strided_slice %640 {offsets = [0, 0], sizes = [8, 32], strides = [1, 1]} : vector<8x96xf32> to vector<8x32xf32>
    %646 = arith.mulf %645, %642 : vector<8x32xf32>
    %647 = arith.addf %644, %646 : vector<8x32xf32>
    %648 = vector.extract_strided_slice %640 {offsets = [0, 64], sizes = [8, 32], strides = [1, 1]} : vector<8x96xf32> to vector<8x32xf32>
    %649 = math.tanh %647 : vector<8x32xf32>
    %650 = arith.mulf %648, %649 : vector<8x32xf32>
    %651 = tpu.concatenate %633, %650 in 1 : vector<8x32xf32>, vector<8x32xf32> -> vector<8x64xf32>
    %652 = arith.truncf %651 : vector<8x64xf32> to vector<8x64xbf16>
    %cst_68 = arith.constant dense<0.000000e+00> : vector<8x256xf32>
    %653 = tpu.matmul %652, %361, %cst_68 {dimension_numbers = #tpu.dot_dimension_numbers<[1], [0], [0], [1], [0, 0, 1, 1], [], []>} : vector<8x64xbf16>, vector<64x256xbf16>, vector<8x256xf32> -> vector<8x256xf32>
    %654 = vector.extract_strided_slice %360 {offsets = [56, 0], sizes = [8, 128], strides = [1, 1]} : vector<64x256xf32> to vector<8x128xf32>
    %655 = vector.extract_strided_slice %360 {offsets = [0, 128], sizes = [8, 128], strides = [1, 1]} : vector<64x256xf32> to vector<8x128xf32>
    %656 = tpu.concatenate %654, %655 in 1 : vector<8x128xf32>, vector<8x128xf32> -> vector<8x256xf32>
    %657 = arith.addf %653, %656 : vector<8x256xf32>
    %658 = vector.extract_strided_slice %657 {offsets = [0, 0], sizes = [8, 128], strides = [1, 1]} : vector<8x256xf32> to vector<8x128xf32>
    %659 = vector.extract_strided_slice %658 {offsets = [0, 0], sizes = [8, 96], strides = [1, 1]} : vector<8x128xf32> to vector<8x96xf32>
    %660 = arith.negf %659 : vector<8x96xf32>
    %661 = math.exp %660 : vector<8x96xf32>
    %cst_69 = arith.constant 1.000000e+00 : f32
    %662 = vector.broadcast %cst_69 : f32 to vector<8x96xf32>
    %663 = arith.addf %662, %661 : vector<8x96xf32>
    %664 = arith.divf %662, %663 : vector<8x96xf32>
    %665 = vector.extract_strided_slice %658 {offsets = [0, 96], sizes = [8, 32], strides = [1, 1]} : vector<8x128xf32> to vector<8x32xf32>
    %666 = math.tanh %665 : vector<8x32xf32>
    %667 = vector.extract_strided_slice %664 {offsets = [0, 32], sizes = [8, 32], strides = [1, 1]} : vector<8x96xf32> to vector<8x32xf32>
    %668 = arith.mulf %667, %630 : vector<8x32xf32>
    %669 = vector.extract_strided_slice %664 {offsets = [0, 0], sizes = [8, 32], strides = [1, 1]} : vector<8x96xf32> to vector<8x32xf32>
    %670 = arith.mulf %669, %666 : vector<8x32xf32>
    %671 = arith.addf %668, %670 : vector<8x32xf32>
    %672 = vector.extract_strided_slice %664 {offsets = [0, 64], sizes = [8, 32], strides = [1, 1]} : vector<8x96xf32> to vector<8x32xf32>
    %673 = math.tanh %671 : vector<8x32xf32>
    %674 = arith.mulf %672, %673 : vector<8x32xf32>
    %675 = vector.extract_strided_slice %657 {offsets = [0, 128], sizes = [8, 128], strides = [1, 1]} : vector<8x256xf32> to vector<8x128xf32>
    %676 = vector.extract_strided_slice %675 {offsets = [0, 0], sizes = [8, 96], strides = [1, 1]} : vector<8x128xf32> to vector<8x96xf32>
    %677 = arith.negf %676 : vector<8x96xf32>
    %678 = math.exp %677 : vector<8x96xf32>
    %cst_70 = arith.constant 1.000000e+00 : f32
    %679 = vector.broadcast %cst_70 : f32 to vector<8x96xf32>
    %680 = arith.addf %679, %678 : vector<8x96xf32>
    %681 = arith.divf %679, %680 : vector<8x96xf32>
    %682 = vector.extract_strided_slice %675 {offsets = [0, 96], sizes = [8, 32], strides = [1, 1]} : vector<8x128xf32> to vector<8x32xf32>
    %683 = math.tanh %682 : vector<8x32xf32>
    %684 = vector.extract_strided_slice %681 {offsets = [0, 32], sizes = [8, 32], strides = [1, 1]} : vector<8x96xf32> to vector<8x32xf32>
    %685 = arith.mulf %684, %647 : vector<8x32xf32>
    %686 = vector.extract_strided_slice %681 {offsets = [0, 0], sizes = [8, 32], strides = [1, 1]} : vector<8x96xf32> to vector<8x32xf32>
    %687 = arith.mulf %686, %683 : vector<8x32xf32>
    %688 = arith.addf %685, %687 : vector<8x32xf32>
    %689 = vector.extract_strided_slice %681 {offsets = [0, 64], sizes = [8, 32], strides = [1, 1]} : vector<8x96xf32> to vector<8x32xf32>
    %690 = math.tanh %688 : vector<8x32xf32>
    %691 = arith.mulf %689, %690 : vector<8x32xf32>
    %692 = tpu.concatenate %387, %691, %674, %404 in 1 : vector<8x32xf32>, vector<8x32xf32>, vector<8x32xf32>, vector<8x32xf32> -> vector<8x128xf32>
    %c0_71 = arith.constant 0 : index
    %c0_72 = arith.constant 0 : index
    %693 = vector.load %arg8[%c0_71, %c0_72] : memref<128x5xf32, #tpu.memory_space<vmem>>, vector<128x5xf32>
    %cst_73 = arith.constant dense<0.000000e+00> : vector<8x5xf32>
    %694 = tpu.matmul %692, %693, %cst_73 {dimension_numbers = #tpu.dot_dimension_numbers<[1], [0], [0], [1], [0, 0, 1, 1], [], []>} : vector<8x128xf32>, vector<128x5xf32>, vector<8x5xf32> -> vector<8x5xf32>
    %c0_74 = arith.constant 0 : index
    %c0_75 = arith.constant 0 : index
    %695 = vector.load %arg9[%c0_74, %c0_75] : memref<1x5xf32, #tpu.memory_space<vmem>>, vector<1x5xf32>
    %696 = vector.broadcast %695 : vector<1x5xf32> to vector<8x5xf32>
    %697 = arith.addf %694, %696 : vector<8x5xf32>
    %698 = vector.extract_strided_slice %697 {offsets = [0, 0], sizes = [2, 5], strides = [1, 1]} : vector<8x5xf32> to vector<2x5xf32>
    %c0_76 = arith.constant 0 : index
    %c0_77 = arith.constant 0 : index
    %699 = vector.load %arg10[%c0_76, %c0_77] : memref<2x5xf32, #tpu.memory_space<vmem>>, vector<2x5xf32>
    tpu.vector_store %arg10[%c0_76, %c0_77], %698 {strides = array<i32>} : memref<2x5xf32, #tpu.memory_space<vmem>>, vector<2x5xf32>,
    return
  }
}

</mosaic_0001>

<bundles_post_ra>
// kernel: birnn_forward.1
= control target key start
LH: loop header
LB: loop body
LE: loop exit
PB: predicated region body
PF: predicated region fallthrough
CT: control target
= control target key end

     0   :  { %vm140_vm0 = vcmask 1041408   ;;  %vm141_vm1 = vcmask 1042432   ;;  %v2838_v2 = vmov 0   ;;  %v2839_v5 = vmov 65535   ;;  %s3648_s0 = inlined_call_operand.vmem [shape: s32[64,1], index: 0, kind: input, shape index: {}]   ;;  %s3649_s1 = inlined_call_operand.vmem [shape: bf16[53,32], index: 1, kind: input, shape index: {}]   ;;  %s3650_s2 = inlined_call_operand.vmem [shape: bf16[32,256], index: 2, kind: input, shape index: {}]   ;;  %s3651_s3 = inlined_call_operand.vmem [shape: bf16[64,256], index: 3, kind: input, shape index: {}]   ;;  %s3652_s4 = inlined_call_operand.vmem [shape: f32[1,256], index: 4, kind: input, shape index: {}]   ;;  %s3653_s5 = inlined_call_operand.vmem [shape: bf16[64,256], index: 5, kind: input, shape index: {}]   ;;  %s3654_s6 = inlined_call_operand.vmem [shape: bf16[64,256], index: 6, kind: input, shape index: {}]   ;;  %s3655_s7 = inlined_call_operand.vmem [shape: f32[1,256], index: 7, kind: input, shape index: {}]   ;;  %s3656_s8 = inlined_call_operand.vmem [shape: f32[128,5], index: 8, kind: input, shape index: {}]   ;;  %s3657_s9 = inlined_call_operand.vmem [shape: f32[1,5], index: 9, kind: input, shape index: {}]   ;;  %s3658_s10 = inlined_call_operand.hbm [shape: f32[2,5], index: 10, kind: output, shape index: {}]  }
   0x1   :  { %v39_v0 = vld [vmem:[%s3648_s0 + $0x10] sm:$0xff]  ;;  %v37_v1 = vld [vmem:[%s3648_s0] sm:$0xff]  ;;  %2513 = vset.pattern.permute.xlu1 %v2838_v2  ;;  %2512 = vset.pattern.permute.xlu0 %v2838_v2  ;;  %v40_v3 = vld [vmem:[%s3648_s0 + $0x18] sm:$0xff]  ;;  %v142_v6 = vsel %vm140_vm0, 4294967295, %v2839_v5 }
   0x2   :  { %54 = vperm.xlu1 %2513, %v39_v0   ;;  %48 = vperm.xlu0 %2512, %v37_v1   ;;  %v38_v4 = vld [vmem:[%s3648_s0 + $0x8] sm:$0xff]  ;;  %v2514_v7 = vld [vmem:[%s3649_s1 + $0x18] ss:$0 sps:$4 sm:$0x77]   ;;  %v143_v8 = vsel %vm141_vm1, %v142_v6, 0  ;;  %v2515_v11 = vld [vmem:[%s3649_s1 + $0x10] sm:$0xff]  }
   0x3   :  { %297 = vmatprep.mubr.bf16.mxu1 %v2838_v2  ;;  %v42_v9 = vld [vmem:[%s3648_s0 + $0x28] sm:$0xff]  ;;  %v145_v10 = vand.u32 %v2514_v7, %v143_v8  ;;  %v41_v12 = vld [vmem:[%s3648_s0 + $0x20] sm:$0xff]  ;;  %v44_v14 = vld [vmem:[%s3648_s0 + $0x38] sm:$0xff] }
   0x4   :  { %v2516_v13 = vld [vmem:[%s3649_s1 + $0x8] sm:$0xff]   ;;  %v43_v15 = vld [vmem:[%s3648_s0 + $0x30] sm:$0xff]  ;;  %v2517_v16 = vld [vmem:[%s3649_s1] sm:$0xff]  }
   0x5   :  { %2453 = vmatprep.subr.bf16.mxu0 %v145_v10 }
   0x6   :  { %57 = vperm.xlu1 %2513, %v40_v3   ;;  %51 = vperm.xlu0 %2512, %v38_v4  }
   0x7   :  { %2454 = vmatpush3.bf16.msra.mxu0 %v145_v10 }
   0x8   :  { %2455 = vmatprep.subr.bf16.mxu0 %v2515_v11 }
   0xa   :  { %63 = vperm.xlu1 %2513, %v42_v9   ;;  %60 = vperm.xlu0 %2512, %v41_v12  }
   0xb   :  { %2456 = vmatpush3.bf16.msra.mxu0 %v2515_v11 }
   0xc   :  { %2457 = vmatprep.subr.bf16.mxu0 %v2516_v13 }
   0xe   :  { %69 = vperm.xlu1 %2513, %v44_v14   ;;  %66 = vperm.xlu0 %2512, %v43_v15  }
   0xf   :  { %2458 = vmatpush3.bf16.msra.mxu0 %v2516_v13 }
  0x10   :  { %15 = vsyncpa [#allocation3], 0  ;;  %2459 = vmatprep.subr.bf16.mxu0 %v2517_v16  ;;  %v45_v17 = vlaneseq  ;;  %vm127_vm6 = vcmask 433152   ;;  %v2840_v23 = vmov 0.0   ;;  %v2518_v40 = vld [vmem:[%s3650_s2 + $0x14] ss:$8 sps:$4 sm:$0xff]  }
  0x11   :  { %v2520_v41 = vld [vmem:[%s3650_s2 + $0x10] ss:$8 sps:$4 sm:$0xff]   ;;  %277 = vmatprep.subr.bf16.mxu1 %v2518_v40  ;;  %v2521_v42 = vld [vmem:[%s3650_s2 + $0x4] ss:$8 sps:$4 sm:$0xff]   ;;  %v2523_v43 = vld [vmem:[%s3650_s2] ss:$8 sps:$4 sm:$0xff]  }
  0x12   :  { %v46_v18 = vand.u32 127, %v45_v17  ;;  %278 = vmatpush1.bf16.msra.mxu1 %v2520_v41  ;;  %v2969_v44 = vld [vmem:[%s3651_s3 + $0x34] ss:$8 sps:$4 sm:$0xff]   ;;  %v2974_v45 = vld [vmem:[%s3651_s3 + $0x30] ss:$8 sps:$4 sm:$0xff]   ;;  %vm252_vm11 = vcmask 261120  }
  0x13   :  { %2460 = vmatpush3.bf16.msra.mxu0 %v2517_v16  ;;  %279 = vmatprep.subr.bf16.mxu1 %v2521_v42  ;;  %v2982_v46 = vld [vmem:[%s3651_s3 + $0x24] ss:$8 sps:$4 sm:$0xff]   ;;  %v2987_v47 = vld [vmem:[%s3651_s3 + $0x20] ss:$8 sps:$4 sm:$0xff]   ;;  %v2993_v48 = vld [vmem:[%s3651_s3 + $0x14] ss:$8 sps:$4 sm:$0xff]  }
  0x14   :  { %602 = vmatprep.subr.bf16.mxu0 %v2969_v44  ;;  %v3000_v49 = vld [vmem:[%s3651_s3 + $0x10] ss:$8 sps:$4 sm:$0xff]   ;;  %v3005_v50 = vld [vmem:[%s3651_s3 + $0x4] ss:$8 sps:$4 sm:$0xff]   ;;  %v3012_v51 = vld [vmem:[%s3651_s3] ss:$8 sps:$4 sm:$0xff]  }
  0x15   :  { %v3043_v0 = vshrl.u32 %v45_v17, 7  ;;  %v220_v3 = vld [vmem:[%s3652_s4] sm:$0x3]  ;;  %s2841_s4 = smov 32   ;;  %s2842_s17 = smov 64   ;;  %vm386_vm12 = vcmask 523264  }
  0x16   :  { %280 = vmatpush1.bf16.msra.mxu1 %v2523_v43  ;;  %s2843_s18 = smov 96   ;;  %vm2844_vm13 = vmmov 0   ;;  %vm2218_vm14 = vcmask 785408   ;;  %s2845_s12 = smov [#allocation2]   ;;  %vm2313_vm15 = vcmask 33792  }
  0x17   :  { %398 = vmatprep.subr.bf16.mxu1 %v2969_v44  ;;  %v228_v1 = vsub.s32 1, %v3043_v0  ;;  %v224_v4 = vsub.s32 0, %v3043_v0  ;;  %s2321_s13 = sshll.u32 %s2845_s12, 4  ;;  %s2322_s13 = int_to_ptr.vmem [resolvable:$true] %s2321_s13 }
  0x18   :  { %p2821_p1 = scmp.lt.s32.totalorder %s2322_s13, %s2322_s13 }
  0x19   :  { %v229_v5 = vrot.slane %v220_v3, %v228_v1  ;;  %v225_v8 = vrot.slane %v220_v3, %v224_v4 }
  0x7d   :  { %v55_v19 = vpop.permute.xlu1 %54  ;;  %v49_v20 = vpop.permute.xlu0 %48 }
  0x7e   :  { %vm73_vm2 = vcmp.eq.s32.totalorder %v55_v19, %v46_v18  ;;  %vm71_vm3 = vcmp.eq.s32.totalorder %v49_v20, %v46_v18 }
  0x7f   :  { %v2331_v24 = vsel %vm73_vm2, 1.0, %v2840_v23  ;;  %v2329_v26 = vsel %vm71_vm3, 1.0, %v2840_v23 }
  0x81   :  { %v58_v21 = vpop.permute.xlu1 %57  ;;  %v52_v22 = vpop.permute.xlu0 %51 }
  0x82   :  { %vm74_vm4 = vcmp.eq.s32.totalorder %v58_v21, %v46_v18  ;;  %vm72_vm5 = vcmp.eq.s32.totalorder %v52_v22, %v46_v18 }
  0x83   :  { %v2332_v25 = vsel %vm74_vm4, 1.0, %v2840_v23  ;;  %v2330_v27 = vsel %vm72_vm5, 1.0, %v2840_v23 }
  0x84   :  { %v96_v28 = vpack.c.bf16 %v2332_v25, %v2331_v24  ;;  %v95_v29 = vpack.c.bf16 %v2330_v27, %v2329_v26 }
  0x85   :  { %v64_v30 = vpop.permute.xlu1 %63  ;;  %v61_v31 = vpop.permute.xlu0 %60 }
  0x86   :  { %vm76_vm7 = vcmp.eq.s32.totalorder %v64_v30, %v46_v18  ;;  %vm75_vm8 = vcmp.eq.s32.totalorder %v61_v31, %v46_v18  ;;  %2461 = vmatprep.mubr.msk.bf16.mxu0 %vm127_vm6, %v95_v29 }
  0x87   :  { %v2334_v32 = vsel %vm76_vm7, 1.0, %v2840_v23  ;;  %v2333_v33 = vsel %vm75_vm8, 1.0, %v2840_v23  ;;  %2462 = vmatmul.mubr.msk.bf16.vlgmr.msra.gmra.mxu0 %vm127_vm6, %v96_v28 }
  0x88   :  { %v97_v34 = vpack.c.bf16 %v2334_v32, %v2333_v33  ;;  %603 = vmatpush1.bf16.msra.mxu0 %v2974_v45 }
  0x89   :  { %v70_v35 = vpop.permute.xlu1 %69  ;;  %v67_v36 = vpop.permute.xlu0 %66  ;;  %604 = vmatprep.subr.bf16.mxu0 %v2982_v46 }
  0x8a   :  { %vm78_vm9 = vcmp.eq.s32.totalorder %v70_v35, %v46_v18  ;;  %vm77_vm10 = vcmp.eq.s32.totalorder %v67_v36, %v46_v18  ;;  %2465 = vmatprep.mubr.msk.bf16.mxu0 %vm127_vm6, %v97_v34 }
  0x8b   :  { %v2336_v37 = vsel %vm78_vm9, 1.0, %v2840_v23  ;;  %v2335_v38 = vsel %vm77_vm10, 1.0, %v2840_v23 }
  0x8c   :  { %v98_v39 = vpack.c.bf16 %v2336_v37, %v2335_v38  ;;  %605 = vmatpush1.bf16.msra.mxu0 %v2987_v47 }
  0x8d   :  { %606 = vmatprep.subr.bf16.mxu0 %v2993_v48 }
  0x8f   :  { %2466 = vmatmul.mubr.msk.bf16.gmra.mxu0 %vm127_vm6, %v98_v39 }
  0x90   :  { %626 = vmatprep.mubr.bf16.mxu0 %v2838_v2  ;;  %607 = vmatpush1.bf16.msra.mxu0 %v3000_v49 }
  0x91   :  { %608 = vmatprep.subr.bf16.mxu0 %v3005_v50 }
  0x94   :  { %609 = vmatpush1.bf16.msra.mxu0 %v3012_v51 }
  0x95   :  { %806 = vmatprep.subr.bf16.mxu0 %v2969_v44 }
 0x147   :  { %v2463_v52 = vpop.f32.mrf.mxu0 }
 0x149   :  { %v181_v53 = vpop.f32.mrf.mxu0 }
 0x14b   :  { %v2464_v54 = vpop.f32.mrf.mxu0 }
 0x14c   :  { %v213_v59 = vpack.c.bf16 %v2464_v54, %v2463_v52 }
 0x14d   :  { %v184_v55 = vpop.f32.mrf.mxu0 }
 0x14e   :  { %v212_v56 = vpack.c.bf16 %v184_v55, %v181_v53 }
 0x14f   :  { %v2467_v57 = vpop.f32.mrf.mxu0 }
 0x150   :  { %2349 = vmatmul.mubr.msk.bf16.vlgmr.msra.gmra.mxu1 %vm252_vm11, %v212_v56 }
 0x151   :  { %399 = vmatpush1.bf16.msra.mxu1 %v2974_v45  ;;  %307 = vmatprep.mubr.bf16.mxu1 %v2838_v2  ;;  %v197_v58 = vpop.f32.mrf.mxu0 }
 0x152   :  { %400 = vmatprep.subr.bf16.mxu1 %v2982_v46 }
 0x153   :  { %v2468_v60 = vpop.f32.mrf.mxu0 }
 0x154   :  { %v215_v63 = vpack.c.bf16 %v2468_v60, %v2467_v57 }
 0x155   :  { %401 = vmatpush1.bf16.msra.mxu1 %v2987_v47  ;;  %v200_v61 = vpop.f32.mrf.mxu0 }
 0x156   :  { %402 = vmatprep.subr.bf16.mxu1 %v2993_v48  ;;  %v214_v62 = vpack.c.bf16 %v200_v61, %v197_v58 }
 0x158   :  { %2350 = vmatmul.mubr.msk.bf16.gmra.mxu1 %vm252_vm11, %v213_v59 }
 0x159   :  { %317 = vmatprep.mubr.bf16.mxu1 %v2838_v2  ;;  %403 = vmatpush1.bf16.msra.mxu1 %v3000_v49 }
 0x15a   :  { %404 = vmatprep.subr.bf16.mxu1 %v3005_v50 }
 0x15d   :  { %405 = vmatpush1.bf16.msra.mxu1 %v3012_v51 }
 0x15e   :  { %500 = vmatprep.subr.bf16.mxu1 %v2969_v44 }
 0x160   :  { %2351 = vmatmul.mubr.msk.bf16.gmra.mxu1 %vm252_vm11, %v214_v62 }
 0x161   :  { %327 = vmatprep.mubr.bf16.mxu1 %v2838_v2 }
 0x168   :  { %2352 = vmatmul.mubr.msk.bf16.gmra.mxu1 %vm252_vm11, %v215_v63 }
 0x169   :  { %422 = vmatprep.mubr.bf16.mxu1 %v2838_v2 }
 0x170   :  { %423 = vmatmul.mubr.bf16.vlgmr.msra.gmra.mxu1 %v2838_v2 }
 0x171   :  { %501 = vmatpush1.bf16.msra.mxu1 %v2974_v45  ;;  %524 = vmatprep.mubr.bf16.mxu1 %v2838_v2 }
 0x172   :  { %502 = vmatprep.subr.bf16.mxu1 %v2982_v46 }
 0x175   :  { %503 = vmatpush1.bf16.msra.mxu1 %v2987_v47 }
 0x176   :  { %504 = vmatprep.subr.bf16.mxu1 %v2993_v48 }
 0x179   :  { %505 = vmatpush1.bf16.msra.mxu1 %v3000_v49 }
 0x17a   :  { %506 = vmatprep.subr.bf16.mxu1 %v3005_v50 }
 0x17d   :  { %507 = vmatpush1.bf16.msra.mxu1 %v3012_v51 }
 0x17e   :  { %704 = vmatprep.subr.bf16.mxu1 %v2969_v44 }
 0x210   :  { %v299_v6 = vpop.f32.mrf.mxu1 }
 0x211   :  { %v300_v38 = vadd.f32 %v299_v6, %v225_v8 }
 0x212   :  { %v301_v7 = vpop.f32.mrf.mxu1 }
 0x213   :  { %v3054_v9 = vadd.f32 %v301_v7, %v229_v5 }
 0x214   :  { %v303_v10 = vpop.f32.mrf.mxu1 }
 0x215   :  { %v3056_v11 = vadd.f32 %v303_v10, %v225_v8 }
 0x216   :  { %v305_v12 = vpop.f32.mrf.mxu1 }
 0x217   :  { %v3058_v13 = vadd.f32 %v305_v12, %v229_v5 }
 0x218   :  { %v309_v14 = vpop.f32.mrf.mxu1 }
 0x219   :  { %v3060_v15 = vadd.f32 %v309_v14, %v225_v8 }
 0x21a   :  { %v311_v16 = vpop.f32.mrf.mxu1 }
 0x21b   :  { %v3062_v17 = vadd.f32 %v311_v16, %v229_v5 }
 0x21c   :  { %v313_v18 = vpop.f32.mrf.mxu1 }
 0x21d   :  { %v3064_v19 = vadd.f32 %v313_v18, %v225_v8 }
 0x21e   :  { %v315_v20 = vpop.f32.mrf.mxu1 }
 0x21f   :  { %v3066_v21 = vadd.f32 %v315_v20, %v229_v5 }
 0x220   :  { %v319_v22 = vpop.f32.mrf.mxu1 }
 0x221   :  { %v3068_v24 = vadd.f32 %v319_v22, %v225_v8 }
 0x222   :  { %v321_v25 = vpop.f32.mrf.mxu1 }
 0x223   :  { %v3070_v26 = vadd.f32 %v321_v25, %v229_v5 }
 0x224   :  { %v323_v27 = vpop.f32.mrf.mxu1 }
 0x225   :  { %v3072_v28 = vadd.f32 %v323_v27, %v225_v8 }
 0x226   :  { %v325_v29 = vpop.f32.mrf.mxu1 }
 0x227   :  { %v3074_v30 = vadd.f32 %v325_v29, %v229_v5 }
 0x228   :  { %v329_v31 = vpop.f32.mrf.mxu1 }
 0x229   :  { %v3076_v32 = vadd.f32 %v329_v31, %v225_v8 }
 0x22a   :  { %v331_v33 = vpop.f32.mrf.mxu1 }
 0x22b   :  { %v3078_v34 = vadd.f32 %v331_v33, %v229_v5 }
 0x22c   :  { %v333_v35 = vpop.f32.mrf.mxu1 }
 0x22d   :  { %v3080_v36 = vadd.f32 %v333_v35, %v225_v8 }
 0x22e   :  { %v335_v37 = vpop.f32.mrf.mxu1 }
 0x22f   :  { %v336_v40 = vadd.f32 %v335_v37, %v229_v5 }
 0x230   :  { %v424_v39 = vpop.f32.mrf.mxu1 }
 0x231   :  { %v425_v41 = vadd.f32 %v424_v39, %v300_v38 }
 0x232   :  { %v426_v42 = vpop.f32.mrf.mxu1 }
 0x233   :  { %2560 = vtanh.f32 %v425_v41  ;;  %v427_v43 = vadd.f32 %v426_v42, %v336_v40  ;;  %v2361_v56 = vmul.f32 -1.442695, %v425_v41 }
 0x234   :  { %v428_v52 = vpop.f32.mrf.mxu1 }
 0x235   :  { %2562 = vtanh.f32 %v427_v43  ;;  %v2362_v57 = vmul.f32 -1.442695, %v427_v43 }
 0x236   :  { %v429_v53 = vpop.f32.mrf.mxu1  ;;  %2564 = vpow2.f32 %v2361_v56 }
 0x237   :  { %2566 = vpow2.f32 %v2362_v57 }
 0x240   :  { %v2561_v54 = vpop.eup %2560 }
 0x241   :  { %440 = vrot.lane.b32.xlu0 %v2561_v54, %s2841_s4 }
 0x242   :  { %v2563_v55 = vpop.eup %2562 }
 0x243   :  { %464 = vrot.lane.b32.xlu1 %v2563_v55, %s2841_s4  ;;  %v2565_v58 = vpop.eup %2564 }
 0x244   :  { %v2567_v59 = vpop.eup %2566  ;;  %v434_v60 = vadd.f32 1.0, %v2565_v58 }
 0x245   :  { %v458_v61 = vadd.f32 1.0, %v2567_v59 }
 0x246   :  { %2568 = vrcp.f32 %v434_v60 }
 0x247   :  { %2570 = vrcp.f32 %v458_v61 }
 0x253   :  { %v2569_v62 = vpop.eup %2568 }
 0x254   :  { %v2571_v5 = vpop.eup %2570  ;;  %v438_v8 = vmul.f32 0.0, %v2569_v62 }
 0x255   :  { %v462_v14 = vmul.f32 0.0, %v2571_v5 }
 0x2b3   :  { %v441_v63 = vpop.permute.xlu0 %440 }
 0x2b4   :  { %v443_v3 = vmul.f32 %v2569_v62, %v441_v63 }
 0x2b5   :  { %v465_v6 = vpop.permute.xlu1 %464 }
 0x2b6   :  { %445 = vrot.lane.b32.xlu0 %v443_v3, %s2841_s4  ;;  %v467_v7 = vmul.f32 %v2571_v5, %v465_v6 }
 0x2b8   :  { %469 = vrot.lane.b32.xlu1 %v467_v7, %s2841_s4 }
 0x328   :  { %v446_v10 = vpop.permute.xlu0 %445 }
 0x329   :  { %v3086_v12 = vadd.f32 %v446_v10, %v438_v8 }
 0x32a   :  { %v470_v16 = vpop.permute.xlu1 %469 }
 0x32b   :  { %2572 = vtanh.f32 %v3086_v12  ;;  %v472_v18 = vadd.f32 %v470_v16, %v462_v14 }
 0x32d   :  { %2574 = vtanh.f32 %v472_v18 }
 0x338   :  { %v2573_v20 = vpop.eup %2572 }
 0x339   :  { %451 = vrot.lane.b32.xlu0 %v2573_v20, %s2841_s4 }
 0x33a   :  { %v2575_v22 = vpop.eup %2574 }
 0x33b   :  { %475 = vrot.lane.b32.xlu1 %v2575_v22, %s2841_s4 }
 0x3ab   :  { %v452_v25 = vpop.permute.xlu0 %451 }
 0x3ac   :  { %v454_v27 = vmul.f32 %v2569_v62, %v452_v25 }
 0x3ad   :  { %v476_v29 = vpop.permute.xlu1 %475 }
 0x3ae   :  { %480 = vrot.lane.b32.xlu0 %v454_v27, %s2842_s17  ;;  %v478_v31 = vmul.f32 %v2571_v5, %v476_v29 }
 0x3b0   :  { %484 = vrot.lane.b32.xlu1 %v478_v31, %s2843_s18 }
 0x420   :  { %v3093_v33 = vpop.permute.xlu0 %480 }
 0x422   :  { %v3095_v35 = vpop.permute.xlu1 %484 }
 0x423   :  { %v487_v37 = vsel %vm252_vm11, %v3093_v33, %v3095_v35 }
 0x424   :  { %v488_v38 = vpack.c.bf16 %v487_v37, %v487_v37 }
 0x426   :  { %2363 = vmatmul.mubr.msk.bf16.vlgmr.msra.gmra.mxu1 %vm386_vm12, %v488_v38 }
 0x427   :  { %705 = vmatpush1.bf16.msra.mxu1 %v2974_v45  ;;  %728 = vmatprep.mubr.bf16.mxu1 %v2838_v2 }
 0x428   :  { %706 = vmatprep.subr.bf16.mxu1 %v2982_v46 }
 0x42b   :  { %707 = vmatpush1.bf16.msra.mxu1 %v2987_v47 }
 0x42c   :  { %708 = vmatprep.subr.bf16.mxu1 %v2993_v48 }
 0x42f   :  { %709 = vmatpush1.bf16.msra.mxu1 %v3000_v49 }
 0x430   :  { %710 = vmatprep.subr.bf16.mxu1 %v3005_v50 }
 0x433   :  { %711 = vmatpush1.bf16.msra.mxu1 %v3012_v51 }
 0x434   :  { %908 = vmatprep.subr.bf16.mxu1 %v2969_v44 }
 0x4e6   :  { %v526_v39 = vpop.f32.mrf.mxu1 }
 0x4e7   :  { %v527_v40 = vadd.f32 %v526_v39, %v3056_v11 }
 0x4e8   :  { %v528_v41 = vpop.f32.mrf.mxu1 }
 0x4e9   :  { %2576 = vtanh.f32 %v527_v40  ;;  %v529_v42 = vadd.f32 %v528_v41, %v3078_v34  ;;  %v2364_v55 = vmul.f32 -1.442695, %v527_v40 }
 0x4ea   :  { %v530_v43 = vpop.f32.mrf.mxu1 }
 0x4eb   :  { %2578 = vtanh.f32 %v529_v42  ;;  %v2365_v56 = vmul.f32 -1.442695, %v529_v42 }
 0x4ec   :  { %v531_v52 = vpop.f32.mrf.mxu1  ;;  %2580 = vpow2.f32 %v2364_v55 }
 0x4ed   :  { %2582 = vpow2.f32 %v2365_v56 }
 0x4f6   :  { %v2577_v53 = vpop.eup %2576 }
 0x4f7   :  { %542 = vrot.lane.b32.xlu0 %v2577_v53, %s2841_s4 }
 0x4f8   :  { %v2579_v54 = vpop.eup %2578 }
 0x4f9   :  { %566 = vrot.lane.b32.xlu1 %v2579_v54, %s2841_s4  ;;  %v2581_v57 = vpop.eup %2580 }
 0x4fa   :  { %v2583_v58 = vpop.eup %2582  ;;  %v536_v11 = vadd.f32 1.0, %v2581_v57 }
 0x4fb   :  { %v560_v59 = vadd.f32 1.0, %v2583_v58 }
 0x4fc   :  { %2584 = vrcp.f32 %v536_v11 }
 0x4fd   :  { %2586 = vrcp.f32 %v560_v59 }
 0x509   :  { %v2585_v34 = vpop.eup %2584 }
 0x50a   :  { %v2587_v62 = vpop.eup %2586  ;;  %v540_v5 = vmul.f32 %v2585_v34, %v3086_v12 }
 0x50b   :  { %v564_v8 = vmul.f32 %v2587_v62, %v472_v18 }
 0x569   :  { %v543_v60 = vpop.permute.xlu0 %542 }
 0x56a   :  { %v545_v61 = vmul.f32 %v2585_v34, %v543_v60 }
 0x56b   :  { %v567_v63 = vpop.permute.xlu1 %566 }
 0x56c   :  { %547 = vrot.lane.b32.xlu0 %v545_v61, %s2841_s4  ;;  %v569_v3 = vmul.f32 %v2587_v62, %v567_v63 }
 0x56e   :  { %571 = vrot.lane.b32.xlu1 %v569_v3, %s2841_s4 }
 0x5de   :  { %v548_v6 = vpop.permute.xlu0 %547 }
 0x5df   :  { %v550_v7 = vadd.f32 %v548_v6, %v540_v5 }
 0x5e0   :  { %v572_v10 = vpop.permute.xlu1 %571 }
 0x5e1   :  { %2588 = vtanh.f32 %v550_v7  ;;  %v574_v14 = vadd.f32 %v572_v10, %v564_v8 }
 0x5e3   :  { %2590 = vtanh.f32 %v574_v14 }
 0x5ee   :  { %v2589_v16 = vpop.eup %2588 }
 0x5ef   :  { %553 = vrot.lane.b32.xlu0 %v2589_v16, %s2841_s4 }
 0x5f0   :  { %v2591_v20 = vpop.eup %2590 }
 0x5f1   :  { %577 = vrot.lane.b32.xlu1 %v2591_v20, %s2841_s4 }
 0x661   :  { %v554_v22 = vpop.permute.xlu0 %553 }
 0x662   :  { %v556_v25 = vmul.f32 %v2585_v34, %v554_v22 }
 0x663   :  { %v578_v27 = vpop.permute.xlu1 %577 }
 0x664   :  { %582 = vrot.lane.b32.xlu0 %v556_v25, %s2842_s17  ;;  %v580_v29 = vmul.f32 %v2587_v62, %v578_v27 }
 0x666   :  { %586 = vrot.lane.b32.xlu1 %v580_v29, %s2843_s18 }
 0x6d6   :  { %v3121_v12 = vpop.permute.xlu0 %582 }
 0x6d8   :  { %v3123_v18 = vpop.permute.xlu1 %586 }
 0x6d9   :  { %v589_v31 = vsel %vm252_vm11, %v3121_v12, %v3123_v18 }
 0x6da   :  { %v590_v37 = vpack.c.bf16 %v589_v31, %v589_v31 }
 0x6dc   :  { %2366 = vmatmul.mubr.msk.bf16.vlgmr.msra.gmra.mxu0 %vm386_vm12, %v590_v37 }
 0x6dd   :  { %807 = vmatpush1.bf16.msra.mxu0 %v2974_v45  ;;  %830 = vmatprep.mubr.bf16.mxu0 %v2838_v2 }
 0x6de   :  { %808 = vmatprep.subr.bf16.mxu0 %v2982_v46 }
 0x6e1   :  { %809 = vmatpush1.bf16.msra.mxu0 %v2987_v47 }
 0x6e2   :  { %810 = vmatprep.subr.bf16.mxu0 %v2993_v48 }
 0x6e5   :  { %811 = vmatpush1.bf16.msra.mxu0 %v3000_v49 }
 0x6e6   :  { %812 = vmatprep.subr.bf16.mxu0 %v3005_v50 }
 0x6e9   :  { %813 = vmatpush1.bf16.msra.mxu0 %v3012_v51 }
 0x6ea   :  { %1010 = vmatprep.subr.bf16.mxu0 %v2969_v44 }
 0x79c   :  { %v628_v38 = vpop.f32.mrf.mxu0 }
 0x79d   :  { %v629_v39 = vadd.f32 %v628_v38, %v3060_v15 }
 0x79e   :  { %v630_v40 = vpop.f32.mrf.mxu0 }
 0x79f   :  { %2592 = vtanh.f32 %v629_v39  ;;  %v631_v41 = vadd.f32 %v630_v40, %v3074_v30  ;;  %v2367_v54 = vmul.f32 -1.442695, %v629_v39 }
 0x7a0   :  { %v632_v42 = vpop.f32.mrf.mxu0 }
 0x7a1   :  { %2594 = vtanh.f32 %v631_v41  ;;  %v2368_v55 = vmul.f32 -1.442695, %v631_v41 }
 0x7a2   :  { %v633_v43 = vpop.f32.mrf.mxu0  ;;  %2596 = vpow2.f32 %v2367_v54 }
 0x7a3   :  { %2598 = vpow2.f32 %v2368_v55 }
 0x7ac   :  { %v2593_v52 = vpop.eup %2592 }
 0x7ad   :  { %644 = vrot.lane.b32.xlu0 %v2593_v52, %s2841_s4 }
 0x7ae   :  { %v2595_v53 = vpop.eup %2594 }
 0x7af   :  { %668 = vrot.lane.b32.xlu1 %v2595_v53, %s2841_s4  ;;  %v2597_v56 = vpop.eup %2596 }
 0x7b0   :  { %v2599_v57 = vpop.eup %2598  ;;  %v638_v15 = vadd.f32 1.0, %v2597_v56 }
 0x7b1   :  { %v662_v58 = vadd.f32 1.0, %v2599_v57 }
 0x7b2   :  { %2600 = vrcp.f32 %v638_v15 }
 0x7b3   :  { %2602 = vrcp.f32 %v662_v58 }
 0x7bf   :  { %v2601_v30 = vpop.eup %2600 }
 0x7c0   :  { %v2603_v34 = vpop.eup %2602  ;;  %v642_v62 = vmul.f32 %v2601_v30, %v550_v7 }
 0x7c1   :  { %v666_v5 = vmul.f32 %v2603_v34, %v574_v14 }
 0x81f   :  { %v645_v11 = vpop.permute.xlu0 %644 }
 0x820   :  { %v647_v59 = vmul.f32 %v2601_v30, %v645_v11 }
 0x821   :  { %v669_v60 = vpop.permute.xlu1 %668 }
 0x822   :  { %649 = vrot.lane.b32.xlu0 %v647_v59, %s2841_s4  ;;  %v671_v61 = vmul.f32 %v2603_v34, %v669_v60 }
 0x824   :  { %673 = vrot.lane.b32.xlu1 %v671_v61, %s2841_s4 }
 0x894   :  { %v650_v63 = vpop.permute.xlu0 %649 }
 0x895   :  { %v652_v3 = vadd.f32 %v650_v63, %v642_v62 }
 0x896   :  { %v674_v6 = vpop.permute.xlu1 %673 }
 0x897   :  { %2604 = vtanh.f32 %v652_v3  ;;  %v676_v8 = vadd.f32 %v674_v6, %v666_v5 }
 0x899   :  { %2606 = vtanh.f32 %v676_v8 }
 0x8a4   :  { %v2605_v10 = vpop.eup %2604 }
 0x8a5   :  { %655 = vrot.lane.b32.xlu0 %v2605_v10, %s2841_s4 }
 0x8a6   :  { %v2607_v16 = vpop.eup %2606 }
 0x8a7   :  { %679 = vrot.lane.b32.xlu1 %v2607_v16, %s2841_s4 }
 0x917   :  { %v656_v20 = vpop.permute.xlu0 %655 }
 0x918   :  { %v658_v22 = vmul.f32 %v2601_v30, %v656_v20 }
 0x919   :  { %v680_v25 = vpop.permute.xlu1 %679 }
 0x91a   :  { %684 = vrot.lane.b32.xlu0 %v658_v22, %s2842_s17  ;;  %v682_v27 = vmul.f32 %v2603_v34, %v680_v25 }
 0x91c   :  { %688 = vrot.lane.b32.xlu1 %v682_v27, %s2843_s18 }
 0x98c   :  { %v3148_v7 = vpop.permute.xlu0 %684 }
 0x98e   :  { %v3150_v14 = vpop.permute.xlu1 %688 }
 0x98f   :  { %v691_v29 = vsel %vm252_vm11, %v3148_v7, %v3150_v14 }
 0x990   :  { %v692_v31 = vpack.c.bf16 %v691_v29, %v691_v29 }
 0x992   :  { %2369 = vmatmul.mubr.msk.bf16.vlgmr.msra.gmra.mxu1 %vm386_vm12, %v692_v31 }
 0x993   :  { %909 = vmatpush1.bf16.msra.mxu1 %v2974_v45  ;;  %932 = vmatprep.mubr.bf16.mxu1 %v2838_v2 }
 0x994   :  { %910 = vmatprep.subr.bf16.mxu1 %v2982_v46 }
 0x997   :  { %911 = vmatpush1.bf16.msra.mxu1 %v2987_v47 }
 0x998   :  { %912 = vmatprep.subr.bf16.mxu1 %v2993_v48 }
 0x99b   :  { %913 = vmatpush1.bf16.msra.mxu1 %v3000_v49 }
 0x99c   :  { %914 = vmatprep.subr.bf16.mxu1 %v3005_v50 }
 0x99f   :  { %915 = vmatpush1.bf16.msra.mxu1 %v3012_v51 }
 0x9a0   :  { %1112 = vmatprep.subr.bf16.mxu1 %v2969_v44 }
 0xa52   :  { %v730_v37 = vpop.f32.mrf.mxu1 }
 0xa53   :  { %v731_v38 = vadd.f32 %v730_v37, %v3064_v19 }
 0xa54   :  { %v732_v39 = vpop.f32.mrf.mxu1 }
 0xa55   :  { %2608 = vtanh.f32 %v731_v38  ;;  %v733_v40 = vadd.f32 %v732_v39, %v3070_v26  ;;  %v2370_v53 = vmul.f32 -1.442695, %v731_v38 }
 0xa56   :  { %v734_v41 = vpop.f32.mrf.mxu1 }
 0xa57   :  { %2610 = vtanh.f32 %v733_v40  ;;  %v2371_v54 = vmul.f32 -1.442695, %v733_v40 }
 0xa58   :  { %v735_v42 = vpop.f32.mrf.mxu1  ;;  %2612 = vpow2.f32 %v2370_v53 }
 0xa59   :  { %2614 = vpow2.f32 %v2371_v54 }
 0xa62   :  { %v2609_v43 = vpop.eup %2608 }
 0xa63   :  { %746 = vrot.lane.b32.xlu0 %v2609_v43, %s2841_s4 }
 0xa64   :  { %v2611_v52 = vpop.eup %2610 }
 0xa65   :  { %770 = vrot.lane.b32.xlu1 %v2611_v52, %s2841_s4  ;;  %v2613_v44 = vpop.eup %2612 }
 0xa66   :  { %v2615_v55 = vpop.eup %2614  ;;  %v740_v19 = vadd.f32 1.0, %v2613_v44 }
 0xa67   :  { %v764_v56 = vadd.f32 1.0, %v2615_v55 }
 0xa68   :  { %2616 = vrcp.f32 %v740_v19 }
 0xa69   :  { %2618 = vrcp.f32 %v764_v56 }
 0xa75   :  { %v2617_v26 = vpop.eup %2616 }
 0xa76   :  { %v2619_v58 = vpop.eup %2618  ;;  %v744_v59 = vmul.f32 %v2617_v26, %v652_v3 }
 0xa77   :  { %v768_v61 = vmul.f32 %v2619_v58, %v676_v8 }
 0xad5   :  { %v747_v57 = vpop.permute.xlu0 %746 }
 0xad6   :  { %v749_v15 = vmul.f32 %v2617_v26, %v747_v57 }
 0xad7   :  { %v771_v30 = vpop.permute.xlu1 %770 }
 0xad8   :  { %751 = vrot.lane.b32.xlu0 %v749_v15, %s2841_s4  ;;  %v773_v11 = vmul.f32 %v2619_v58, %v771_v30 }
 0xada   :  { %775 = vrot.lane.b32.xlu1 %v773_v11, %s2841_s4 }
 0xb4a   :  { %v752_v34 = vpop.permute.xlu0 %751 }
 0xb4b   :  { %v754_v60 = vadd.f32 %v752_v34, %v744_v59 }
 0xb4c   :  { %v776_v62 = vpop.permute.xlu1 %775 }
 0xb4d   :  { %2620 = vtanh.f32 %v754_v60  ;;  %v778_v63 = vadd.f32 %v776_v62, %v768_v61 }
 0xb4f   :  { %2622 = vtanh.f32 %v778_v63 }
 0xb5a   :  { %v2621_v5 = vpop.eup %2620 }
 0xb5b   :  { %757 = vrot.lane.b32.xlu0 %v2621_v5, %s2841_s4 }
 0xb5c   :  { %v2623_v6 = vpop.eup %2622 }
 0xb5d   :  { %781 = vrot.lane.b32.xlu1 %v2623_v6, %s2841_s4 }
 0xbcd   :  { %v758_v10 = vpop.permute.xlu0 %757 }
 0xbce   :  { %v760_v16 = vmul.f32 %v2617_v26, %v758_v10 }
 0xbcf   :  { %v782_v20 = vpop.permute.xlu1 %781 }
 0xbd0   :  { %786 = vrot.lane.b32.xlu0 %v760_v16, %s2842_s17  ;;  %v784_v22 = vmul.f32 %v2619_v58, %v782_v20 }
 0xbd2   :  { %790 = vrot.lane.b32.xlu1 %v784_v22, %s2843_s18 }
 0xc42   :  { %v3175_v3 = vpop.permute.xlu0 %786 }
 0xc44   :  { %v3177_v8 = vpop.permute.xlu1 %790 }
 0xc45   :  { %v793_v25 = vsel %vm252_vm11, %v3175_v3, %v3177_v8 }
 0xc46   :  { %v794_v27 = vpack.c.bf16 %v793_v25, %v793_v25 }
 0xc48   :  { %2372 = vmatmul.mubr.msk.bf16.vlgmr.msra.gmra.mxu0 %vm386_vm12, %v794_v27 }
 0xc49   :  { %1011 = vmatpush1.bf16.msra.mxu0 %v2974_v45  ;;  %1034 = vmatprep.mubr.bf16.mxu0 %v2838_v2 }
 0xc4a   :  { %1012 = vmatprep.subr.bf16.mxu0 %v2982_v46 }
 0xc4d   :  { %1013 = vmatpush1.bf16.msra.mxu0 %v2987_v47 }
 0xc4e   :  { %1014 = vmatprep.subr.bf16.mxu0 %v2993_v48 }
 0xc51   :  { %1015 = vmatpush1.bf16.msra.mxu0 %v3000_v49 }
 0xc52   :  { %1016 = vmatprep.subr.bf16.mxu0 %v3005_v50 }
 0xc55   :  { %1017 = vmatpush1.bf16.msra.mxu0 %v3012_v51 }
 0xd08   :  { %v832_v29 = vpop.f32.mrf.mxu0 }
 0xd09   :  { %v833_v31 = vadd.f32 %v832_v29, %v3068_v24 }
 0xd0a   :  { %v834_v37 = vpop.f32.mrf.mxu0 }
 0xd0b   :  { %2624 = vtanh.f32 %v833_v31  ;;  %v835_v38 = vadd.f32 %v834_v37, %v3066_v21  ;;  %v2373_v43 = vmul.f32 -1.442695, %v833_v31 }
 0xd0c   :  { %v836_v39 = vpop.f32.mrf.mxu0 }
 0xd0d   :  { %2626 = vtanh.f32 %v835_v38  ;;  %v2374_v52 = vmul.f32 -1.442695, %v835_v38 }
 0xd0e   :  { %v837_v40 = vpop.f32.mrf.mxu0  ;;  %2628 = vpow2.f32 %v2373_v43 }
 0xd0f   :  { %2630 = vpow2.f32 %v2374_v52 }
 0xd18   :  { %v2625_v41 = vpop.eup %2624 }
 0xd19   :  { %848 = vrot.lane.b32.xlu0 %v2625_v41, %s2841_s4 }
 0xd1a   :  { %v2627_v42 = vpop.eup %2626 }
 0xd1b   :  { %872 = vrot.lane.b32.xlu1 %v2627_v42, %s2841_s4  ;;  %v2629_v53 = vpop.eup %2628 }
 0xd1c   :  { %v2631_v54 = vpop.eup %2630  ;;  %v842_v24 = vadd.f32 1.0, %v2629_v53 }
 0xd1d   :  { %v866_v44 = vadd.f32 1.0, %v2631_v54 }
 0xd1e   :  { %2632 = vrcp.f32 %v842_v24 }
 0xd1f   :  { %2634 = vrcp.f32 %v866_v44 }
 0xd2b   :  { %v2633_v21 = vpop.eup %2632 }
 0xd2c   :  { %v2635_v56 = vpop.eup %2634  ;;  %v846_v15 = vmul.f32 %v2633_v21, %v754_v60 }
 0xd2d   :  { %v870_v11 = vmul.f32 %v2635_v56, %v778_v63 }
 0xd8b   :  { %v849_v55 = vpop.permute.xlu0 %848 }
 0xd8c   :  { %v851_v19 = vmul.f32 %v2633_v21, %v849_v55 }
 0xd8d   :  { %v873_v26 = vpop.permute.xlu1 %872 }
 0xd8e   :  { %853 = vrot.lane.b32.xlu0 %v851_v19, %s2841_s4  ;;  %v875_v57 = vmul.f32 %v2635_v56, %v873_v26 }
 0xd90   :  { %877 = vrot.lane.b32.xlu1 %v875_v57, %s2841_s4 }
 0xe00   :  { %v854_v58 = vpop.permute.xlu0 %853 }
 0xe01   :  { %v856_v30 = vadd.f32 %v854_v58, %v846_v15 }
 0xe02   :  { %v878_v59 = vpop.permute.xlu1 %877 }
 0xe03   :  { %2636 = vtanh.f32 %v856_v30  ;;  %v880_v34 = vadd.f32 %v878_v59, %v870_v11 }
 0xe05   :  { %2638 = vtanh.f32 %v880_v34 }
 0xe10   :  { %v2637_v61 = vpop.eup %2636 }
 0xe11   :  { %859 = vrot.lane.b32.xlu0 %v2637_v61, %s2841_s4 }
 0xe12   :  { %v2639_v62 = vpop.eup %2638 }
 0xe13   :  { %883 = vrot.lane.b32.xlu1 %v2639_v62, %s2841_s4 }
 0xe83   :  { %v860_v5 = vpop.permute.xlu0 %859 }
 0xe84   :  { %v862_v6 = vmul.f32 %v2633_v21, %v860_v5 }
 0xe85   :  { %v884_v10 = vpop.permute.xlu1 %883 }
 0xe86   :  { %888 = vrot.lane.b32.xlu0 %v862_v6, %s2842_s17  ;;  %v886_v16 = vmul.f32 %v2635_v56, %v884_v10 }
 0xe88   :  { %892 = vrot.lane.b32.xlu1 %v886_v16, %s2843_s18 }
 0xef8   :  { %v3201_v60 = vpop.permute.xlu0 %888 }
 0xefa   :  { %v3203_v63 = vpop.permute.xlu1 %892 }
 0xefb   :  { %v895_v20 = vsel %vm252_vm11, %v3201_v60, %v3203_v63 }
 0xefc   :  { %v896_v22 = vpack.c.bf16 %v895_v20, %v895_v20 }
 0xefe   :  { %2375 = vmatmul.mubr.msk.bf16.vlgmr.msra.gmra.mxu1 %vm386_vm12, %v896_v22 }
 0xeff   :  { %1113 = vmatpush1.bf16.msra.mxu1 %v2974_v45  ;;  %1136 = vmatprep.mubr.bf16.mxu1 %v2838_v2 }
 0xf00   :  { %1114 = vmatprep.subr.bf16.mxu1 %v2982_v46 }
 0xf03   :  { %1115 = vmatpush1.bf16.msra.mxu1 %v2987_v47 }
 0xf04   :  { %1116 = vmatprep.subr.bf16.mxu1 %v2993_v48 }
 0xf07   :  { %1117 = vmatpush1.bf16.msra.mxu1 %v3000_v49 }
 0xf08   :  { %1118 = vmatprep.subr.bf16.mxu1 %v3005_v50 }
 0xf0b   :  { %1119 = vmatpush1.bf16.msra.mxu1 %v3012_v51 }
 0xfbe   :  { %v934_v25 = vpop.f32.mrf.mxu1 }
 0xfbf   :  { %v935_v27 = vadd.f32 %v934_v25, %v3072_v28 }
 0xfc0   :  { %v936_v29 = vpop.f32.mrf.mxu1 }
 0xfc1   :  { %2640 = vtanh.f32 %v935_v27  ;;  %v937_v45 = vadd.f32 %v936_v29, %v3062_v17  ;;  %v2376_v48 = vmul.f32 -1.442695, %v935_v27 }
 0xfc2   :  { %v938_v31 = vpop.f32.mrf.mxu1 }
 0xfc3   :  { %2642 = vtanh.f32 %v937_v45  ;;  %v2377_v49 = vmul.f32 -1.442695, %v937_v45 }
 0xfc4   :  { %v939_v46 = vpop.f32.mrf.mxu1  ;;  %2644 = vpow2.f32 %v2376_v48 }
 0xfc5   :  { %2646 = vpow2.f32 %v2377_v49 }
 0xfce   :  { %v2641_v37 = vpop.eup %2640 }
 0xfcf   :  { %950 = vrot.lane.b32.xlu0 %v2641_v37, %s2841_s4 }
 0xfd0   :  { %v2643_v47 = vpop.eup %2642 }
 0xfd1   :  { %974 = vrot.lane.b32.xlu1 %v2643_v47, %s2841_s4  ;;  %v2645_v50 = vpop.eup %2644 }
 0xfd2   :  { %v2647_v51 = vpop.eup %2646  ;;  %v944_v28 = vadd.f32 1.0, %v2645_v50 }
 0xfd3   :  { %v968_v38 = vadd.f32 1.0, %v2647_v51 }
 0xfd4   :  { %2648 = vrcp.f32 %v944_v28 }
 0xfd5   :  { %2650 = vrcp.f32 %v968_v38 }
 0xfe1   :  { %v2649_v17 = vpop.eup %2648 }
 0xfe2   :  { %v2651_v41 = vpop.eup %2650  ;;  %v948_v52 = vmul.f32 %v2649_v17, %v856_v30 }
 0xfe3   :  { %v972_v24 = vmul.f32 %v2651_v41, %v880_v34 }
0x1041   :  { %v951_v39 = vpop.permute.xlu0 %950 }
0x1042   :  { %v953_v40 = vmul.f32 %v2649_v17, %v951_v39 }
0x1043   :  { %v975_v42 = vpop.permute.xlu1 %974 }
0x1044   :  { %955 = vrot.lane.b32.xlu0 %v953_v40, %s2841_s4  ;;  %v977_v43 = vmul.f32 %v2651_v41, %v975_v42 }
0x1046   :  { %979 = vrot.lane.b32.xlu1 %v977_v43, %s2841_s4 }
0x10b6   :  { %v956_v53 = vpop.permute.xlu0 %955 }
0x10b7   :  { %v958_v54 = vadd.f32 %v956_v53, %v948_v52 }
0x10b8   :  { %v980_v44 = vpop.permute.xlu1 %979 }
0x10b9   :  { %2652 = vtanh.f32 %v958_v54  ;;  %v982_v21 = vadd.f32 %v980_v44, %v972_v24 }
0x10bb   :  { %2654 = vtanh.f32 %v982_v21 }
0x10c6   :  { %v2653_v55 = vpop.eup %2652 }
0x10c7   :  { %961 = vrot.lane.b32.xlu0 %v2653_v55, %s2841_s4 }
0x10c8   :  { %v2655_v19 = vpop.eup %2654 }
0x10c9   :  { %985 = vrot.lane.b32.xlu1 %v2655_v19, %s2841_s4 }
0x1139   :  { %v962_v56 = vpop.permute.xlu0 %961 }
0x113a   :  { %v964_v26 = vmul.f32 %v2649_v17, %v962_v56 }
0x113b   :  { %v986_v57 = vpop.permute.xlu1 %985 }
0x113c   :  { %990 = vrot.lane.b32.xlu0 %v964_v26, %s2842_s17  ;;  %v988_v15 = vmul.f32 %v2651_v41, %v986_v57 }
0x113e   :  { %994 = vrot.lane.b32.xlu1 %v988_v15, %s2843_s18 }
0x11ae   :  { %v3227_v58 = vpop.permute.xlu0 %990 }
0x11b0   :  { %v3229_v30 = vpop.permute.xlu1 %994 }
0x11b1   :  { %v997_v11 = vsel %vm252_vm11, %v3227_v58, %v3229_v30 }
0x11b2   :  { %v998_v59 = vpack.c.bf16 %v997_v11, %v997_v11 }
0x11b4   :  { %2378 = vmatmul.mubr.msk.bf16.vlgmr.msra.gmra.mxu0 %vm386_vm12, %v998_v59 }
0x11b5   :  { %1317 = vmatprep.mubr.bf16.mxu0 %v2838_v2 }
0x1274   :  { %v1036_v34 = vpop.f32.mrf.mxu0 }
0x1275   :  { %v1037_v61 = vadd.f32 %v1036_v34, %v3076_v32 }
0x1276   :  { %v1038_v62 = vpop.f32.mrf.mxu0 }
0x1277   :  { %2656 = vtanh.f32 %v1037_v61  ;;  %v1039_v5 = vadd.f32 %v1038_v62, %v3058_v13  ;;  %v2379_v22 = vmul.f32 -1.442695, %v1037_v61 }
0x1278   :  { %v1040_v6 = vpop.f32.mrf.mxu0 }
0x1279   :  { %2658 = vtanh.f32 %v1039_v5  ;;  %v2380_v25 = vmul.f32 -1.442695, %v1039_v5 }
0x127a   :  { %v1041_v10 = vpop.f32.mrf.mxu0  ;;  %2660 = vpow2.f32 %v2379_v22 }
0x127b   :  { %2662 = vpow2.f32 %v2380_v25 }
0x1284   :  { %v2657_v16 = vpop.eup %2656 }
0x1285   :  { %1052 = vrot.lane.b32.xlu0 %v2657_v16, %s2841_s4 }
0x1286   :  { %v2659_v20 = vpop.eup %2658 }
0x1287   :  { %1076 = vrot.lane.b32.xlu1 %v2659_v20, %s2841_s4  ;;  %v2661_v27 = vpop.eup %2660 }
0x1288   :  { %v2663_v29 = vpop.eup %2662  ;;  %v1046_v32 = vadd.f32 1.0, %v2661_v27 }
0x1289   :  { %v1070_v45 = vadd.f32 1.0, %v2663_v29 }
0x128a   :  { %2664 = vrcp.f32 %v1046_v32 }
0x128b   :  { %2666 = vrcp.f32 %v1070_v45 }
0x1297   :  { %v2665_v13 = vpop.eup %2664 }
0x1298   :  { %v2667_v37 = vpop.eup %2666  ;;  %v1050_v49 = vmul.f32 %v2665_v13, %v958_v54 }
0x1299   :  { %v1074_v28 = vmul.f32 %v2667_v37, %v982_v21 }
0x12f7   :  { %v1053_v31 = vpop.permute.xlu0 %1052 }
0x12f8   :  { %v1055_v46 = vmul.f32 %v2665_v13, %v1053_v31  ;;  %v2536_v31 = vld [vmem:[%s3653_s5 + $0x30] ss:$8 sps:$4 sm:$0xff]  }
0x12f9   :  { %v1077_v47 = vpop.permute.xlu1 %1076 }
0x12fa   :  { %1057 = vrot.lane.b32.xlu0 %v1055_v46, %s2841_s4  ;;  %v1079_v48 = vmul.f32 %v2667_v37, %v1077_v47  ;;  %v2538_v46 = vld [vmem:[%s3653_s5 + $0x34] ss:$8 sps:$4 sm:$0xff]   ;;  %v3275_v47 = vld [vmem:[%s3654_s6 + $0x30] ss:$8 sps:$4 sm:$0xff]  }
0x12fb   :  { %1293 = vmatprep.subr.bf16.mxu0 %v2538_v46 }
0x12fc   :  { %1081 = vrot.lane.b32.xlu1 %v1079_v48, %s2841_s4  ;;  %v2544_v48 = vld [vmem:[%s3653_s5 + $0x24] ss:$8 sps:$4 sm:$0xff]   ;;  %1294 = vmatpush1.bf16.msra.mxu0 %v2536_v31 }
0x12fd   :  { %1295 = vmatprep.subr.bf16.mxu0 %v2544_v48 }
0x136c   :  { %v1058_v50 = vpop.permute.xlu0 %1057 }
0x136d   :  { %v1060_v51 = vadd.f32 %v1058_v50, %v1050_v49  ;;  %v3284_v49 = vld [vmem:[%s3654_s6 + $0x24] ss:$8 sps:$4 sm:$0xff]   ;;  %v2542_v50 = vld [vmem:[%s3653_s5 + $0x20] ss:$8 sps:$4 sm:$0xff]  }
0x136e   :  { %v1082_v38 = vpop.permute.xlu1 %1081  ;;  %1296 = vmatpush1.bf16.msra.mxu0 %v2542_v50 }
0x136f   :  { %2668 = vtanh.f32 %v1060_v51  ;;  %v1084_v17 = vadd.f32 %v1082_v38, %v1074_v28  ;;  %v2550_v28 = vld [vmem:[%s3653_s5 + $0x14] ss:$8 sps:$4 sm:$0xff]  }
0x1370   :  { %v3302_v38 = vld [vmem:[%s3654_s6 + $0x14] ss:$8 sps:$4 sm:$0xff]   ;;  %1297 = vmatprep.subr.bf16.mxu0 %v2550_v28 }
0x1371   :  { %2670 = vtanh.f32 %v1084_v17 }
0x137c   :  { %v2669_v39 = vpop.eup %2668 }
0x137d   :  { %1063 = vrot.lane.b32.xlu0 %v2669_v39, %s2841_s4  ;;  %v2548_v39 = vld [vmem:[%s3653_s5 + $0x10] ss:$8 sps:$4 sm:$0xff]  }
0x137e   :  { %v2671_v40 = vpop.eup %2670  ;;  %1298 = vmatpush1.bf16.msra.mxu0 %v2548_v39 }
0x137f   :  { %1087 = vrot.lane.b32.xlu1 %v2671_v40, %s2841_s4 }
0x13ef   :  { %v1064_v41 = vpop.permute.xlu0 %1063 }
0x13f0   :  { %v1066_v42 = vmul.f32 %v2665_v13, %v1064_v41  ;;  %v3314_v41 = vld [vmem:[%s3654_s6 + $0x10] ss:$8 sps:$4 sm:$0xff]  }
0x13f1   :  { %v1088_v43 = vpop.permute.xlu1 %1087 }
0x13f2   :  { %1092 = vrot.lane.b32.xlu0 %v1066_v42, %s2842_s17  ;;  %v1090_v52 = vmul.f32 %v2667_v37, %v1088_v43  ;;  %v3270_v37 = vld [vmem:[%s3654_s6 + $0x34] ss:$8 sps:$4 sm:$0xff]   ;;  %v2556_v42 = vld [vmem:[%s3653_s5 + $0x4] ss:$8 sps:$4 sm:$0xff]   ;;  %v2554_v43 = vld [vmem:[%s3653_s5] ss:$8 sps:$4 sm:$0xff]  }
0x13f3   :  { %1414 = vmatprep.subr.bf16.mxu1 %v3270_v37  ;;  %1299 = vmatprep.subr.bf16.mxu0 %v2556_v42 }
0x13f4   :  { %1096 = vrot.lane.b32.xlu1 %v1090_v52, %s2843_s18  ;;  %v3326_v52 = vld [vmem:[%s3654_s6 + $0x4] ss:$8 sps:$4 sm:$0xff]   ;;  %1300 = vmatpush1.bf16.msra.mxu0 %v2554_v43 }
0x13f5   :  { %1618 = vmatprep.subr.bf16.mxu0 %v3270_v37 }
0x1464   :  { %v3246_v53 = vpop.permute.xlu0 %1092 }
0x1466   :  { %v3248_v54 = vpop.permute.xlu1 %1096 }
0x1467   :  { %v1099_v24 = vsel %vm252_vm11, %v3246_v53, %v3248_v54 }
0x1468   :  { %v1100_v44 = vpack.c.bf16 %v1099_v24, %v1099_v24  ;;  %v3331_v24 = vld [vmem:[%s3654_s6] ss:$8 sps:$4 sm:$0xff]  }
0x146a   :  { %2381 = vmatmul.mubr.msk.bf16.vlgmr.msra.gmra.mxu1 %vm386_vm12, %v1100_v44 }
0x146b   :  { %1438 = vmatprep.mubr.bf16.mxu1 %v2838_v2  ;;  %1415 = vmatpush1.bf16.msra.mxu1 %v3275_v47 }
0x146c   :  { %1416 = vmatprep.subr.bf16.mxu1 %v3284_v49 }
0x152a   :  { %v1138_v21 = vpop.f32.mrf.mxu1 }
0x152b   :  { %v1139_v55 = vadd.f32 %v1138_v21, %v3080_v36 }
0x152c   :  { %v1140_v19 = vpop.f32.mrf.mxu1 }
0x152d   :  { %2672 = vtanh.f32 %v1139_v55  ;;  %v1141_v56 = vadd.f32 %v1140_v19, %v3054_v9  ;;  %v2382_v59 = vmul.f32 -1.442695, %v1139_v55 }
0x152e   :  { %v1142_v26 = vpop.f32.mrf.mxu1 }
0x152f   :  { %2674 = vtanh.f32 %v1141_v56  ;;  %v2383_v34 = vmul.f32 -1.442695, %v1141_v56  ;;  %v1198_v26 = vsel %vm252_vm11, %v3121_v12, %v3248_v54  ;;  %v1200_v12 = vsel %vm252_vm11, %v3175_v3, %v3203_v63 }
0x1530   :  { %v1143_v57 = vpop.f32.mrf.mxu1  ;;  %2676 = vpow2.f32 %v2382_v59  ;;  %v1201_v3 = vsel %vm252_vm11, %v3201_v60, %v3177_v8 }
0x1531   :  { %2678 = vpow2.f32 %v2383_v34 }
0x153a   :  { %v2673_v15 = vpop.eup %2672 }
0x153b   :  { %1154 = vrot.lane.b32.xlu1 %v2673_v15, %s2841_s4 }
0x153c   :  { %v2675_v11 = vpop.eup %2674 }
0x153d   :  { %1178 = vrot.lane.b32.xlu0 %v2675_v11, %s2841_s4  ;;  %v2677_v61 = vpop.eup %2676  ;;  %v1199_v11 = vsel %vm252_vm11, %v3148_v7, %v3229_v30  ;;  %v1202_v7 = vsel %vm252_vm11, %v3227_v58, %v3150_v14  ;;  %v1203_v14 = vsel %vm252_vm11, %v3246_v53, %v3123_v18 }
0x153e   :  { %v2679_v62 = vpop.eup %2678  ;;  %v1148_v36 = vadd.f32 1.0, %v2677_v61  ;;  %v1211_v63 = vpack.c.bf16 %v1202_v7, %v1201_v3  ;;  %v1221_v61 = vld [vmem:[%s3655_s7] sm:$0x3] }
0x153f   :  { %v1172_v5 = vadd.f32 1.0, %v2679_v62  ;;  %v1230_v62 = vrot.slane %v1221_v61, %v228_v1 }
0x1540   :  { %2680 = vrcp.f32 %v1148_v36 }
0x1541   :  { %2682 = vrcp.f32 %v1172_v5 }
0x154d   :  { %v2681_v9 = vpop.eup %2680 }
0x154e   :  { %v2683_v16 = vpop.eup %2682  ;;  %v1152_v25 = vmul.f32 %v2681_v9, %v1060_v51  ;;  %v3293_v51 = vld [vmem:[%s3654_s6 + $0x20] ss:$8 sps:$4 sm:$0xff]  }
0x154f   :  { %v1176_v32 = vmul.f32 %v2683_v16, %v1084_v17  ;;  %1417 = vmatpush1.bf16.msra.mxu1 %v3293_v51 }
0x1550   :  { %1418 = vmatprep.subr.bf16.mxu1 %v3302_v38 }
0x1553   :  { %1419 = vmatpush1.bf16.msra.mxu1 %v3314_v41 }
0x1554   :  { %1420 = vmatprep.subr.bf16.mxu1 %v3326_v52 }
0x1557   :  { %1421 = vmatpush1.bf16.msra.mxu1 %v3331_v24 }
0x1558   :  { %1516 = vmatprep.subr.bf16.mxu1 %v3270_v37 }
0x155a   :  { %1439 = vmatmul.mubr.bf16.vlgmr.msra.gmra.mxu1 %v2838_v2 }
0x155b   :  { %1517 = vmatpush1.bf16.msra.mxu1 %v3275_v47  ;;  %1540 = vmatprep.mubr.bf16.mxu1 %v2838_v2 }
0x155c   :  { %1518 = vmatprep.subr.bf16.mxu1 %v3284_v49 }
0x155f   :  { %1519 = vmatpush1.bf16.msra.mxu1 %v3293_v51 }
0x1560   :  { %1520 = vmatprep.subr.bf16.mxu1 %v3302_v38 }
0x1563   :  { %1521 = vmatpush1.bf16.msra.mxu1 %v3314_v41 }
0x1564   :  { %1522 = vmatprep.subr.bf16.mxu1 %v3326_v52 }
0x1567   :  { %1523 = vmatpush1.bf16.msra.mxu1 %v3331_v24 }
0x1568   :  { %1720 = vmatprep.subr.bf16.mxu1 %v3270_v37 }
0x15ad   :  { %v1155_v6 = vpop.permute.xlu1 %1154 }
0x15ae   :  { %v1157_v10 = vmul.f32 %v2681_v9, %v1155_v6 }
0x15af   :  { %v1179_v20 = vpop.permute.xlu0 %1178 }
0x15b0   :  { %1159 = vrot.lane.b32.xlu1 %v1157_v10, %s2841_s4  ;;  %v1181_v22 = vmul.f32 %v2683_v16, %v1179_v20 }
0x15b2   :  { %1183 = vrot.lane.b32.xlu0 %v1181_v22, %s2841_s4 }
0x161a   :  { %v1440_v8 = vpop.f32.mrf.mxu1 }
0x161c   :  { %v1442_v60 = vpop.f32.mrf.mxu1 }
0x161e   :  { %v1444_v59 = vpop.f32.mrf.mxu1 }
0x1620   :  { %v1445_v34 = vpop.f32.mrf.mxu1 }
0x1622   :  { %v1160_v27 = vpop.permute.xlu1 %1159 }
0x1623   :  { %v1162_v29 = vadd.f32 %v1160_v27, %v1152_v25 }
0x1624   :  { %v1184_v45 = vpop.permute.xlu0 %1183 }
0x1625   :  { %2684 = vtanh.f32 %v1162_v29  ;;  %v1186_v13 = vadd.f32 %v1184_v45, %v1176_v32 }
0x1627   :  { %2686 = vtanh.f32 %v1186_v13 }
0x1632   :  { %v2685_v17 = vpop.eup %2684 }
0x1633   :  { %1165 = vrot.lane.b32.xlu1 %v2685_v17, %s2841_s4 }
0x1634   :  { %v2687_v40 = vpop.eup %2686 }
0x1635   :  { %1189 = vrot.lane.b32.xlu0 %v2687_v40, %s2841_s4 }
0x16a5   :  { %v1166_v44 = vpop.permute.xlu1 %1165 }
0x16a6   :  { %v1168_v21 = vmul.f32 %v2681_v9, %v1166_v44 }
0x16a7   :  { %v1190_v55 = vpop.permute.xlu0 %1189 }
0x16a8   :  { %1205 = vrot.lane.b32.xlu1 %v1168_v21, %s2842_s17  ;;  %v1192_v19 = vmul.f32 %v2683_v16, %v1190_v55 }
0x16aa   :  { %1194 = vrot.lane.b32.xlu0 %v1192_v19, %s2843_s18 }
0x171a   :  { %v1206_v30 = vpop.permute.xlu1 %1205 }
0x171b   :  { %v1208_v54 = vsel %vm252_vm11, %v1206_v30, %v3095_v35  ;;  %v1226_v35 = vrot.slane %v1221_v61, %v224_v4 }
0x171c   :  { %v1195_v56 = vpop.permute.xlu0 %1194  ;;  %v1212_v58 = vpack.c.bf16 %v1208_v54, %v1203_v14 }
0x171d   :  { %v1197_v57 = vsel %vm252_vm11, %v3093_v33, %v1195_v56  ;;  %v1210_v33 = vpack.c.bf16 %v1200_v12, %v1199_v11 }
0x171e   :  { %v1209_v15 = vpack.c.bf16 %v1198_v26, %v1197_v57 }
0x1720   :  { %2392 = vmatmul.mubr.msk.bf16.vlgmr.msra.gmra.mxu0 %vm386_vm12, %v1209_v15 }
0x1721   :  { %1327 = vmatprep.mubr.bf16.mxu0 %v2838_v2  ;;  %1619 = vmatpush1.bf16.msra.mxu0 %v3275_v47 }
0x1722   :  { %1620 = vmatprep.subr.bf16.mxu0 %v3284_v49 }
0x1725   :  { %1621 = vmatpush1.bf16.msra.mxu0 %v3293_v51 }
0x1726   :  { %1622 = vmatprep.subr.bf16.mxu0 %v3302_v38 }
0x1728   :  { %2393 = vmatmul.mubr.msk.bf16.gmra.mxu0 %vm386_vm12, %v1210_v33 }
0x1729   :  { %1337 = vmatprep.mubr.bf16.mxu0 %v2838_v2  ;;  %1623 = vmatpush1.bf16.msra.mxu0 %v3314_v41 }
0x172a   :  { %1624 = vmatprep.subr.bf16.mxu0 %v3326_v52 }
0x172d   :  { %1625 = vmatpush1.bf16.msra.mxu0 %v3331_v24 }
0x172e   :  { %1822 = vmatprep.subr.bf16.mxu0 %v3270_v37 }
0x1730   :  { %2394 = vmatmul.mubr.msk.bf16.gmra.mxu0 %vm386_vm12, %v1211_v63 }
0x1731   :  { %1347 = vmatprep.mubr.bf16.mxu0 %v2838_v2 }
0x1738   :  { %2395 = vmatmul.mubr.msk.bf16.gmra.mxu0 %vm386_vm12, %v1212_v58 }
0x1739   :  { %1642 = vmatprep.mubr.bf16.mxu0 %v2838_v2 }
0x17e0   :  { %v1319_v18 = vpop.f32.mrf.mxu0 }
0x17e1   :  { %v1320_v53 = vadd.f32 %v1319_v18, %v1226_v35 }
0x17e2   :  { %v1321_v36 = vpop.f32.mrf.mxu0 }
0x17e3   :  { %v3394_v5 = vadd.f32 %v1321_v36, %v1230_v62  ;;  %v1441_v9 = vadd.f32 %v1440_v8, %v1320_v53 }
0x17e4   :  { %v1323_v6 = vpop.f32.mrf.mxu0 }
0x17e5   :  { %2688 = vtanh.f32 %v1441_v9  ;;  %v3396_v10 = vadd.f32 %v1323_v6, %v1226_v35  ;;  %v2404_v15 = vmul.f32 -1.442695, %v1441_v9 }
0x17e6   :  { %v1325_v16 = vpop.f32.mrf.mxu0 }
0x17e7   :  { %v3398_v20 = vadd.f32 %v1325_v16, %v1230_v62 }
0x17e8   :  { %v1329_v22 = vpop.f32.mrf.mxu0 }
0x17e9   :  { %v3400_v25 = vadd.f32 %v1329_v22, %v1226_v35 }
0x17ea   :  { %v1331_v4 = vpop.f32.mrf.mxu0 }
0x17eb   :  { %v3402_v27 = vadd.f32 %v1331_v4, %v1230_v62 }
0x17ec   :  { %v1333_v0 = vpop.f32.mrf.mxu0 }
0x17ed   :  { %v3404_v1 = vadd.f32 %v1333_v0, %v1226_v35 }
0x17ee   :  { %v1335_v29 = vpop.f32.mrf.mxu0 }
0x17ef   :  { %v3406_v32 = vadd.f32 %v1335_v29, %v1230_v62 }
0x17f0   :  { %v1339_v45 = vpop.f32.mrf.mxu0 }
0x17f1   :  { %v3408_v13 = vadd.f32 %v1339_v45, %v1226_v35 }
0x17f2   :  { %v2689_v31 = vpop.eup %2688  ;;  %v1341_v46 = vpop.f32.mrf.mxu0 }
0x17f3   :  { %v3410_v48 = vadd.f32 %v1341_v46, %v1230_v62  ;;  %1456 = vrot.lane.b32.xlu0 %v2689_v31, %s2841_s4 }
0x17f4   :  { %v1343_v50 = vpop.f32.mrf.mxu0 }
0x17f5   :  { %v3413_v28 = vadd.f32 %v1343_v50, %v1226_v35 }
0x17f6   :  { %v1345_v17 = vpop.f32.mrf.mxu0 }
0x17f7   :  { %v3415_v39 = vadd.f32 %v1345_v17, %v1230_v62 }
0x17f8   :  { %v1349_v40 = vpop.f32.mrf.mxu0 }
0x17f9   :  { %v3417_v42 = vadd.f32 %v1349_v40, %v1226_v35 }
0x17fa   :  { %v1351_v43 = vpop.f32.mrf.mxu0 }
0x17fb   :  { %v3419_v44 = vadd.f32 %v1351_v43, %v1230_v62 }
0x17fc   :  { %v1353_v21 = vpop.f32.mrf.mxu0 }
0x17fd   :  { %v3421_v55 = vadd.f32 %v1353_v21, %v1226_v35 }
0x17fe   :  { %v1355_v19 = vpop.f32.mrf.mxu0 }
0x17ff   :  { %v1356_v56 = vadd.f32 %v1355_v19, %v1230_v62 }
0x1801   :  { %v1443_v26 = vadd.f32 %v1442_v60, %v1356_v56 }
0x1803   :  { %2690 = vtanh.f32 %v1443_v26  ;;  %v2405_v33 = vmul.f32 -1.442695, %v1443_v26 }
0x1804   :  { %2692 = vpow2.f32 %v2404_v15 }
0x1810   :  { %v2691_v57 = vpop.eup %2690 }
0x1811   :  { %1480 = vrot.lane.b32.xlu1 %v2691_v57, %s2841_s4  ;;  %v2693_v11 = vpop.eup %2692 }
0x1812   :  { %v1450_v12 = vadd.f32 1.0, %v2693_v11 }
0x1814   :  { %2694 = vrcp.f32 %v1450_v12 }
0x1815   :  { %2696 = vpow2.f32 %v2405_v33 }
0x1821   :  { %v2695_v7 = vpop.eup %2694 }
0x1822   :  { %v2697_v30 = vpop.eup %2696  ;;  %v1454_v60 = vmul.f32 0.0, %v2695_v7 }
0x1823   :  { %v1474_v54 = vadd.f32 1.0, %v2697_v30 }
0x1825   :  { %2698 = vrcp.f32 %v1474_v54 }
0x1832   :  { %v2699_v14 = vpop.eup %2698 }
0x1833   :  { %v1478_v35 = vmul.f32 0.0, %v2699_v14 }
0x1865   :  { %v1457_v3 = vpop.permute.xlu0 %1456 }
0x1866   :  { %v1459_v63 = vmul.f32 %v2695_v7, %v1457_v3 }
0x1868   :  { %1461 = vrot.lane.b32.xlu0 %v1459_v63, %s2841_s4 }
0x1883   :  { %v1481_v58 = vpop.permute.xlu1 %1480 }
0x1884   :  { %v1483_v8 = vmul.f32 %v2699_v14, %v1481_v58 }
0x1886   :  { %1485 = vrot.lane.b32.xlu1 %v1483_v8, %s2841_s4 }
0x18da   :  { %v1462_v59 = vpop.permute.xlu0 %1461 }
0x18db   :  { %v1464_v34 = vadd.f32 %v1462_v59, %v1454_v60 }
0x18dd   :  { %2700 = vtanh.f32 %v1464_v34 }
0x18ea   :  { %v2701_v61 = vpop.eup %2700 }
0x18eb   :  { %1467 = vrot.lane.b32.xlu0 %v2701_v61, %s2841_s4 }
0x18f8   :  { %v1486_v62 = vpop.permute.xlu1 %1485 }
0x18f9   :  { %v1488_v18 = vadd.f32 %v1486_v62, %v1478_v35 }
0x18fb   :  { %2702 = vtanh.f32 %v1488_v18 }
0x1908   :  { %v2703_v53 = vpop.eup %2702 }
0x1909   :  { %1491 = vrot.lane.b32.xlu1 %v2703_v53, %s2841_s4 }
0x195d   :  { %v1468_v36 = vpop.permute.xlu0 %1467 }
0x195e   :  { %v1470_v9 = vmul.f32 %v2695_v7, %v1468_v36 }
0x1960   :  { %1496 = vrot.lane.b32.xlu0 %v1470_v9, %s2842_s17 }
0x197b   :  { %v1492_v6 = vpop.permute.xlu1 %1491 }
0x197c   :  { %v3429_v16 = vmul.f32 %v2699_v14, %v1492_v6 }
0x197e   :  { %1500 = vrot.lane.b32.xlu1 %v3429_v16, %s2843_s18 }
0x19d2   :  { %v3433_v22 = vpop.permute.xlu0 %1496 }
0x19f0   :  { %v1501_v4 = vpop.permute.xlu1 %1500 }
0x19f1   :  { %v1503_v0 = vsel %vm252_vm11, %v3433_v22, %v1501_v4 }
0x19f2   :  { %v1504_v29 = vpack.c.bf16 %v1503_v0, %v1503_v0 }
0x19f4   :  { %2406 = vmatmul.mubr.msk.bf16.vlgmr.msra.gmra.mxu1 %vm386_vm12, %v1504_v29 }
0x19f5   :  { %1721 = vmatpush1.bf16.msra.mxu1 %v3275_v47  ;;  %1744 = vmatprep.mubr.bf16.mxu1 %v2838_v2 }
0x19f6   :  { %1722 = vmatprep.subr.bf16.mxu1 %v3284_v49 }
0x19f9   :  { %1723 = vmatpush1.bf16.msra.mxu1 %v3293_v51 }
0x19fa   :  { %1724 = vmatprep.subr.bf16.mxu1 %v3302_v38 }
0x19fd   :  { %1725 = vmatpush1.bf16.msra.mxu1 %v3314_v41 }
0x19fe   :  { %1726 = vmatprep.subr.bf16.mxu1 %v3326_v52 }
0x1a01   :  { %1727 = vmatpush1.bf16.msra.mxu1 %v3331_v24 }
0x1a02   :  { %1924 = vmatprep.subr.bf16.mxu1 %v3270_v37 }
0x1ab4   :  { %v1542_v45 = vpop.f32.mrf.mxu1 }
0x1ab5   :  { %v1543_v31 = vadd.f32 %v1542_v45, %v3396_v10 }
0x1ab6   :  { %v1544_v46 = vpop.f32.mrf.mxu1 }
0x1ab7   :  { %2704 = vtanh.f32 %v1543_v31  ;;  %v1545_v50 = vadd.f32 %v1544_v46, %v3419_v44  ;;  %v2407_v19 = vmul.f32 -1.442695, %v1543_v31 }
0x1ab8   :  { %v1546_v17 = vpop.f32.mrf.mxu1 }
0x1ab9   :  { %2706 = vtanh.f32 %v1545_v50  ;;  %v2408_v56 = vmul.f32 -1.442695, %v1545_v50 }
0x1aba   :  { %v1547_v40 = vpop.f32.mrf.mxu1  ;;  %2708 = vpow2.f32 %v2407_v19 }
0x1abb   :  { %2710 = vpow2.f32 %v2408_v56 }
0x1ac4   :  { %v2705_v43 = vpop.eup %2704 }
0x1ac5   :  { %1558 = vrot.lane.b32.xlu0 %v2705_v43, %s2841_s4 }
0x1ac6   :  { %v2707_v21 = vpop.eup %2706 }
0x1ac7   :  { %1582 = vrot.lane.b32.xlu1 %v2707_v21, %s2841_s4  ;;  %v2709_v26 = vpop.eup %2708 }
0x1ac8   :  { %v2711_v57 = vpop.eup %2710  ;;  %v1552_v10 = vadd.f32 1.0, %v2709_v26 }
0x1ac9   :  { %v1576_v15 = vadd.f32 1.0, %v2711_v57 }
0x1aca   :  { %2712 = vrcp.f32 %v1552_v10 }
0x1acb   :  { %2714 = vrcp.f32 %v1576_v15 }
0x1ad7   :  { %v2713_v44 = vpop.eup %2712 }
0x1ad8   :  { %v2715_v33 = vpop.eup %2714  ;;  %v1556_v63 = vmul.f32 %v2713_v44, %v1464_v34 }
0x1ad9   :  { %v1580_v14 = vmul.f32 %v2715_v33, %v1488_v18 }
0x1b37   :  { %v1559_v11 = vpop.permute.xlu0 %1558 }
0x1b38   :  { %v1561_v12 = vmul.f32 %v2713_v44, %v1559_v11 }
0x1b39   :  { %v1583_v7 = vpop.permute.xlu1 %1582 }
0x1b3a   :  { %1563 = vrot.lane.b32.xlu0 %v1561_v12, %s2841_s4  ;;  %v1585_v3 = vmul.f32 %v2715_v33, %v1583_v7 }
0x1b3c   :  { %1587 = vrot.lane.b32.xlu1 %v1585_v3, %s2841_s4 }
0x1bac   :  { %v1564_v30 = vpop.permute.xlu0 %1563 }
0x1bad   :  { %v1566_v54 = vadd.f32 %v1564_v30, %v1556_v63 }
0x1bae   :  { %v1588_v58 = vpop.permute.xlu1 %1587 }
0x1baf   :  { %2716 = vtanh.f32 %v1566_v54  ;;  %v1590_v8 = vadd.f32 %v1588_v58, %v1580_v14 }
0x1bb1   :  { %2718 = vtanh.f32 %v1590_v8 }
0x1bbc   :  { %v2717_v60 = vpop.eup %2716 }
0x1bbd   :  { %1569 = vrot.lane.b32.xlu0 %v2717_v60, %s2841_s4 }
0x1bbe   :  { %v2719_v59 = vpop.eup %2718 }
0x1bbf   :  { %1593 = vrot.lane.b32.xlu1 %v2719_v59, %s2841_s4 }
0x1c2f   :  { %v1570_v61 = vpop.permute.xlu0 %1569 }
0x1c30   :  { %v1572_v35 = vmul.f32 %v2713_v44, %v1570_v61 }
0x1c31   :  { %v1594_v62 = vpop.permute.xlu1 %1593 }
0x1c32   :  { %1598 = vrot.lane.b32.xlu0 %v1572_v35, %s2842_s17  ;;  %v1596_v53 = vmul.f32 %v2715_v33, %v1594_v62 }
0x1c34   :  { %1602 = vrot.lane.b32.xlu1 %v1596_v53, %s2843_s18 }
0x1ca4   :  { %v1599_v34 = vpop.permute.xlu0 %1598 }
0x1ca6   :  { %v1603_v18 = vpop.permute.xlu1 %1602 }
0x1ca7   :  { %v1605_v36 = vsel %vm252_vm11, %v1599_v34, %v1603_v18 }
0x1ca8   :  { %v1606_v9 = vpack.c.bf16 %v1605_v36, %v1605_v36 }
0x1caa   :  { %2409 = vmatmul.mubr.msk.bf16.vlgmr.msra.gmra.mxu0 %vm386_vm12, %v1606_v9 }
0x1cab   :  { %1823 = vmatpush1.bf16.msra.mxu0 %v3275_v47  ;;  %1846 = vmatprep.mubr.bf16.mxu0 %v2838_v2 }
0x1cac   :  { %1824 = vmatprep.subr.bf16.mxu0 %v3284_v49 }
0x1caf   :  { %1825 = vmatpush1.bf16.msra.mxu0 %v3293_v51 }
0x1cb0   :  { %1826 = vmatprep.subr.bf16.mxu0 %v3302_v38 }
0x1cb3   :  { %1827 = vmatpush1.bf16.msra.mxu0 %v3314_v41 }
0x1cb4   :  { %1828 = vmatprep.subr.bf16.mxu0 %v3326_v52 }
0x1cb7   :  { %1829 = vmatpush1.bf16.msra.mxu0 %v3331_v24 }
0x1cb8   :  { %2026 = vmatprep.subr.bf16.mxu0 %v3270_v37 }
0x1d6a   :  { %v1644_v6 = vpop.f32.mrf.mxu0 }
0x1d6b   :  { %v1645_v4 = vadd.f32 %v1644_v6, %v3400_v25 }
0x1d6c   :  { %v1646_v0 = vpop.f32.mrf.mxu0 }
0x1d6d   :  { %2720 = vtanh.f32 %v1645_v4  ;;  %v1647_v29 = vadd.f32 %v1646_v0, %v3415_v39  ;;  %v2410_v17 = vmul.f32 -1.442695, %v1645_v4 }
0x1d6e   :  { %v1648_v45 = vpop.f32.mrf.mxu0 }
0x1d6f   :  { %2722 = vtanh.f32 %v1647_v29  ;;  %v2411_v40 = vmul.f32 -1.442695, %v1647_v29 }
0x1d70   :  { %v1649_v31 = vpop.f32.mrf.mxu0  ;;  %2724 = vpow2.f32 %v2410_v17 }
0x1d71   :  { %2726 = vpow2.f32 %v2411_v40 }
0x1d7a   :  { %v2721_v46 = vpop.eup %2720 }
0x1d7b   :  { %1660 = vrot.lane.b32.xlu0 %v2721_v46, %s2841_s4 }
0x1d7c   :  { %v2723_v50 = vpop.eup %2722 }
0x1d7d   :  { %1684 = vrot.lane.b32.xlu1 %v2723_v50, %s2841_s4  ;;  %v2725_v43 = vpop.eup %2724 }
0x1d7e   :  { %v2727_v21 = vpop.eup %2726  ;;  %v1654_v25 = vadd.f32 1.0, %v2725_v43 }
0x1d7f   :  { %v1678_v19 = vadd.f32 1.0, %v2727_v21 }
0x1d80   :  { %2728 = vrcp.f32 %v1654_v25 }
0x1d81   :  { %2730 = vrcp.f32 %v1678_v19 }
0x1d8d   :  { %v2729_v39 = vpop.eup %2728 }
0x1d8e   :  { %v2731_v57 = vpop.eup %2730  ;;  %v1658_v44 = vmul.f32 %v2729_v39, %v1566_v54 }
0x1d8f   :  { %v1682_v33 = vmul.f32 %v2731_v57, %v1590_v8 }
0x1ded   :  { %v1661_v56 = vpop.permute.xlu0 %1660 }
0x1dee   :  { %v1663_v26 = vmul.f32 %v2729_v39, %v1661_v56 }
0x1def   :  { %v1685_v10 = vpop.permute.xlu1 %1684 }
0x1df0   :  { %1665 = vrot.lane.b32.xlu0 %v1663_v26, %s2841_s4  ;;  %v1687_v15 = vmul.f32 %v2731_v57, %v1685_v10 }
0x1df2   :  { %1689 = vrot.lane.b32.xlu1 %v1687_v15, %s2841_s4 }
0x1e62   :  { %v1666_v11 = vpop.permute.xlu0 %1665 }
0x1e63   :  { %v1668_v12 = vadd.f32 %v1666_v11, %v1658_v44 }
0x1e64   :  { %v1690_v7 = vpop.permute.xlu1 %1689 }
0x1e65   :  { %2732 = vtanh.f32 %v1668_v12  ;;  %v1692_v3 = vadd.f32 %v1690_v7, %v1682_v33 }
0x1e67   :  { %2734 = vtanh.f32 %v1692_v3 }
0x1e72   :  { %v2733_v63 = vpop.eup %2732 }
0x1e73   :  { %1671 = vrot.lane.b32.xlu0 %v2733_v63, %s2841_s4 }
0x1e74   :  { %v2735_v30 = vpop.eup %2734 }
0x1e75   :  { %1695 = vrot.lane.b32.xlu1 %v2735_v30, %s2841_s4 }
0x1ee5   :  { %v1672_v14 = vpop.permute.xlu0 %1671 }
0x1ee6   :  { %v1674_v58 = vmul.f32 %v2729_v39, %v1672_v14 }
0x1ee7   :  { %v1696_v60 = vpop.permute.xlu1 %1695 }
0x1ee8   :  { %1700 = vrot.lane.b32.xlu0 %v1674_v58, %s2842_s17  ;;  %v1698_v59 = vmul.f32 %v2731_v57, %v1696_v60 }
0x1eea   :  { %1704 = vrot.lane.b32.xlu1 %v1698_v59, %s2843_s18 }
0x1f5a   :  { %v1701_v54 = vpop.permute.xlu0 %1700 }
0x1f5c   :  { %v1705_v8 = vpop.permute.xlu1 %1704 }
0x1f5d   :  { %v1707_v61 = vsel %vm252_vm11, %v1701_v54, %v1705_v8 }
0x1f5e   :  { %v1708_v35 = vpack.c.bf16 %v1707_v61, %v1707_v61 }
0x1f60   :  { %2412 = vmatmul.mubr.msk.bf16.vlgmr.msra.gmra.mxu1 %vm386_vm12, %v1708_v35 }
0x1f61   :  { %1925 = vmatpush1.bf16.msra.mxu1 %v3275_v47  ;;  %1948 = vmatprep.mubr.bf16.mxu1 %v2838_v2 }
0x1f62   :  { %1926 = vmatprep.subr.bf16.mxu1 %v3284_v49 }
0x1f65   :  { %1927 = vmatpush1.bf16.msra.mxu1 %v3293_v51 }
0x1f66   :  { %1928 = vmatprep.subr.bf16.mxu1 %v3302_v38 }
0x1f69   :  { %1929 = vmatpush1.bf16.msra.mxu1 %v3314_v41 }
0x1f6a   :  { %1930 = vmatprep.subr.bf16.mxu1 %v3326_v52 }
0x1f6d   :  { %1931 = vmatpush1.bf16.msra.mxu1 %v3331_v24 }
0x1f6e   :  { %2128 = vmatprep.subr.bf16.mxu1 %v3270_v37 }
0x2020   :  { %v1746_v62 = vpop.f32.mrf.mxu1 }
0x2021   :  { %v1747_v53 = vadd.f32 %v1746_v62, %v3404_v1 }
0x2022   :  { %v1748_v34 = vpop.f32.mrf.mxu1 }
0x2023   :  { %2736 = vtanh.f32 %v1747_v53  ;;  %v1749_v18 = vadd.f32 %v1748_v34, %v3410_v48  ;;  %v2413_v0 = vmul.f32 -1.442695, %v1747_v53 }
0x2024   :  { %v1750_v36 = vpop.f32.mrf.mxu1 }
0x2025   :  { %2738 = vtanh.f32 %v1749_v18  ;;  %v2414_v29 = vmul.f32 -1.442695, %v1749_v18 }
0x2026   :  { %v1751_v9 = vpop.f32.mrf.mxu1  ;;  %2740 = vpow2.f32 %v2413_v0 }
0x2027   :  { %2742 = vpow2.f32 %v2414_v29 }
0x2030   :  { %v2737_v6 = vpop.eup %2736 }
0x2031   :  { %1762 = vrot.lane.b32.xlu0 %v2737_v6, %s2841_s4 }
0x2032   :  { %v2739_v4 = vpop.eup %2738 }
0x2033   :  { %1786 = vrot.lane.b32.xlu1 %v2739_v4, %s2841_s4  ;;  %v2741_v37 = vpop.eup %2740 }
0x2034   :  { %v2743_v45 = vpop.eup %2742  ;;  %v1756_v1 = vadd.f32 1.0, %v2741_v37 }
0x2035   :  { %v1780_v31 = vadd.f32 1.0, %v2743_v45 }
0x2036   :  { %2744 = vrcp.f32 %v1756_v1 }
0x2037   :  { %2746 = vrcp.f32 %v1780_v31 }
0x2043   :  { %v2745_v48 = vpop.eup %2744 }
0x2044   :  { %v2747_v17 = vpop.eup %2746  ;;  %v1760_v21 = vmul.f32 %v2745_v48, %v1668_v12 }
0x2045   :  { %v1784_v39 = vmul.f32 %v2747_v17, %v1692_v3 }
0x20a3   :  { %v1763_v46 = vpop.permute.xlu0 %1762 }
0x20a4   :  { %v1765_v50 = vmul.f32 %v2745_v48, %v1763_v46 }
0x20a5   :  { %v1787_v40 = vpop.permute.xlu1 %1786 }
0x20a6   :  { %1767 = vrot.lane.b32.xlu0 %v1765_v50, %s2841_s4  ;;  %v1789_v43 = vmul.f32 %v2747_v17, %v1787_v40 }
0x20a8   :  { %1791 = vrot.lane.b32.xlu1 %v1789_v43, %s2841_s4 }
0x2118   :  { %v1768_v25 = vpop.permute.xlu0 %1767 }
0x2119   :  { %v1770_v19 = vadd.f32 %v1768_v25, %v1760_v21 }
0x211a   :  { %v1792_v56 = vpop.permute.xlu1 %1791 }
0x211b   :  { %2748 = vtanh.f32 %v1770_v19  ;;  %v1794_v26 = vadd.f32 %v1792_v56, %v1784_v39 }
0x211d   :  { %2750 = vtanh.f32 %v1794_v26 }
0x2128   :  { %v2749_v57 = vpop.eup %2748 }
0x2129   :  { %1773 = vrot.lane.b32.xlu0 %v2749_v57, %s2841_s4 }
0x212a   :  { %v2751_v10 = vpop.eup %2750 }
0x212b   :  { %1797 = vrot.lane.b32.xlu1 %v2751_v10, %s2841_s4 }
0x219b   :  { %v1774_v15 = vpop.permute.xlu0 %1773 }
0x219c   :  { %v1776_v44 = vmul.f32 %v2745_v48, %v1774_v15 }
0x219d   :  { %v1798_v11 = vpop.permute.xlu1 %1797 }
0x219e   :  { %1802 = vrot.lane.b32.xlu0 %v1776_v44, %s2842_s17  ;;  %v1800_v33 = vmul.f32 %v2747_v17, %v1798_v11 }
0x21a0   :  { %1806 = vrot.lane.b32.xlu1 %v1800_v33, %s2843_s18 }
0x2210   :  { %v1803_v12 = vpop.permute.xlu0 %1802 }
0x2212   :  { %v1807_v7 = vpop.permute.xlu1 %1806 }
0x2213   :  { %v1809_v3 = vsel %vm252_vm11, %v1803_v12, %v1807_v7 }
0x2214   :  { %v1810_v63 = vpack.c.bf16 %v1809_v3, %v1809_v3 }
0x2216   :  { %2415 = vmatmul.mubr.msk.bf16.vlgmr.msra.gmra.mxu0 %vm386_vm12, %v1810_v63 }
0x2217   :  { %2027 = vmatpush1.bf16.msra.mxu0 %v3275_v47  ;;  %2050 = vmatprep.mubr.bf16.mxu0 %v2838_v2 }
0x2218   :  { %2028 = vmatprep.subr.bf16.mxu0 %v3284_v49 }
0x221b   :  { %2029 = vmatpush1.bf16.msra.mxu0 %v3293_v51 }
0x221c   :  { %2030 = vmatprep.subr.bf16.mxu0 %v3302_v38 }
0x221f   :  { %2031 = vmatpush1.bf16.msra.mxu0 %v3314_v41 }
0x2220   :  { %2032 = vmatprep.subr.bf16.mxu0 %v3326_v52 }
0x2223   :  { %2033 = vmatpush1.bf16.msra.mxu0 %v3331_v24 }
0x2224   :  { %2469 = vmatprep.subr.mxu0 %v2840_v23 }
0x22d6   :  { %v1848_v30 = vpop.f32.mrf.mxu0 }
0x22d7   :  { %v1849_v14 = vadd.f32 %v1848_v30, %v3408_v13 }
0x22d8   :  { %v1850_v58 = vpop.f32.mrf.mxu0 }
0x22d9   :  { %2752 = vtanh.f32 %v1849_v14  ;;  %v1851_v60 = vadd.f32 %v1850_v58, %v3406_v32  ;;  %v2416_v35 = vmul.f32 -1.442695, %v1849_v14 }
0x22da   :  { %v1852_v59 = vpop.f32.mrf.mxu0 }
0x22db   :  { %2754 = vtanh.f32 %v1851_v60  ;;  %v2417_v62 = vmul.f32 -1.442695, %v1851_v60 }
0x22dc   :  { %v1853_v54 = vpop.f32.mrf.mxu0  ;;  %2756 = vpow2.f32 %v2416_v35 }
0x22dd   :  { %2758 = vpow2.f32 %v2417_v62 }
0x22e6   :  { %v2753_v8 = vpop.eup %2752 }
0x22e7   :  { %1864 = vrot.lane.b32.xlu0 %v2753_v8, %s2841_s4 }
0x22e8   :  { %v2755_v61 = vpop.eup %2754 }
0x22e9   :  { %1888 = vrot.lane.b32.xlu1 %v2755_v61, %s2841_s4  ;;  %v2757_v53 = vpop.eup %2756 }
0x22ea   :  { %v2759_v34 = vpop.eup %2758  ;;  %v1858_v13 = vadd.f32 1.0, %v2757_v53 }
0x22eb   :  { %v1882_v18 = vadd.f32 1.0, %v2759_v34 }
0x22ec   :  { %2760 = vrcp.f32 %v1858_v13 }
0x22ed   :  { %2762 = vrcp.f32 %v1882_v18 }
0x22f9   :  { %v2761_v32 = vpop.eup %2760 }
0x22fa   :  { %v2763_v6 = vpop.eup %2762  ;;  %v1862_v29 = vmul.f32 %v2761_v32, %v1770_v19 }
0x22fb   :  { %v1886_v1 = vmul.f32 %v2763_v6, %v1794_v26 }
0x2359   :  { %v1865_v36 = vpop.permute.xlu0 %1864 }
0x235a   :  { %v1867_v9 = vmul.f32 %v2761_v32, %v1865_v36 }
0x235b   :  { %v1889_v4 = vpop.permute.xlu1 %1888 }
0x235c   :  { %1869 = vrot.lane.b32.xlu0 %v1867_v9, %s2841_s4  ;;  %v1891_v0 = vmul.f32 %v2763_v6, %v1889_v4 }
0x235e   :  { %1893 = vrot.lane.b32.xlu1 %v1891_v0, %s2841_s4 }
0x23ce   :  { %v1870_v37 = vpop.permute.xlu0 %1869 }
0x23cf   :  { %v1872_v45 = vadd.f32 %v1870_v37, %v1862_v29 }
0x23d0   :  { %v1894_v31 = vpop.permute.xlu1 %1893 }
0x23d1   :  { %2764 = vtanh.f32 %v1872_v45  ;;  %v1896_v48 = vadd.f32 %v1894_v31, %v1886_v1 }
0x23d3   :  { %2766 = vtanh.f32 %v1896_v48 }
0x23de   :  { %v2765_v46 = vpop.eup %2764 }
0x23df   :  { %1875 = vrot.lane.b32.xlu0 %v2765_v46, %s2841_s4 }
0x23e0   :  { %v2767_v50 = vpop.eup %2766 }
0x23e1   :  { %1899 = vrot.lane.b32.xlu1 %v2767_v50, %s2841_s4 }
0x2451   :  { %v1876_v17 = vpop.permute.xlu0 %1875 }
0x2452   :  { %v1878_v40 = vmul.f32 %v2761_v32, %v1876_v17 }
0x2453   :  { %v1900_v43 = vpop.permute.xlu1 %1899 }
0x2454   :  { %1904 = vrot.lane.b32.xlu0 %v1878_v40, %s2842_s17  ;;  %v1902_v21 = vmul.f32 %v2763_v6, %v1900_v43 }
0x2456   :  { %1908 = vrot.lane.b32.xlu1 %v1902_v21, %s2843_s18 }
0x24c6   :  { %v1905_v25 = vpop.permute.xlu0 %1904 }
0x24c8   :  { %v1909_v19 = vpop.permute.xlu1 %1908 }
0x24c9   :  { %v1911_v39 = vsel %vm252_vm11, %v1905_v25, %v1909_v19 }
0x24ca   :  { %v1912_v56 = vpack.c.bf16 %v1911_v39, %v1911_v39 }
0x24cc   :  { %2418 = vmatmul.mubr.msk.bf16.vlgmr.msra.gmra.mxu1 %vm386_vm12, %v1912_v56 }
0x24cd   :  { %2129 = vmatpush1.bf16.msra.mxu1 %v3275_v47  ;;  %2152 = vmatprep.mubr.bf16.mxu1 %v2838_v2 }
0x24ce   :  { %2130 = vmatprep.subr.bf16.mxu1 %v3284_v49 }
0x24d1   :  { %2131 = vmatpush1.bf16.msra.mxu1 %v3293_v51 }
0x24d2   :  { %2132 = vmatprep.subr.bf16.mxu1 %v3302_v38 }
0x24d5   :  { %2133 = vmatpush1.bf16.msra.mxu1 %v3314_v41 }
0x24d6   :  { %2134 = vmatprep.subr.bf16.mxu1 %v3326_v52 }
0x24d9   :  { %2135 = vmatpush1.bf16.msra.mxu1 %v3331_v24 }
0x258c   :  { %v1950_v26 = vpop.f32.mrf.mxu1 }
0x258d   :  { %v1951_v57 = vadd.f32 %v1950_v26, %v3413_v28 }
0x258e   :  { %v1952_v10 = vpop.f32.mrf.mxu1 }
0x258f   :  { %2768 = vtanh.f32 %v1951_v57  ;;  %v1953_v47 = vadd.f32 %v1952_v10, %v3402_v27  ;;  %v2419_v38 = vmul.f32 -1.442695, %v1951_v57 }
0x2590   :  { %v1954_v2 = vpop.f32.mrf.mxu1 }
0x2591   :  { %2770 = vtanh.f32 %v1953_v47  ;;  %v2420_v41 = vmul.f32 -1.442695, %v1953_v47 }
0x2592   :  { %v1955_v49 = vpop.f32.mrf.mxu1  ;;  %2772 = vpow2.f32 %v2419_v38 }
0x2593   :  { %2774 = vpow2.f32 %v2420_v41 }
0x259c   :  { %v2769_v15 = vpop.eup %2768 }
0x259d   :  { %1966 = vrot.lane.b32.xlu0 %v2769_v15, %s2841_s4 }
0x259e   :  { %v2771_v51 = vpop.eup %2770 }
0x259f   :  { %1990 = vrot.lane.b32.xlu1 %v2771_v51, %s2841_s4  ;;  %v2773_v52 = vpop.eup %2772 }
0x25a0   :  { %v2775_v24 = vpop.eup %2774  ;;  %v1960_v28 = vadd.f32 1.0, %v2773_v52 }
0x25a1   :  { %v1984_v44 = vadd.f32 1.0, %v2775_v24 }
0x25a2   :  { %2776 = vrcp.f32 %v1960_v28 }
0x25a3   :  { %2778 = vrcp.f32 %v1984_v44 }
0x25af   :  { %v2777_v27 = vpop.eup %2776 }
0x25b0   :  { %v2779_v12 = vpop.eup %2778  ;;  %v1964_v63 = vmul.f32 %v2777_v27, %v1872_v45 }
0x25b1   :  { %v1988_v58 = vmul.f32 %v2779_v12, %v1896_v48 }
0x260f   :  { %v1967_v11 = vpop.permute.xlu0 %1966 }
0x2610   :  { %v1969_v33 = vmul.f32 %v2777_v27, %v1967_v11 }
0x2611   :  { %v1991_v7 = vpop.permute.xlu1 %1990 }
0x2612   :  { %1971 = vrot.lane.b32.xlu0 %v1969_v33, %s2841_s4  ;;  %v1993_v3 = vmul.f32 %v2779_v12, %v1991_v7 }
0x2614   :  { %1995 = vrot.lane.b32.xlu1 %v1993_v3, %s2841_s4 }
0x2684   :  { %v1972_v30 = vpop.permute.xlu0 %1971 }
0x2685   :  { %v1974_v14 = vadd.f32 %v1972_v30, %v1964_v63 }
0x2686   :  { %v1996_v60 = vpop.permute.xlu1 %1995 }
0x2687   :  { %2780 = vtanh.f32 %v1974_v14  ;;  %v1998_v59 = vadd.f32 %v1996_v60, %v1988_v58 }
0x2689   :  { %2782 = vtanh.f32 %v1998_v59 }
0x2694   :  { %v2781_v54 = vpop.eup %2780 }
0x2695   :  { %1977 = vrot.lane.b32.xlu0 %v2781_v54, %s2841_s4 }
0x2696   :  { %v2783_v8 = vpop.eup %2782 }
0x2697   :  { %2001 = vrot.lane.b32.xlu1 %v2783_v8, %s2841_s4 }
0x2707   :  { %v1978_v61 = vpop.permute.xlu0 %1977 }
0x2708   :  { %v1980_v35 = vmul.f32 %v2777_v27, %v1978_v61 }
0x2709   :  { %v2002_v62 = vpop.permute.xlu1 %2001 }
0x270a   :  { %2006 = vrot.lane.b32.xlu0 %v1980_v35, %s2842_s17  ;;  %v2004_v53 = vmul.f32 %v2779_v12, %v2002_v62 }
0x270c   :  { %2010 = vrot.lane.b32.xlu1 %v2004_v53, %s2843_s18 }
0x277c   :  { %v2007_v34 = vpop.permute.xlu0 %2006 }
0x277e   :  { %v2011_v13 = vpop.permute.xlu1 %2010 }
0x277f   :  { %v2013_v18 = vsel %vm252_vm11, %v2007_v34, %v2011_v13 }
0x2780   :  { %v2014_v32 = vpack.c.bf16 %v2013_v18, %v2013_v18 }
0x2782   :  { %2421 = vmatmul.mubr.msk.bf16.vlgmr.msra.gmra.mxu0 %vm386_vm12, %v2014_v32 }
0x2783   :  { %2501 = vmatprep.mubr.msk.f32.mxu0 %vm2844_vm13, %v2840_v23 }
0x2842   :  { %v2052_v36 = vpop.f32.mrf.mxu0 }
0x2843   :  { %v2053_v9 = vadd.f32 %v2052_v36, %v3417_v42 }
0x2844   :  { %v2054_v6 = vpop.f32.mrf.mxu0 }
0x2845   :  { %2784 = vtanh.f32 %v2053_v9  ;;  %v2055_v4 = vadd.f32 %v2054_v6, %v3398_v20  ;;  %v2422_v1 = vmul.f32 -1.442695, %v2053_v9  ;;  %v2235_v9 = vld [vmem:[%s3656_s8 + $0x78] sm:$0xff]  ;;  %v2234_v6 = vld [vmem:[%s3656_s8 + $0x70] sm:$0xff] }
0x2846   :  { %v2056_v0 = vpop.f32.mrf.mxu0  ;;  %2470 = vmatpush3.msra.mxu0 %v2235_v9 }
0x2847   :  { %2786 = vtanh.f32 %v2055_v4  ;;  %v2423_v31 = vmul.f32 -1.442695, %v2055_v4  ;;  %2471 = vmatprep.subr.mxu0 %v2840_v23  ;;  %v2233_v4 = vld [vmem:[%s3656_s8 + $0x68] sm:$0xff]  ;;  %v2232_v0 = vld [vmem:[%s3656_s8 + $0x60] sm:$0xff] }
0x2848   :  { %v2057_v29 = vpop.f32.mrf.mxu0  ;;  %2788 = vpow2.f32 %v2422_v1  ;;  %2472 = vmatpush3.msra.mxu0 %v2234_v6 }
0x2849   :  { %2790 = vpow2.f32 %v2423_v31  ;;  %2473 = vmatprep.subr.mxu0 %v2840_v23  ;;  %v2231_v29 = vld [vmem:[%s3656_s8 + $0x58] sm:$0xff]  ;;  %v2229_v31 = vld [vmem:[%s3656_s8 + $0x48] sm:$0xff] }
0x284a   :  { %2474 = vmatpush3.msra.mxu0 %v2233_v4 }
0x284b   :  { %2475 = vmatprep.subr.mxu0 %v2840_v23 }
0x284c   :  { %2476 = vmatpush3.msra.mxu0 %v2232_v0 }
0x284d   :  { %2477 = vmatprep.subr.mxu0 %v2840_v23 }
0x284e   :  { %2478 = vmatpush3.msra.mxu0 %v2231_v29 }
0x284f   :  { %2479 = vmatprep.subr.mxu0 %v2840_v23 }
0x2852   :  { %v2785_v37 = vpop.eup %2784 }
0x2853   :  { %2068 = vrot.lane.b32.xlu0 %v2785_v37, %s2841_s4 }
0x2854   :  { %v2787_v45 = vpop.eup %2786 }
0x2855   :  { %2092 = vrot.lane.b32.xlu1 %v2787_v45, %s2841_s4  ;;  %v2789_v48 = vpop.eup %2788  ;;  %v2230_v45 = vld [vmem:[%s3656_s8 + $0x50] sm:$0xff] }
0x2856   :  { %v2791_v46 = vpop.eup %2790  ;;  %v2062_v42 = vadd.f32 1.0, %v2789_v48  ;;  %2480 = vmatpush3.msra.mxu0 %v2230_v45  ;;  %v2228_v48 = vld [vmem:[%s3656_s8 + $0x40] sm:$0xff] }
0x2857   :  { %v2086_v50 = vadd.f32 1.0, %v2791_v46  ;;  %2481 = vmatprep.subr.mxu0 %v2840_v23  ;;  %v2227_v46 = vld [vmem:[%s3656_s8 + $0x38] sm:$0xff] }
0x2858   :  { %2792 = vrcp.f32 %v2062_v42  ;;  %2482 = vmatpush3.msra.mxu0 %v2229_v31  ;;  %v2225_v42 = vld [vmem:[%s3656_s8 + $0x28] sm:$0xff] }
0x2859   :  { %2794 = vrcp.f32 %v2086_v50  ;;  %2483 = vmatprep.subr.mxu0 %v2840_v23  ;;  %v2224_v50 = vld [vmem:[%s3656_s8 + $0x20] sm:$0xff] }
0x285a   :  { %2484 = vmatpush3.msra.mxu0 %v2228_v48 }
0x285b   :  { %2485 = vmatprep.subr.mxu0 %v2840_v23 }
0x285c   :  { %2486 = vmatpush3.msra.mxu0 %v2227_v46 }
0x285d   :  { %2487 = vmatprep.subr.mxu0 %v2840_v23 }
0x2865   :  { %v2793_v20 = vpop.eup %2792 }
0x2866   :  { %v2795_v43 = vpop.eup %2794  ;;  %v2066_v19 = vmul.f32 %v2793_v20, %v1974_v14 }
0x2867   :  { %v2090_v26 = vmul.f32 %v2795_v43, %v1998_v59 }
0x28c5   :  { %v2069_v17 = vpop.permute.xlu0 %2068 }
0x28c6   :  { %v2071_v40 = vmul.f32 %v2793_v20, %v2069_v17  ;;  %v2222_v17 = vld [vmem:[%s3656_s8 + $0x10] sm:$0xff] }
0x28c7   :  { %v2093_v21 = vpop.permute.xlu1 %2092 }
0x28c8   :  { %2073 = vrot.lane.b32.xlu0 %v2071_v40, %s2841_s4  ;;  %v2095_v25 = vmul.f32 %v2795_v43, %v2093_v21  ;;  %v2221_v40 = vld [vmem:[%s3656_s8 + $0x8] sm:$0xff] }
0x28ca   :  { %2097 = vrot.lane.b32.xlu1 %v2095_v25, %s2841_s4 }
0x293a   :  { %v2074_v39 = vpop.permute.xlu0 %2073 }
0x293b   :  { %v2076_v56 = vadd.f32 %v2074_v39, %v2066_v19 }
0x293c   :  { %v2098_v57 = vpop.permute.xlu1 %2097 }
0x293d   :  { %2796 = vtanh.f32 %v2076_v56  ;;  %v2100_v10 = vadd.f32 %v2098_v57, %v2090_v26 }
0x293f   :  { %2798 = vtanh.f32 %v2100_v10 }
0x294a   :  { %v2797_v47 = vpop.eup %2796 }
0x294b   :  { %2079 = vrot.lane.b32.xlu0 %v2797_v47, %s2841_s4 }
0x294c   :  { %v2799_v2 = vpop.eup %2798 }
0x294d   :  { %2103 = vrot.lane.b32.xlu1 %v2799_v2, %s2841_s4 }
0x29bd   :  { %v2080_v49 = vpop.permute.xlu0 %2079 }
0x29be   :  { %v2082_v15 = vmul.f32 %v2793_v20, %v2080_v49  ;;  %v2223_v20 = vld [vmem:[%s3656_s8 + $0x18] sm:$0xff] }
0x29bf   :  { %v2104_v51 = vpop.permute.xlu1 %2103 }
0x29c0   :  { %2108 = vrot.lane.b32.xlu0 %v2082_v15, %s2842_s17  ;;  %v2106_v38 = vmul.f32 %v2795_v43, %v2104_v51  ;;  %v2220_v43 = vld [vmem:[%s3656_s8] sm:$0xff] }
0x29c2   :  { %2112 = vrot.lane.b32.xlu1 %v2106_v38, %s2843_s18 }
0x2a32   :  { %v2109_v41 = vpop.permute.xlu0 %2108 }
0x2a34   :  { %v2113_v52 = vpop.permute.xlu1 %2112 }
0x2a35   :  { %v2115_v24 = vsel %vm252_vm11, %v2109_v41, %v2113_v52 }
0x2a36   :  { %v2116_v28 = vpack.c.bf16 %v2115_v24, %v2115_v24 }
0x2a38   :  { %2424 = vmatmul.mubr.msk.bf16.vlgmr.msra.gmra.mxu1 %vm386_vm12, %v2116_v28 }
0x2af8   :  { %v2154_v44 = vpop.f32.mrf.mxu1 }
0x2af9   :  { %v2155_v27 = vadd.f32 %v2154_v44, %v3421_v55 }
0x2afa   :  { %v2156_v11 = vpop.f32.mrf.mxu1 }
0x2afb   :  { %2800 = vtanh.f32 %v2155_v27  ;;  %v2157_v33 = vadd.f32 %v2156_v11, %v3394_v5  ;;  %v2425_v30 = vmul.f32 -1.442695, %v2155_v27 }
0x2afc   :  { %v2158_v12 = vpop.f32.mrf.mxu1 }
0x2afd   :  { %2802 = vtanh.f32 %v2157_v33  ;;  %v2426_v14 = vmul.f32 -1.442695, %v2157_v33 }
0x2afe   :  { %v2159_v7 = vpop.f32.mrf.mxu1  ;;  %2804 = vpow2.f32 %v2425_v30 }
0x2aff   :  { %2806 = vpow2.f32 %v2426_v14 }
0x2b08   :  { %v2801_v3 = vpop.eup %2800 }
0x2b09   :  { %2170 = vrot.lane.b32.xlu1 %v2801_v3, %s2841_s4 }
0x2b0a   :  { %v2803_v63 = vpop.eup %2802 }
0x2b0b   :  { %2194 = vrot.lane.b32.xlu0 %v2803_v63, %s2841_s4  ;;  %v2805_v58 = vpop.eup %2804 }
0x2b0c   :  { %v2807_v60 = vpop.eup %2806  ;;  %v2164_v55 = vadd.f32 1.0, %v2805_v58 }
0x2b0d   :  { %v2188_v59 = vadd.f32 1.0, %v2807_v60 }
0x2b0e   :  { %2808 = vrcp.f32 %v2164_v55 }
0x2b0f   :  { %2810 = vrcp.f32 %v2188_v59 }
0x2b1b   :  { %v3558_v5 = vpop.eup %2808 }
0x2b1c   :  { %v3561_v61 = vpop.eup %2810  ;;  %v2168_v53 = vmul.f32 %v3558_v5, %v2076_v56 }
0x2b1d   :  { %v2192_v18 = vmul.f32 %v3561_v61, %v2100_v10 }
0x2b7b   :  { %v2171_v54 = vpop.permute.xlu1 %2170 }
0x2b7c   :  { %v2173_v8 = vmul.f32 %v3558_v5, %v2171_v54 }
0x2b7d   :  { %v2195_v35 = vpop.permute.xlu0 %2194 }
0x2b7e   :  { %2175 = vrot.lane.b32.xlu1 %v2173_v8, %s2841_s4  ;;  %v2197_v62 = vmul.f32 %v3561_v61, %v2195_v35 }
0x2b80   :  { %2199 = vrot.lane.b32.xlu0 %v2197_v62, %s2841_s4 }
0x2bf0   :  { %v2176_v34 = vpop.permute.xlu1 %2175 }
0x2bf1   :  { %v2178_v13 = vadd.f32 %v2176_v34, %v2168_v53 }
0x2bf2   :  { %v2200_v32 = vpop.permute.xlu0 %2199 }
0x2bf3   :  { %2812 = vtanh.f32 %v2178_v13  ;;  %v2202_v36 = vadd.f32 %v2200_v32, %v2192_v18 }
0x2bf5   :  { %2814 = vtanh.f32 %v2202_v36 }
0x2c00   :  { %v2813_v37 = vpop.eup %2812 }
0x2c01   :  { %2181 = vrot.lane.b32.xlu1 %v2813_v37, %s2841_s4 }
0x2c02   :  { %v2815_v1 = vpop.eup %2814 }
0x2c03   :  { %2205 = vrot.lane.b32.xlu0 %v2815_v1, %s2841_s4 }
0x2c05   :  { %2213 = vrot.lane.b32.xlu1 %v3429_v16, %s2841_s4  ;;  %v2226_v16 = vld [vmem:[%s3656_s8 + $0x30] sm:$0xff] }
0x2c06   :  { %2488 = vmatpush3.msra.mxu0 %v2226_v16 }
0x2c07   :  { %2489 = vmatprep.subr.mxu0 %v2840_v23 }
0x2c08   :  { %2490 = vmatpush3.msra.mxu0 %v2225_v42 }
0x2c09   :  { %2491 = vmatprep.subr.mxu0 %v2840_v23 }
0x2c0a   :  { %2492 = vmatpush3.msra.mxu0 %v2224_v50 }
0x2c0b   :  { %2493 = vmatprep.subr.mxu0 %v2840_v23 }
0x2c0c   :  { %2494 = vmatpush3.msra.mxu0 %v2223_v20 }
0x2c0d   :  { %2495 = vmatprep.subr.mxu0 %v2840_v23 }
0x2c0e   :  { %2496 = vmatpush3.msra.mxu0 %v2222_v17 }
0x2c0f   :  { %2497 = vmatprep.subr.mxu0 %v2840_v23 }
0x2c10   :  { %2498 = vmatpush3.msra.mxu0 %v2221_v40 }
0x2c11   :  { %2499 = vmatprep.subr.mxu0 %v2840_v23  ;;  %v2427_v23 = vld [vmem:[%s3657_s9] ss:$0 sm:$0xff] }
0x2c12   :  { %2500 = vmatpush3.msra.mxu0 %v2220_v43 }
0x2c73   :  { %v2182_v19 = vpop.permute.xlu1 %2181 }
0x2c74   :  { %v2184_v39 = vmul.f32 %v3558_v5, %v2182_v19 }
0x2c75   :  { %v2206_v21 = vpop.permute.xlu0 %2205 }
0x2c76   :  { %v2208_v25 = vmul.f32 %v3561_v61, %v2206_v21 }
0x2c77   :  { %v2214_v57 = vpop.permute.xlu1 %2213 }
0x2c78   :  { %2210 = vrot.lane.b32.xlu0 %v2208_v25, %s2843_s18  ;;  %s2816_s18 = scalar_lea.vmem %s2322_s13, 32 }
0x2c79   :  { %p2817_p0 = scmp.ne.s32.totalorder %s2322_s13, %s2816_s18  ;;  %p2822_p2 = scmp.lt.s32.totalorder %s2816_s18, %s2816_s18 }
0x2c7b   :  { %p2823_p3 = por %p2822_p2, %p2821_p1 }
0x2c7d   :  { %p2824_p4 = pnand %p2823_p3, %p2817_p0 }
0x2cea   :  { %v2211_v56 = vpop.permute.xlu0 %2210 }
0x2ceb   :  { %v2216_v26 = vsel %vm252_vm11, %v3433_v22, %v2211_v56 }
0x2cec   :  { %v2217_v10 = vsel %vm386_vm12, %v2216_v26, %v2184_v39 }
0x2ced   :  { %v2219_v47 = vsel %vm2218_vm14, %v2217_v10, %v2214_v57 }
0x2cee   :  { %2502 = vmatmul.mubr.f32.vlgmr.msra.gmra.mxu0 %v2219_v47 }
0x2dae   :  { %v2309_v2 = vpop.f32.mrf.mxu0 }
0x2daf   :  { %v2310_v49 = vadd.f32 %v2427_v23, %v2309_v2 }
0x2db0   :  { %v2503_v15 = vpop.f32.mrf.mxu0 }
0x2db1   :  { %2314 = vst.msk [vmem:[#allocation2] sm:$0x3] %vm2313_vm15, %v2310_v49 }
0x2db2   :  { %2827 = shalt.err (!%p2824_p4)
}
0x2db3   :  { %2324 = dma.vmem_to_hbm [thread:$0]  %s2322_s13, 32, %s3658_s10, [#allocation3]  }
0x2db4   :  { %2836 = dma.done.wait [#allocation3], 32  }
0x2db5   :  { %2837 = vsyncadd [#allocation3], 4294967264 }
0x2db6   :  { %2328 = vsyncpa [#allocation3], 1 }

</bundles_post_ra>
